<compile_context>
chip_gen: v7x
topology: tpu7x:2x2x1
jax: 0.10.0
libtpu: 0.0.40
codegen_flags: <defaults>
</compile_context>

<pallas_src>
import functools

import jax
import jax.numpy as jnp
from jax.experimental import pallas as pl
from jax.experimental.pallas import tpu as pltpu


# ------------------------- fused matmul Pallas kernel -------------------------

def _fused_matmul_body(x_ref, w_ref, o_ref, pre, post):
    """y = maybe_bn_relu(x) @ w, then maybe_bn_relu(y).  pre/post: None or
    (scale_ref, shift_ref)."""
    x = x_ref[...]
    if pre is not None:
        s_ref, b_ref = pre
        x = jnp.maximum(x.astype(jnp.float32) * s_ref[...] + b_ref[...], 0.0)
    acc = jnp.dot(x.astype(jnp.bfloat16), w_ref[...],
                  preferred_element_type=jnp.float32)
    if post is not None:
        s_ref, b_ref = post
        acc = jnp.maximum(acc * s_ref[...] + b_ref[...], 0.0)
    o_ref[...] = acc.astype(o_ref.dtype)


def _row_tile(M, K, N, x_itemsize):
    """Largest row tile whose (double-buffered) blocks fit a VMEM budget."""
    budget = 8 * 1024 * 1024  # conservative: fits scoped-VMEM defaults on v5e/v6e/v7x

    def block_bytes(tm):
        return (2 * tm * K * x_itemsize      # x block, double buffered
                + 2 * tm * N * 4             # out block, double buffered
                + K * N * 2                  # bf16 weights, resident
                + 4 * (K + N) * 4)           # scale / shift vectors

    if block_bytes(M) <= budget:
        return M                             # single block: no pipeline overhead
    tm = 1024
    while tm > 8 and block_bytes(tm) > budget:
        tm //= 2
    return max(tm, 8)


def fused_matmul(x, w, pre_bn=None, post_bn=None, out_dtype=jnp.float32):
    """x:[M,K] (f32/bf16), w:[K,N] bf16, pre_bn/post_bn: None or ([1,K],[1,K]) /
    ([1,N],[1,N]) f32 scale,shift.  Returns [M,N] in out_dtype."""
    M, K = x.shape
    K2, N = w.shape
    assert K == K2
    tm = _row_tile(M, K, N, x.dtype.itemsize)
    pad = (-M) % tm
    if pad:
        x = jnp.pad(x, ((0, pad), (0, 0)))
    Mp = M + pad

    inputs = [x, w]
    in_specs = [pl.BlockSpec((tm, K), lambda i: (i, 0)),
                pl.BlockSpec((K, N), lambda i: (0, 0))]
    has_pre = pre_bn is not None
    has_post = post_bn is not None
    if has_pre:
        inputs += [pre_bn[0], pre_bn[1]]
        in_specs += [pl.BlockSpec((1, K), lambda i: (0, 0)),
                     pl.BlockSpec((1, K), lambda i: (0, 0))]
    if has_post:
        inputs += [post_bn[0], post_bn[1]]
        in_specs += [pl.BlockSpec((1, N), lambda i: (0, 0)),
                     pl.BlockSpec((1, N), lambda i: (0, 0))]

    def kernel(*refs):
        x_ref, w_ref = refs[0], refs[1]
        o_ref = refs[-1]
        i = 2
        pre = post = None
        if has_pre:
            pre = (refs[i], refs[i + 1]); i += 2
        if has_post:
            post = (refs[i], refs[i + 1]); i += 2
        _fused_matmul_body(x_ref, w_ref, o_ref, pre, post)

    out = pl.pallas_call(
        kernel,
        out_shape=jax.ShapeDtypeStruct((Mp, N), out_dtype),
        grid=(Mp // tm,),
        in_specs=in_specs,
        out_specs=pl.BlockSpec((tm, N), lambda i: (i, 0)),
        compiler_params=pltpu.CompilerParams(
            dimension_semantics=("parallel",)),
    )(*inputs)
    return out[:M] if pad else out


# ------------------------- fused tail Pallas kernel -------------------------

def _tail_kernel(x_ref, s_ref, b_ref, p_ref, o_ref):
    v = x_ref[...]
    v = jnp.maximum(v * s_ref[...] + b_ref[...], 0.0)       # final BN + ReLU
    g = jnp.mean(v, axis=1)                                  # global avg pool
    o_ref[...] = jnp.dot(g, p_ref[...],                      # AdaptiveAvgPool1d
                         preferred_element_type=jnp.float32)


def pallas_tail(x_nhwc, scale, shift, pool_mat):
    """Fused final-BN+ReLU -> global average pool -> adaptive 1-D avg pool."""
    N, H, W, C = x_nhwc.shape
    x3 = x_nhwc.reshape(N, H * W, C)
    s3 = scale.reshape(1, 1, C)
    b3 = shift.reshape(1, 1, C)
    out_dim = pool_mat.shape[1]
    return pl.pallas_call(
        _tail_kernel,
        out_shape=jax.ShapeDtypeStruct((N, out_dim), jnp.float32),
        in_specs=[
            pl.BlockSpec((N, H * W, C), lambda: (0, 0, 0)),
            pl.BlockSpec((1, 1, C), lambda: (0, 0, 0)),
            pl.BlockSpec((1, 1, C), lambda: (0, 0, 0)),
            pl.BlockSpec((C, out_dim), lambda: (0, 0)),
        ],
        out_specs=pl.BlockSpec((N, out_dim), lambda: (0, 0)),
    )(x3, s3, b3, pool_mat)


# ------------------------- conv glue (im2col) -------------------------

def _im2col(x, kh, kw, stride, padding):
    # x: [N,H,W,C] -> bf16 cols:[N*OH*OW, kh*kw*C]
    N, H, W, C = x.shape
    xp = jnp.pad(x, ((0, 0), (padding, padding), (padding, padding), (0, 0)))
    OH = (H + 2 * padding - kh) // stride + 1
    OW = (W + 2 * padding - kw) // stride + 1
    patches = []
    for i in range(kh):
        for j in range(kw):
            patches.append(
                xp[:, i:i + stride * OH:stride, j:j + stride * OW:stride, :])
    cols = jnp.concatenate(patches, axis=-1).astype(jnp.bfloat16)
    return cols.reshape(N * OH * OW, kh * kw * C), OH, OW


def conv2d(x, w, kh, kw, stride=1, padding=0, post_bn=None,
           out_dtype=jnp.float32):
    """Spatial conv (no bias, like densenet) via im2col + fused Pallas matmul."""
    N = x.shape[0]
    cols, OH, OW = _im2col(x, kh, kw, stride, padding)
    y = fused_matmul(cols, w, post_bn=post_bn, out_dtype=out_dtype)
    return y.reshape(N, OH, OW, w.shape[1])


def conv1x1(x, w, pre_bn=None, post_bn=None, out_dtype=jnp.float32):
    """1x1 conv as a single fused (BN+ReLU ->) matmul (-> BN+ReLU)."""
    N, H, W, C = x.shape
    y = fused_matmul(x.reshape(N * H * W, C), w, pre_bn=pre_bn,
                     post_bn=post_bn, out_dtype=out_dtype)
    return y.reshape(N, H, W, w.shape[1])


# ------------------------- parameters -------------------------

GROWTH = 8
BN_SIZE = 4
INIT_FEATURES = 24
BLOCK_CONFIG = (2, 2)
OUT_DIM = 16  # ConvNet(out_dim=16)


def _make_conv(key, kh, kw, cin, cout):
    fan_in = kh * kw * cin
    w = jax.random.normal(key, (fan_in, cout), jnp.float32)
    return (w * jnp.sqrt(2.0 / fan_in)).astype(jnp.bfloat16)


def _make_bn(key, c, eps=1e-5):
    k1, k2, k3, k4 = jax.random.split(key, 4)
    gamma = 1.0 + 0.1 * jax.random.normal(k1, (c,), jnp.float32)
    beta = 0.1 * jax.random.normal(k2, (c,), jnp.float32)
    mean = 0.1 * jax.random.normal(k3, (c,), jnp.float32)
    var = 1.0 + 0.1 * jax.random.uniform(k4, (c,), jnp.float32)
    scale = gamma / jnp.sqrt(var + eps)
    shift = beta - mean * scale
    return scale[None, :], shift[None, :]


def init_params(key):
    keys = iter(jax.random.split(key, 128))
    params = {
        "conv0": _make_conv(next(keys), 7, 7, 3, INIT_FEATURES),
        "norm0": _make_bn(next(keys), INIT_FEATURES),
    }
    c = INIT_FEATURES
    blocks = []
    for b, nlayers in enumerate(BLOCK_CONFIG):
        layers = []
        for _ in range(nlayers):
            layers.append({
                "norm1": _make_bn(next(keys), c),
                "conv1": _make_conv(next(keys), 1, 1, c, BN_SIZE * GROWTH),
                "norm2": _make_bn(next(keys), BN_SIZE * GROWTH),
                "conv2": _make_conv(next(keys), 3, 3, BN_SIZE * GROWTH, GROWTH),
            })
            c += GROWTH
        block = {"layers": layers}
        if b != len(BLOCK_CONFIG) - 1:  # transition
            block["trans_norm"] = _make_bn(next(keys), c)
            block["trans_conv"] = _make_conv(next(keys), 1, 1, c, c // 2)
            c = c // 2
        blocks.append(block)
    params["blocks"] = blocks
    params["norm_final"] = _make_bn(next(keys), c)
    return params


# ------------------------- forward -------------------------

def densenet_features(params, x_nchw):
    x = jnp.transpose(x_nchw, (0, 2, 3, 1))  # NCHW -> NHWC
    # stem: conv7x7/s2 (BN+ReLU fused as the matmul epilogue) -> maxpool3x3/s2
    x = conv2d(x, params["conv0"], 7, 7, stride=2, padding=3,
               post_bn=params["norm0"])
    x = jax.lax.reduce_window(
        x, -jnp.inf, jax.lax.max,
        (1, 3, 3, 1), (1, 2, 2, 1),
        ((0, 0), (1, 1), (1, 1), (0, 0)))
    # dense blocks
    for block in params["blocks"]:
        for layer in block["layers"]:
            # BN1+ReLU (prologue) -> 1x1 bottleneck -> BN2+ReLU (epilogue),
            # one Pallas call; bf16 output halves the 3x3 im2col traffic.
            h = conv1x1(x, layer["conv1"], pre_bn=layer["norm1"],
                        post_bn=layer["norm2"], out_dtype=jnp.bfloat16)
            y = conv2d(h, layer["conv2"], 3, 3, padding=1)  # 3x3 growth conv
            x = jnp.concatenate([x, y], axis=-1)            # dense concat
        if "trans_conv" in block:
            # transition: BN+ReLU fused as the 1x1 conv's prologue, then 2x2 avgpool
            x = conv1x1(x, block["trans_conv"], pre_bn=block["trans_norm"])
            N, H, W, C = x.shape
            x = x.reshape(N, H // 2, 2, W // 2, 2, C).mean(axis=(2, 4))
    return x  # final BN+ReLU is folded into the fused tail kernel


def adaptive_avg_pool1d_matrix(length, out_dim, dtype=jnp.float32):
    # exact PyTorch AdaptiveAvgPool1d bin arithmetic
    j = jnp.arange(length)[:, None]
    i = jnp.arange(out_dim)[None, :]
    start = (i * length) // out_dim
    end = ((i + 1) * length + out_dim - 1) // out_dim
    mask = (j >= start) & (j < end)
    return mask.astype(dtype) / (end - start).astype(dtype)


def convnet_forward(params, x_nchw, *, out_dim):
    x = densenet_features(params, x_nchw)               # [N, H, W, F] (pre final BN)
    feat_dim = x.shape[-1]
    pool_mat = adaptive_avg_pool1d_matrix(feat_dim, out_dim)
    scale, shift = params["norm_final"]
    y = pallas_tail(x, scale, shift, pool_mat)           # [N, out_dim]
    return y.reshape(x.shape[0], 1, out_dim)             # x.unsqueeze_(1) semantics


# ------------------------- main -------------------------

if __name__ == "__main__":
    key = jax.random.PRNGKey(0)
    pkey, xkey = jax.random.split(key)
    params = init_params(pkey)
    # PyTorch-style NCHW image batch (small): [batch=2, channels=3, 32, 32]
    x = jax.random.normal(xkey, (2, 3, 32, 32), jnp.float32)

    fwd = jax.jit(functools.partial(convnet_forward, out_dim=OUT_DIM))
    out = fwd(params, x)
    out = jax.block_until_ready(out)
    assert out.shape == (2, 1, OUT_DIM), out.shape
    assert out.dtype == jnp.float32
    print("KERNEL_OK")
</pallas_src>

<mosaic_0001>
module attributes {stable_mosaic.version = 11 : i64} {
  func.func @kernel(%arg0: i32, %arg1: memref<512x147xbf16, #tpu.memory_space<vmem>>, %arg2: memref<147x24xbf16, #tpu.memory_space<vmem>>, %arg3: memref<1x24xf32, #tpu.memory_space<vmem>>, %arg4: memref<1x24xf32, #tpu.memory_space<vmem>>, %arg5: memref<512x24xf32, #tpu.memory_space<vmem>>) attributes {dimension_semantics = [#tpu.dimension_semantics<parallel>], iteration_bounds = array<i64: 1>, scalar_prefetch = 0 : i64, scratch_operands = 0 : i64, tpu.core_type = #tpu.core_type<tc>, window_params = [{transform_indices = @transform_0, window_bounds = array<i64: 512, 147>}, {pipeline_mode = #tpu.pipeline_mode<synchronous>, transform_indices = @transform_1, window_bounds = array<i64: 147, 24>}, {pipeline_mode = #tpu.pipeline_mode<synchronous>, transform_indices = @transform_2, window_bounds = array<i64: 1, 24>}, {pipeline_mode = #tpu.pipeline_mode<synchronous>, transform_indices = @transform_3, window_bounds = array<i64: 1, 24>}, {transform_indices = @transform_4, window_bounds = array<i64: 512, 24>}]} {
    %c0 = arith.constant 0 : index
    %c0_0 = arith.constant 0 : index
    %0 = vector.load %arg1[%c0, %c0_0] : memref<512x147xbf16, #tpu.memory_space<vmem>>, vector<512x147xbf16>
    %c0_1 = arith.constant 0 : index
    %c0_2 = arith.constant 0 : index
    %1 = vector.load %arg2[%c0_1, %c0_2] : memref<147x24xbf16, #tpu.memory_space<vmem>>, vector<147x24xbf16>
    %cst = arith.constant dense<0.000000e+00> : vector<512x24xf32>
    %2 = tpu.matmul %0, %1, %cst {dimension_numbers = #tpu.dot_dimension_numbers<[1], [0], [0], [1], [0, 0, 1, 1], [], []>} : vector<512x147xbf16>, vector<147x24xbf16>, vector<512x24xf32> -> vector<512x24xf32>
    %c0_3 = arith.constant 0 : index
    %c0_4 = arith.constant 0 : index
    %3 = vector.load %arg3[%c0_3, %c0_4] : memref<1x24xf32, #tpu.memory_space<vmem>>, vector<1x24xf32>
    %4 = vector.broadcast %3 : vector<1x24xf32> to vector<512x24xf32>
    %5 = arith.mulf %2, %4 : vector<512x24xf32>
    %c0_5 = arith.constant 0 : index
    %c0_6 = arith.constant 0 : index
    %6 = vector.load %arg4[%c0_5, %c0_6] : memref<1x24xf32, #tpu.memory_space<vmem>>, vector<1x24xf32>
    %7 = vector.broadcast %6 : vector<1x24xf32> to vector<512x24xf32>
    %8 = arith.addf %5, %7 : vector<512x24xf32>
    %cst_7 = arith.constant 0.000000e+00 : f32
    %9 = vector.broadcast %cst_7 : f32 to vector<512x24xf32>
    %10 = arith.maximumf %8, %9 : vector<512x24xf32>
    %c0_8 = arith.constant 0 : index
    %c0_9 = arith.constant 0 : index
    %11 = vector.load %arg5[%c0_8, %c0_9] : memref<512x24xf32, #tpu.memory_space<vmem>>, vector<512x24xf32>
    tpu.vector_store %arg5[%c0_8, %c0_9], %10 {strides = array<i32>} : memref<512x24xf32, #tpu.memory_space<vmem>>, vector<512x24xf32>,
    return
  }
  func.func @transform_0(%arg0: i32) -> (i32, i32) {
    %c0_i32 = arith.constant 0 : i32
    %c0_i32_0 = arith.constant 0 : i32
    return %arg0, %c0_i32 : i32, i32
  }
  func.func @transform_1(%arg0: i32) -> (i32, i32) {
    %c0_i32 = arith.constant 0 : i32
    %c0_i32_0 = arith.constant 0 : i32
    %c0_i32_1 = arith.constant 0 : i32
    return %c0_i32, %c0_i32_0 : i32, i32
  }
  func.func @transform_2(%arg0: i32) -> (i32, i32) {
    %c0_i32 = arith.constant 0 : i32
    %c0_i32_0 = arith.constant 0 : i32
    %c0_i32_1 = arith.constant 0 : i32
    return %c0_i32, %c0_i32_0 : i32, i32
  }
  func.func @transform_3(%arg0: i32) -> (i32, i32) {
    %c0_i32 = arith.constant 0 : i32
    %c0_i32_0 = arith.constant 0 : i32
    %c0_i32_1 = arith.constant 0 : i32
    return %c0_i32, %c0_i32_0 : i32, i32
  }
  func.func @transform_4(%arg0: i32) -> (i32, i32) {
    %c0_i32 = arith.constant 0 : i32
    %c0_i32_0 = arith.constant 0 : i32
    return %arg0, %c0_i32 : i32, i32
  }
}

module attributes {stable_mosaic.version = 11 : i64} {
  func.func @kernel(%arg0: i32, %arg1: memref<128x24xf32, #tpu.memory_space<vmem>>, %arg2: memref<24x32xbf16, #tpu.memory_space<vmem>>, %arg3: memref<1x24xf32, #tpu.memory_space<vmem>>, %arg4: memref<1x24xf32, #tpu.memory_space<vmem>>, %arg5: memref<1x32xf32, #tpu.memory_space<vmem>>, %arg6: memref<1x32xf32, #tpu.memory_space<vmem>>, %arg7: memref<128x32xbf16, #tpu.memory_space<vmem>>) attributes {dimension_semantics = [#tpu.dimension_semantics<parallel>], iteration_bounds = array<i64: 1>, scalar_prefetch = 0 : i64, scratch_operands = 0 : i64, tpu.core_type = #tpu.core_type<tc>, window_params = [{transform_indices = @transform_0, window_bounds = array<i64: 128, 24>}, {pipeline_mode = #tpu.pipeline_mode<synchronous>, transform_indices = @transform_1, window_bounds = array<i64: 24, 32>}, {pipeline_mode = #tpu.pipeline_mode<synchronous>, transform_indices = @transform_2, window_bounds = array<i64: 1, 24>}, {pipeline_mode = #tpu.pipeline_mode<synchronous>, transform_indices = @transform_3, window_bounds = array<i64: 1, 24>}, {pipeline_mode = #tpu.pipeline_mode<synchronous>, transform_indices = @transform_4, window_bounds = array<i64: 1, 32>}, {pipeline_mode = #tpu.pipeline_mode<synchronous>, transform_indices = @transform_5, window_bounds = array<i64: 1, 32>}, {transform_indices = @transform_6, window_bounds = array<i64: 128, 32>}]} {
    %c0 = arith.constant 0 : index
    %c0_0 = arith.constant 0 : index
    %0 = vector.load %arg1[%c0, %c0_0] : memref<128x24xf32, #tpu.memory_space<vmem>>, vector<128x24xf32>
    %c0_1 = arith.constant 0 : index
    %c0_2 = arith.constant 0 : index
    %1 = vector.load %arg3[%c0_1, %c0_2] : memref<1x24xf32, #tpu.memory_space<vmem>>, vector<1x24xf32>
    %2 = vector.broadcast %1 : vector<1x24xf32> to vector<128x24xf32>
    %3 = arith.mulf %0, %2 : vector<128x24xf32>
    %c0_3 = arith.constant 0 : index
    %c0_4 = arith.constant 0 : index
    %4 = vector.load %arg4[%c0_3, %c0_4] : memref<1x24xf32, #tpu.memory_space<vmem>>, vector<1x24xf32>
    %5 = vector.broadcast %4 : vector<1x24xf32> to vector<128x24xf32>
    %6 = arith.addf %3, %5 : vector<128x24xf32>
    %cst = arith.constant 0.000000e+00 : f32
    %7 = vector.broadcast %cst : f32 to vector<128x24xf32>
    %8 = arith.maximumf %6, %7 : vector<128x24xf32>
    %9 = arith.truncf %8 : vector<128x24xf32> to vector<128x24xbf16>
    %c0_5 = arith.constant 0 : index
    %c0_6 = arith.constant 0 : index
    %10 = vector.load %arg2[%c0_5, %c0_6] : memref<24x32xbf16, #tpu.memory_space<vmem>>, vector<24x32xbf16>
    %cst_7 = arith.constant dense<0.000000e+00> : vector<128x32xf32>
    %11 = tpu.matmul %9, %10, %cst_7 {dimension_numbers = #tpu.dot_dimension_numbers<[1], [0], [0], [1], [0, 0, 1, 1], [], []>} : vector<128x24xbf16>, vector<24x32xbf16>, vector<128x32xf32> -> vector<128x32xf32>
    %c0_8 = arith.constant 0 : index
    %c0_9 = arith.constant 0 : index
    %12 = vector.load %arg5[%c0_8, %c0_9] : memref<1x32xf32, #tpu.memory_space<vmem>>, vector<1x32xf32>
    %13 = vector.broadcast %12 : vector<1x32xf32> to vector<128x32xf32>
    %14 = arith.mulf %11, %13 : vector<128x32xf32>
    %c0_10 = arith.constant 0 : index
    %c0_11 = arith.constant 0 : index
    %15 = vector.load %arg6[%c0_10, %c0_11] : memref<1x32xf32, #tpu.memory_space<vmem>>, vector<1x32xf32>
    %16 = vector.broadcast %15 : vector<1x32xf32> to vector<128x32xf32>
    %17 = arith.addf %14, %16 : vector<128x32xf32>
    %cst_12 = arith.constant 0.000000e+00 : f32
    %18 = vector.broadcast %cst_12 : f32 to vector<128x32xf32>
    %19 = arith.maximumf %17, %18 : vector<128x32xf32>
    %20 = arith.truncf %19 : vector<128x32xf32> to vector<128x32xbf16>
    %c0_13 = arith.constant 0 : index
    %c0_14 = arith.constant 0 : index
    %21 = vector.load %arg7[%c0_13, %c0_14] : memref<128x32xbf16, #tpu.memory_space<vmem>>, vector<128x32xbf16>
    tpu.vector_store %arg7[%c0_13, %c0_14], %20 {strides = array<i32>} : memref<128x32xbf16, #tpu.memory_space<vmem>>, vector<128x32xbf16>,
    return
  }
  func.func @transform_0(%arg0: i32) -> (i32, i32) {
    %c0_i32 = arith.constant 0 : i32
    %c0_i32_0 = arith.constant 0 : i32
    return %arg0, %c0_i32 : i32, i32
  }
  func.func @transform_1(%arg0: i32) -> (i32, i32) {
    %c0_i32 = arith.constant 0 : i32
    %c0_i32_0 = arith.constant 0 : i32
    %c0_i32_1 = arith.constant 0 : i32
    return %c0_i32, %c0_i32_0 : i32, i32
  }
  func.func @transform_2(%arg0: i32) -> (i32, i32) {
    %c0_i32 = arith.constant 0 : i32
    %c0_i32_0 = arith.constant 0 : i32
    %c0_i32_1 = arith.constant 0 : i32
    return %c0_i32, %c0_i32_0 : i32, i32
  }
  func.func @transform_3(%arg0: i32) -> (i32, i32) {
    %c0_i32 = arith.constant 0 : i32
    %c0_i32_0 = arith.constant 0 : i32
    %c0_i32_1 = arith.constant 0 : i32
    return %c0_i32, %c0_i32_0 : i32, i32
  }
  func.func @transform_4(%arg0: i32) -> (i32, i32) {
    %c0_i32 = arith.constant 0 : i32
    %c0_i32_0 = arith.constant 0 : i32
    %c0_i32_1 = arith.constant 0 : i32
    return %c0_i32, %c0_i32_0 : i32, i32
  }
  func.func @transform_5(%arg0: i32) -> (i32, i32) {
    %c0_i32 = arith.constant 0 : i32
    %c0_i32_0 = arith.constant 0 : i32
    %c0_i32_1 = arith.constant 0 : i32
    return %c0_i32, %c0_i32_0 : i32, i32
  }
  func.func @transform_6(%arg0: i32) -> (i32, i32) {
    %c0_i32 = arith.constant 0 : i32
    %c0_i32_0 = arith.constant 0 : i32
    return %arg0, %c0_i32 : i32, i32
  }
}

module attributes {stable_mosaic.version = 11 : i64} {
  func.func @kernel(%arg0: i32, %arg1: memref<128x288xbf16, #tpu.memory_space<vmem>>, %arg2: memref<288x8xbf16, #tpu.memory_space<vmem>>, %arg3: memref<128x8xf32, #tpu.memory_space<vmem>>) attributes {dimension_semantics = [#tpu.dimension_semantics<parallel>], iteration_bounds = array<i64: 1>, scalar_prefetch = 0 : i64, scratch_operands = 0 : i64, tpu.core_type = #tpu.core_type<tc>, window_params = [{transform_indices = @transform_0, window_bounds = array<i64: 128, 288>}, {pipeline_mode = #tpu.pipeline_mode<synchronous>, transform_indices = @transform_1, window_bounds = array<i64: 288, 8>}, {transform_indices = @transform_2, window_bounds = array<i64: 128, 8>}]} {
    %c0 = arith.constant 0 : index
    %c0_0 = arith.constant 0 : index
    %0 = vector.load %arg1[%c0, %c0_0] : memref<128x288xbf16, #tpu.memory_space<vmem>>, vector<128x288xbf16>
    %c0_1 = arith.constant 0 : index
    %c0_2 = arith.constant 0 : index
    %1 = vector.load %arg2[%c0_1, %c0_2] : memref<288x8xbf16, #tpu.memory_space<vmem>>, vector<288x8xbf16>
    %cst = arith.constant dense<0.000000e+00> : vector<128x8xf32>
    %2 = tpu.matmul %0, %1, %cst {dimension_numbers = #tpu.dot_dimension_numbers<[1], [0], [0], [1], [0, 0, 1, 1], [], []>} : vector<128x288xbf16>, vector<288x8xbf16>, vector<128x8xf32> -> vector<128x8xf32>
    %c0_3 = arith.constant 0 : index
    %c0_4 = arith.constant 0 : index
    %3 = vector.load %arg3[%c0_3, %c0_4] : memref<128x8xf32, #tpu.memory_space<vmem>>, vector<128x8xf32>
    tpu.vector_store %arg3[%c0_3, %c0_4], %2 {strides = array<i32>} : memref<128x8xf32, #tpu.memory_space<vmem>>, vector<128x8xf32>,
    return
  }
  func.func @transform_0(%arg0: i32) -> (i32, i32) {
    %c0_i32 = arith.constant 0 : i32
    %c0_i32_0 = arith.constant 0 : i32
    return %arg0, %c0_i32 : i32, i32
  }
  func.func @transform_1(%arg0: i32) -> (i32, i32) {
    %c0_i32 = arith.constant 0 : i32
    %c0_i32_0 = arith.constant 0 : i32
    %c0_i32_1 = arith.constant 0 : i32
    return %c0_i32, %c0_i32_0 : i32, i32
  }
  func.func @transform_2(%arg0: i32) -> (i32, i32) {
    %c0_i32 = arith.constant 0 : i32
    %c0_i32_0 = arith.constant 0 : i32
    return %arg0, %c0_i32 : i32, i32
  }
}

module attributes {stable_mosaic.version = 11 : i64} {
  func.func @kernel(%arg0: i32, %arg1: memref<128x32xf32, #tpu.memory_space<vmem>>, %arg2: memref<32x32xbf16, #tpu.memory_space<vmem>>, %arg3: memref<1x32xf32, #tpu.memory_space<vmem>>, %arg4: memref<1x32xf32, #tpu.memory_space<vmem>>, %arg5: memref<1x32xf32, #tpu.memory_space<vmem>>, %arg6: memref<1x32xf32, #tpu.memory_space<vmem>>, %arg7: memref<128x32xbf16, #tpu.memory_space<vmem>>) attributes {dimension_semantics = [#tpu.dimension_semantics<parallel>], iteration_bounds = array<i64: 1>, scalar_prefetch = 0 : i64, scratch_operands = 0 : i64, tpu.core_type = #tpu.core_type<tc>, window_params = [{transform_indices = @transform_0, window_bounds = array<i64: 128, 32>}, {pipeline_mode = #tpu.pipeline_mode<synchronous>, transform_indices = @transform_1, window_bounds = array<i64: 32, 32>}, {pipeline_mode = #tpu.pipeline_mode<synchronous>, transform_indices = @transform_2, window_bounds = array<i64: 1, 32>}, {pipeline_mode = #tpu.pipeline_mode<synchronous>, transform_indices = @transform_3, window_bounds = array<i64: 1, 32>}, {pipeline_mode = #tpu.pipeline_mode<synchronous>, transform_indices = @transform_4, window_bounds = array<i64: 1, 32>}, {pipeline_mode = #tpu.pipeline_mode<synchronous>, transform_indices = @transform_5, window_bounds = array<i64: 1, 32>}, {transform_indices = @transform_6, window_bounds = array<i64: 128, 32>}]} {
    %c0 = arith.constant 0 : index
    %c0_0 = arith.constant 0 : index
    %0 = vector.load %arg1[%c0, %c0_0] : memref<128x32xf32, #tpu.memory_space<vmem>>, vector<128x32xf32>
    %c0_1 = arith.constant 0 : index
    %c0_2 = arith.constant 0 : index
    %1 = vector.load %arg3[%c0_1, %c0_2] : memref<1x32xf32, #tpu.memory_space<vmem>>, vector<1x32xf32>
    %2 = vector.broadcast %1 : vector<1x32xf32> to vector<128x32xf32>
    %3 = arith.mulf %0, %2 : vector<128x32xf32>
    %c0_3 = arith.constant 0 : index
    %c0_4 = arith.constant 0 : index
    %4 = vector.load %arg4[%c0_3, %c0_4] : memref<1x32xf32, #tpu.memory_space<vmem>>, vector<1x32xf32>
    %5 = vector.broadcast %4 : vector<1x32xf32> to vector<128x32xf32>
    %6 = arith.addf %3, %5 : vector<128x32xf32>
    %cst = arith.constant 0.000000e+00 : f32
    %7 = vector.broadcast %cst : f32 to vector<128x32xf32>
    %8 = arith.maximumf %6, %7 : vector<128x32xf32>
    %9 = arith.truncf %8 : vector<128x32xf32> to vector<128x32xbf16>
    %c0_5 = arith.constant 0 : index
    %c0_6 = arith.constant 0 : index
    %10 = vector.load %arg2[%c0_5, %c0_6] : memref<32x32xbf16, #tpu.memory_space<vmem>>, vector<32x32xbf16>
    %cst_7 = arith.constant dense<0.000000e+00> : vector<128x32xf32>
    %11 = tpu.matmul %9, %10, %cst_7 {dimension_numbers = #tpu.dot_dimension_numbers<[1], [0], [0], [1], [0, 0, 1, 1], [], []>} : vector<128x32xbf16>, vector<32x32xbf16>, vector<128x32xf32> -> vector<128x32xf32>
    %c0_8 = arith.constant 0 : index
    %c0_9 = arith.constant 0 : index
    %12 = vector.load %arg5[%c0_8, %c0_9] : memref<1x32xf32, #tpu.memory_space<vmem>>, vector<1x32xf32>
    %13 = vector.broadcast %12 : vector<1x32xf32> to vector<128x32xf32>
    %14 = arith.mulf %11, %13 : vector<128x32xf32>
    %c0_10 = arith.constant 0 : index
    %c0_11 = arith.constant 0 : index
    %15 = vector.load %arg6[%c0_10, %c0_11] : memref<1x32xf32, #tpu.memory_space<vmem>>, vector<1x32xf32>
    %16 = vector.broadcast %15 : vector<1x32xf32> to vector<128x32xf32>
    %17 = arith.addf %14, %16 : vector<128x32xf32>
    %cst_12 = arith.constant 0.000000e+00 : f32
    %18 = vector.broadcast %cst_12 : f32 to vector<128x32xf32>
    %19 = arith.maximumf %17, %18 : vector<128x32xf32>
    %20 = arith.truncf %19 : vector<128x32xf32> to vector<128x32xbf16>
    %c0_13 = arith.constant 0 : index
    %c0_14 = arith.constant 0 : index
    %21 = vector.load %arg7[%c0_13, %c0_14] : memref<128x32xbf16, #tpu.memory_space<vmem>>, vector<128x32xbf16>
    tpu.vector_store %arg7[%c0_13, %c0_14], %20 {strides = array<i32>} : memref<128x32xbf16, #tpu.memory_space<vmem>>, vector<128x32xbf16>,
    return
  }
  func.func @transform_0(%arg0: i32) -> (i32, i32) {
    %c0_i32 = arith.constant 0 : i32
    %c0_i32_0 = arith.constant 0 : i32
    return %arg0, %c0_i32 : i32, i32
  }
  func.func @transform_1(%arg0: i32) -> (i32, i32) {
    %c0_i32 = arith.constant 0 : i32
    %c0_i32_0 = arith.constant 0 : i32
    %c0_i32_1 = arith.constant 0 : i32
    return %c0_i32, %c0_i32_0 : i32, i32
  }
  func.func @transform_2(%arg0: i32) -> (i32, i32) {
    %c0_i32 = arith.constant 0 : i32
    %c0_i32_0 = arith.constant 0 : i32
    %c0_i32_1 = arith.constant 0 : i32
    return %c0_i32, %c0_i32_0 : i32, i32
  }
  func.func @transform_3(%arg0: i32) -> (i32, i32) {
    %c0_i32 = arith.constant 0 : i32
    %c0_i32_0 = arith.constant 0 : i32
    %c0_i32_1 = arith.constant 0 : i32
    return %c0_i32, %c0_i32_0 : i32, i32
  }
  func.func @transform_4(%arg0: i32) -> (i32, i32) {
    %c0_i32 = arith.constant 0 : i32
    %c0_i32_0 = arith.constant 0 : i32
    %c0_i32_1 = arith.constant 0 : i32
    return %c0_i32, %c0_i32_0 : i32, i32
  }
  func.func @transform_5(%arg0: i32) -> (i32, i32) {
    %c0_i32 = arith.constant 0 : i32
    %c0_i32_0 = arith.constant 0 : i32
    %c0_i32_1 = arith.constant 0 : i32
    return %c0_i32, %c0_i32_0 : i32, i32
  }
  func.func @transform_6(%arg0: i32) -> (i32, i32) {
    %c0_i32 = arith.constant 0 : i32
    %c0_i32_0 = arith.constant 0 : i32
    return %arg0, %c0_i32 : i32, i32
  }
}

module attributes {stable_mosaic.version = 11 : i64} {
  func.func @kernel(%arg0: i32, %arg1: memref<128x40xf32, #tpu.memory_space<vmem>>, %arg2: memref<40x20xbf16, #tpu.memory_space<vmem>>, %arg3: memref<1x40xf32, #tpu.memory_space<vmem>>, %arg4: memref<1x40xf32, #tpu.memory_space<vmem>>, %arg5: memref<128x20xf32, #tpu.memory_space<vmem>>) attributes {dimension_semantics = [#tpu.dimension_semantics<parallel>], iteration_bounds = array<i64: 1>, scalar_prefetch = 0 : i64, scratch_operands = 0 : i64, tpu.core_type = #tpu.core_type<tc>, window_params = [{transform_indices = @transform_0, window_bounds = array<i64: 128, 40>}, {pipeline_mode = #tpu.pipeline_mode<synchronous>, transform_indices = @transform_1, window_bounds = array<i64: 40, 20>}, {pipeline_mode = #tpu.pipeline_mode<synchronous>, transform_indices = @transform_2, window_bounds = array<i64: 1, 40>}, {pipeline_mode = #tpu.pipeline_mode<synchronous>, transform_indices = @transform_3, window_bounds = array<i64: 1, 40>}, {transform_indices = @transform_4, window_bounds = array<i64: 128, 20>}]} {
    %c0 = arith.constant 0 : index
    %c0_0 = arith.constant 0 : index
    %0 = vector.load %arg1[%c0, %c0_0] : memref<128x40xf32, #tpu.memory_space<vmem>>, vector<128x40xf32>
    %c0_1 = arith.constant 0 : index
    %c0_2 = arith.constant 0 : index
    %1 = vector.load %arg3[%c0_1, %c0_2] : memref<1x40xf32, #tpu.memory_space<vmem>>, vector<1x40xf32>
    %2 = vector.broadcast %1 : vector<1x40xf32> to vector<128x40xf32>
    %3 = arith.mulf %0, %2 : vector<128x40xf32>
    %c0_3 = arith.constant 0 : index
    %c0_4 = arith.constant 0 : index
    %4 = vector.load %arg4[%c0_3, %c0_4] : memref<1x40xf32, #tpu.memory_space<vmem>>, vector<1x40xf32>
    %5 = vector.broadcast %4 : vector<1x40xf32> to vector<128x40xf32>
    %6 = arith.addf %3, %5 : vector<128x40xf32>
    %cst = arith.constant 0.000000e+00 : f32
    %7 = vector.broadcast %cst : f32 to vector<128x40xf32>
    %8 = arith.maximumf %6, %7 : vector<128x40xf32>
    %9 = arith.truncf %8 : vector<128x40xf32> to vector<128x40xbf16>
    %c0_5 = arith.constant 0 : index
    %c0_6 = arith.constant 0 : index
    %10 = vector.load %arg2[%c0_5, %c0_6] : memref<40x20xbf16, #tpu.memory_space<vmem>>, vector<40x20xbf16>
    %cst_7 = arith.constant dense<0.000000e+00> : vector<128x20xf32>
    %11 = tpu.matmul %9, %10, %cst_7 {dimension_numbers = #tpu.dot_dimension_numbers<[1], [0], [0], [1], [0, 0, 1, 1], [], []>} : vector<128x40xbf16>, vector<40x20xbf16>, vector<128x20xf32> -> vector<128x20xf32>
    %c0_8 = arith.constant 0 : index
    %c0_9 = arith.constant 0 : index
    %12 = vector.load %arg5[%c0_8, %c0_9] : memref<128x20xf32, #tpu.memory_space<vmem>>, vector<128x20xf32>
    tpu.vector_store %arg5[%c0_8, %c0_9], %11 {strides = array<i32>} : memref<128x20xf32, #tpu.memory_space<vmem>>, vector<128x20xf32>,
    return
  }
  func.func @transform_0(%arg0: i32) -> (i32, i32) {
    %c0_i32 = arith.constant 0 : i32
    %c0_i32_0 = arith.constant 0 : i32
    return %arg0, %c0_i32 : i32, i32
  }
  func.func @transform_1(%arg0: i32) -> (i32, i32) {
    %c0_i32 = arith.constant 0 : i32
    %c0_i32_0 = arith.constant 0 : i32
    %c0_i32_1 = arith.constant 0 : i32
    return %c0_i32, %c0_i32_0 : i32, i32
  }
  func.func @transform_2(%arg0: i32) -> (i32, i32) {
    %c0_i32 = arith.constant 0 : i32
    %c0_i32_0 = arith.constant 0 : i32
    %c0_i32_1 = arith.constant 0 : i32
    return %c0_i32, %c0_i32_0 : i32, i32
  }
  func.func @transform_3(%arg0: i32) -> (i32, i32) {
    %c0_i32 = arith.constant 0 : i32
    %c0_i32_0 = arith.constant 0 : i32
    %c0_i32_1 = arith.constant 0 : i32
    return %c0_i32, %c0_i32_0 : i32, i32
  }
  func.func @transform_4(%arg0: i32) -> (i32, i32) {
    %c0_i32 = arith.constant 0 : i32
    %c0_i32_0 = arith.constant 0 : i32
    return %arg0, %c0_i32 : i32, i32
  }
}

module attributes {stable_mosaic.version = 11 : i64} {
  func.func @kernel(%arg0: i32, %arg1: memref<32x20xf32, #tpu.memory_space<vmem>>, %arg2: memref<20x32xbf16, #tpu.memory_space<vmem>>, %arg3: memref<1x20xf32, #tpu.memory_space<vmem>>, %arg4: memref<1x20xf32, #tpu.memory_space<vmem>>, %arg5: memref<1x32xf32, #tpu.memory_space<vmem>>, %arg6: memref<1x32xf32, #tpu.memory_space<vmem>>, %arg7: memref<32x32xbf16, #tpu.memory_space<vmem>>) attributes {dimension_semantics = [#tpu.dimension_semantics<parallel>], iteration_bounds = array<i64: 1>, scalar_prefetch = 0 : i64, scratch_operands = 0 : i64, tpu.core_type = #tpu.core_type<tc>, window_params = [{transform_indices = @transform_0, window_bounds = array<i64: 32, 20>}, {pipeline_mode = #tpu.pipeline_mode<synchronous>, transform_indices = @transform_1, window_bounds = array<i64: 20, 32>}, {pipeline_mode = #tpu.pipeline_mode<synchronous>, transform_indices = @transform_2, window_bounds = array<i64: 1, 20>}, {pipeline_mode = #tpu.pipeline_mode<synchronous>, transform_indices = @transform_3, window_bounds = array<i64: 1, 20>}, {pipeline_mode = #tpu.pipeline_mode<synchronous>, transform_indices = @transform_4, window_bounds = array<i64: 1, 32>}, {pipeline_mode = #tpu.pipeline_mode<synchronous>, transform_indices = @transform_5, window_bounds = array<i64: 1, 32>}, {transform_indices = @transform_6, window_bounds = array<i64: 32, 32>}]} {
    %c0 = arith.constant 0 : index
    %c0_0 = arith.constant 0 : index
    %0 = vector.load %arg1[%c0, %c0_0] : memref<32x20xf32, #tpu.memory_space<vmem>>, vector<32x20xf32>
    %c0_1 = arith.constant 0 : index
    %c0_2 = arith.constant 0 : index
    %1 = vector.load %arg3[%c0_1, %c0_2] : memref<1x20xf32, #tpu.memory_space<vmem>>, vector<1x20xf32>
    %2 = vector.broadcast %1 : vector<1x20xf32> to vector<32x20xf32>
    %3 = arith.mulf %0, %2 : vector<32x20xf32>
    %c0_3 = arith.constant 0 : index
    %c0_4 = arith.constant 0 : index
    %4 = vector.load %arg4[%c0_3, %c0_4] : memref<1x20xf32, #tpu.memory_space<vmem>>, vector<1x20xf32>
    %5 = vector.broadcast %4 : vector<1x20xf32> to vector<32x20xf32>
    %6 = arith.addf %3, %5 : vector<32x20xf32>
    %cst = arith.constant 0.000000e+00 : f32
    %7 = vector.broadcast %cst : f32 to vector<32x20xf32>
    %8 = arith.maximumf %6, %7 : vector<32x20xf32>
    %9 = arith.truncf %8 : vector<32x20xf32> to vector<32x20xbf16>
    %c0_5 = arith.constant 0 : index
    %c0_6 = arith.constant 0 : index
    %10 = vector.load %arg2[%c0_5, %c0_6] : memref<20x32xbf16, #tpu.memory_space<vmem>>, vector<20x32xbf16>
    %cst_7 = arith.constant dense<0.000000e+00> : vector<32x32xf32>
    %11 = tpu.matmul %9, %10, %cst_7 {dimension_numbers = #tpu.dot_dimension_numbers<[1], [0], [0], [1], [0, 0, 1, 1], [], []>} : vector<32x20xbf16>, vector<20x32xbf16>, vector<32x32xf32> -> vector<32x32xf32>
    %c0_8 = arith.constant 0 : index
    %c0_9 = arith.constant 0 : index
    %12 = vector.load %arg5[%c0_8, %c0_9] : memref<1x32xf32, #tpu.memory_space<vmem>>, vector<1x32xf32>
    %13 = vector.broadcast %12 : vector<1x32xf32> to vector<32x32xf32>
    %14 = arith.mulf %11, %13 : vector<32x32xf32>
    %c0_10 = arith.constant 0 : index
    %c0_11 = arith.constant 0 : index
    %15 = vector.load %arg6[%c0_10, %c0_11] : memref<1x32xf32, #tpu.memory_space<vmem>>, vector<1x32xf32>
    %16 = vector.broadcast %15 : vector<1x32xf32> to vector<32x32xf32>
    %17 = arith.addf %14, %16 : vector<32x32xf32>
    %cst_12 = arith.constant 0.000000e+00 : f32
    %18 = vector.broadcast %cst_12 : f32 to vector<32x32xf32>
    %19 = arith.maximumf %17, %18 : vector<32x32xf32>
    %20 = arith.truncf %19 : vector<32x32xf32> to vector<32x32xbf16>
    %c0_13 = arith.constant 0 : index
    %c0_14 = arith.constant 0 : index
    %21 = vector.load %arg7[%c0_13, %c0_14] : memref<32x32xbf16, #tpu.memory_space<vmem>>, vector<32x32xbf16>
    tpu.vector_store %arg7[%c0_13, %c0_14], %20 {strides = array<i32>} : memref<32x32xbf16, #tpu.memory_space<vmem>>, vector<32x32xbf16>,
    return
  }
  func.func @transform_0(%arg0: i32) -> (i32, i32) {
    %c0_i32 = arith.constant 0 : i32
    %c0_i32_0 = arith.constant 0 : i32
    return %arg0, %c0_i32 : i32, i32
  }
  func.func @transform_1(%arg0: i32) -> (i32, i32) {
    %c0_i32 = arith.constant 0 : i32
    %c0_i32_0 = arith.constant 0 : i32
    %c0_i32_1 = arith.constant 0 : i32
    return %c0_i32, %c0_i32_0 : i32, i32
  }
  func.func @transform_2(%arg0: i32) -> (i32, i32) {
    %c0_i32 = arith.constant 0 : i32
    %c0_i32_0 = arith.constant 0 : i32
    %c0_i32_1 = arith.constant 0 : i32
    return %c0_i32, %c0_i32_0 : i32, i32
  }
  func.func @transform_3(%arg0: i32) -> (i32, i32) {
    %c0_i32 = arith.constant 0 : i32
    %c0_i32_0 = arith.constant 0 : i32
    %c0_i32_1 = arith.constant 0 : i32
    return %c0_i32, %c0_i32_0 : i32, i32
  }
  func.func @transform_4(%arg0: i32) -> (i32, i32) {
    %c0_i32 = arith.constant 0 : i32
    %c0_i32_0 = arith.constant 0 : i32
    %c0_i32_1 = arith.constant 0 : i32
    return %c0_i32, %c0_i32_0 : i32, i32
  }
  func.func @transform_5(%arg0: i32) -> (i32, i32) {
    %c0_i32 = arith.constant 0 : i32
    %c0_i32_0 = arith.constant 0 : i32
    %c0_i32_1 = arith.constant 0 : i32
    return %c0_i32, %c0_i32_0 : i32, i32
  }
  func.func @transform_6(%arg0: i32) -> (i32, i32) {
    %c0_i32 = arith.constant 0 : i32
    %c0_i32_0 = arith.constant 0 : i32
    return %arg0, %c0_i32 : i32, i32
  }
}

module attributes {stable_mosaic.version = 11 : i64} {
  func.func @kernel(%arg0: i32, %arg1: memref<32x288xbf16, #tpu.memory_space<vmem>>, %arg2: memref<288x8xbf16, #tpu.memory_space<vmem>>, %arg3: memref<32x8xf32, #tpu.memory_space<vmem>>) attributes {dimension_semantics = [#tpu.dimension_semantics<parallel>], iteration_bounds = array<i64: 1>, scalar_prefetch = 0 : i64, scratch_operands = 0 : i64, tpu.core_type = #tpu.core_type<tc>, window_params = [{transform_indices = @transform_0, window_bounds = array<i64: 32, 288>}, {pipeline_mode = #tpu.pipeline_mode<synchronous>, transform_indices = @transform_1, window_bounds = array<i64: 288, 8>}, {transform_indices = @transform_2, window_bounds = array<i64: 32, 8>}]} {
    %c0 = arith.constant 0 : index
    %c0_0 = arith.constant 0 : index
    %0 = vector.load %arg1[%c0, %c0_0] : memref<32x288xbf16, #tpu.memory_space<vmem>>, vector<32x288xbf16>
    %c0_1 = arith.constant 0 : index
    %c0_2 = arith.constant 0 : index
    %1 = vector.load %arg2[%c0_1, %c0_2] : memref<288x8xbf16, #tpu.memory_space<vmem>>, vector<288x8xbf16>
    %cst = arith.constant dense<0.000000e+00> : vector<32x8xf32>
    %2 = tpu.matmul %0, %1, %cst {dimension_numbers = #tpu.dot_dimension_numbers<[1], [0], [0], [1], [0, 0, 1, 1], [], []>} : vector<32x288xbf16>, vector<288x8xbf16>, vector<32x8xf32> -> vector<32x8xf32>
    %c0_3 = arith.constant 0 : index
    %c0_4 = arith.constant 0 : index
    %3 = vector.load %arg3[%c0_3, %c0_4] : memref<32x8xf32, #tpu.memory_space<vmem>>, vector<32x8xf32>
    tpu.vector_store %arg3[%c0_3, %c0_4], %2 {strides = array<i32>} : memref<32x8xf32, #tpu.memory_space<vmem>>, vector<32x8xf32>,
    return
  }
  func.func @transform_0(%arg0: i32) -> (i32, i32) {
    %c0_i32 = arith.constant 0 : i32
    %c0_i32_0 = arith.constant 0 : i32
    return %arg0, %c0_i32 : i32, i32
  }
  func.func @transform_1(%arg0: i32) -> (i32, i32) {
    %c0_i32 = arith.constant 0 : i32
    %c0_i32_0 = arith.constant 0 : i32
    %c0_i32_1 = arith.constant 0 : i32
    return %c0_i32, %c0_i32_0 : i32, i32
  }
  func.func @transform_2(%arg0: i32) -> (i32, i32) {
    %c0_i32 = arith.constant 0 : i32
    %c0_i32_0 = arith.constant 0 : i32
    return %arg0, %c0_i32 : i32, i32
  }
}

module attributes {stable_mosaic.version = 11 : i64} {
  func.func @kernel(%arg0: i32, %arg1: memref<32x28xf32, #tpu.memory_space<vmem>>, %arg2: memref<28x32xbf16, #tpu.memory_space<vmem>>, %arg3: memref<1x28xf32, #tpu.memory_space<vmem>>, %arg4: memref<1x28xf32, #tpu.memory_space<vmem>>, %arg5: memref<1x32xf32, #tpu.memory_space<vmem>>, %arg6: memref<1x32xf32, #tpu.memory_space<vmem>>, %arg7: memref<32x32xbf16, #tpu.memory_space<vmem>>) attributes {dimension_semantics = [#tpu.dimension_semantics<parallel>], iteration_bounds = array<i64: 1>, scalar_prefetch = 0 : i64, scratch_operands = 0 : i64, tpu.core_type = #tpu.core_type<tc>, window_params = [{transform_indices = @transform_0, window_bounds = array<i64: 32, 28>}, {pipeline_mode = #tpu.pipeline_mode<synchronous>, transform_indices = @transform_1, window_bounds = array<i64: 28, 32>}, {pipeline_mode = #tpu.pipeline_mode<synchronous>, transform_indices = @transform_2, window_bounds = array<i64: 1, 28>}, {pipeline_mode = #tpu.pipeline_mode<synchronous>, transform_indices = @transform_3, window_bounds = array<i64: 1, 28>}, {pipeline_mode = #tpu.pipeline_mode<synchronous>, transform_indices = @transform_4, window_bounds = array<i64: 1, 32>}, {pipeline_mode = #tpu.pipeline_mode<synchronous>, transform_indices = @transform_5, window_bounds = array<i64: 1, 32>}, {transform_indices = @transform_6, window_bounds = array<i64: 32, 32>}]} {
    %c0 = arith.constant 0 : index
    %c0_0 = arith.constant 0 : index
    %0 = vector.load %arg1[%c0, %c0_0] : memref<32x28xf32, #tpu.memory_space<vmem>>, vector<32x28xf32>
    %c0_1 = arith.constant 0 : index
    %c0_2 = arith.constant 0 : index
    %1 = vector.load %arg3[%c0_1, %c0_2] : memref<1x28xf32, #tpu.memory_space<vmem>>, vector<1x28xf32>
    %2 = vector.broadcast %1 : vector<1x28xf32> to vector<32x28xf32>
    %3 = arith.mulf %0, %2 : vector<32x28xf32>
    %c0_3 = arith.constant 0 : index
    %c0_4 = arith.constant 0 : index
    %4 = vector.load %arg4[%c0_3, %c0_4] : memref<1x28xf32, #tpu.memory_space<vmem>>, vector<1x28xf32>
    %5 = vector.broadcast %4 : vector<1x28xf32> to vector<32x28xf32>
    %6 = arith.addf %3, %5 : vector<32x28xf32>
    %cst = arith.constant 0.000000e+00 : f32
    %7 = vector.broadcast %cst : f32 to vector<32x28xf32>
    %8 = arith.maximumf %6, %7 : vector<32x28xf32>
    %9 = arith.truncf %8 : vector<32x28xf32> to vector<32x28xbf16>
    %c0_5 = arith.constant 0 : index
    %c0_6 = arith.constant 0 : index
    %10 = vector.load %arg2[%c0_5, %c0_6] : memref<28x32xbf16, #tpu.memory_space<vmem>>, vector<28x32xbf16>
    %cst_7 = arith.constant dense<0.000000e+00> : vector<32x32xf32>
    %11 = tpu.matmul %9, %10, %cst_7 {dimension_numbers = #tpu.dot_dimension_numbers<[1], [0], [0], [1], [0, 0, 1, 1], [], []>} : vector<32x28xbf16>, vector<28x32xbf16>, vector<32x32xf32> -> vector<32x32xf32>
    %c0_8 = arith.constant 0 : index
    %c0_9 = arith.constant 0 : index
    %12 = vector.load %arg5[%c0_8, %c0_9] : memref<1x32xf32, #tpu.memory_space<vmem>>, vector<1x32xf32>
    %13 = vector.broadcast %12 : vector<1x32xf32> to vector<32x32xf32>
    %14 = arith.mulf %11, %13 : vector<32x32xf32>
    %c0_10 = arith.constant 0 : index
    %c0_11 = arith.constant 0 : index
    %15 = vector.load %arg6[%c0_10, %c0_11] : memref<1x32xf32, #tpu.memory_space<vmem>>, vector<1x32xf32>
    %16 = vector.broadcast %15 : vector<1x32xf32> to vector<32x32xf32>
    %17 = arith.addf %14, %16 : vector<32x32xf32>
    %cst_12 = arith.constant 0.000000e+00 : f32
    %18 = vector.broadcast %cst_12 : f32 to vector<32x32xf32>
    %19 = arith.maximumf %17, %18 : vector<32x32xf32>
    %20 = arith.truncf %19 : vector<32x32xf32> to vector<32x32xbf16>
    %c0_13 = arith.constant 0 : index
    %c0_14 = arith.constant 0 : index
    %21 = vector.load %arg7[%c0_13, %c0_14] : memref<32x32xbf16, #tpu.memory_space<vmem>>, vector<32x32xbf16>
    tpu.vector_store %arg7[%c0_13, %c0_14], %20 {strides = array<i32>} : memref<32x32xbf16, #tpu.memory_space<vmem>>, vector<32x32xbf16>,
    return
  }
  func.func @transform_0(%arg0: i32) -> (i32, i32) {
    %c0_i32 = arith.constant 0 : i32
    %c0_i32_0 = arith.constant 0 : i32
    return %arg0, %c0_i32 : i32, i32
  }
  func.func @transform_1(%arg0: i32) -> (i32, i32) {
    %c0_i32 = arith.constant 0 : i32
    %c0_i32_0 = arith.constant 0 : i32
    %c0_i32_1 = arith.constant 0 : i32
    return %c0_i32, %c0_i32_0 : i32, i32
  }
  func.func @transform_2(%arg0: i32) -> (i32, i32) {
    %c0_i32 = arith.constant 0 : i32
    %c0_i32_0 = arith.constant 0 : i32
    %c0_i32_1 = arith.constant 0 : i32
    return %c0_i32, %c0_i32_0 : i32, i32
  }
  func.func @transform_3(%arg0: i32) -> (i32, i32) {
    %c0_i32 = arith.constant 0 : i32
    %c0_i32_0 = arith.constant 0 : i32
    %c0_i32_1 = arith.constant 0 : i32
    return %c0_i32, %c0_i32_0 : i32, i32
  }
  func.func @transform_4(%arg0: i32) -> (i32, i32) {
    %c0_i32 = arith.constant 0 : i32
    %c0_i32_0 = arith.constant 0 : i32
    %c0_i32_1 = arith.constant 0 : i32
    return %c0_i32, %c0_i32_0 : i32, i32
  }
  func.func @transform_5(%arg0: i32) -> (i32, i32) {
    %c0_i32 = arith.constant 0 : i32
    %c0_i32_0 = arith.constant 0 : i32
    %c0_i32_1 = arith.constant 0 : i32
    return %c0_i32, %c0_i32_0 : i32, i32
  }
  func.func @transform_6(%arg0: i32) -> (i32, i32) {
    %c0_i32 = arith.constant 0 : i32
    %c0_i32_0 = arith.constant 0 : i32
    return %arg0, %c0_i32 : i32, i32
  }
}

module attributes {stable_mosaic.version = 11 : i64} {
  func.func @_tail_kernel(%arg0: memref<2x16x36xf32, #tpu.memory_space<vmem>>, %arg1: memref<1x1x36xf32, #tpu.memory_space<vmem>>, %arg2: memref<1x1x36xf32, #tpu.memory_space<vmem>>, %arg3: memref<36x16xf32, #tpu.memory_space<vmem>>, %arg4: memref<2x16xf32, #tpu.memory_space<vmem>>) attributes {dimension_semantics = [], scalar_prefetch = 0 : i64, scratch_operands = 0 : i64, tpu.core_type = #tpu.core_type<tc>} {
    %c0 = arith.constant 0 : index
    %c0_0 = arith.constant 0 : index
    %c0_1 = arith.constant 0 : index
    %0 = vector.load %arg0[%c0, %c0_0, %c0_1] : memref<2x16x36xf32, #tpu.memory_space<vmem>>, vector<2x16x36xf32>
    %c0_2 = arith.constant 0 : index
    %c0_3 = arith.constant 0 : index
    %c0_4 = arith.constant 0 : index
    %1 = vector.load %arg1[%c0_2, %c0_3, %c0_4] : memref<1x1x36xf32, #tpu.memory_space<vmem>>, vector<1x1x36xf32>
    %2 = vector.broadcast %1 : vector<1x1x36xf32> to vector<2x16x36xf32>
    %3 = arith.mulf %0, %2 : vector<2x16x36xf32>
    %c0_5 = arith.constant 0 : index
    %c0_6 = arith.constant 0 : index
    %c0_7 = arith.constant 0 : index
    %4 = vector.load %arg2[%c0_5, %c0_6, %c0_7] : memref<1x1x36xf32, #tpu.memory_space<vmem>>, vector<1x1x36xf32>
    %5 = vector.broadcast %4 : vector<1x1x36xf32> to vector<2x16x36xf32>
    %6 = arith.addf %3, %5 : vector<2x16x36xf32>
    %cst = arith.constant 0.000000e+00 : f32
    %7 = vector.broadcast %cst : f32 to vector<2x16x36xf32>
    %8 = arith.maximumf %6, %7 : vector<2x16x36xf32>
    %cst_8 = arith.constant dense<0.000000e+00> : vector<2x36xf32>
    %9 = vector.multi_reduction <add>, %8, %cst_8 [1] : vector<2x16x36xf32> to vector<2x36xf32>
    %cst_9 = arith.constant 1.600000e+01 : f32
    %10 = vector.broadcast %cst_9 : f32 to vector<2x36xf32>
    %11 = arith.divf %9, %10 : vector<2x36xf32>
    %c0_10 = arith.constant 0 : index
    %c0_11 = arith.constant 0 : index
    %12 = vector.load %arg3[%c0_10, %c0_11] : memref<36x16xf32, #tpu.memory_space<vmem>>, vector<36x16xf32>
    %cst_12 = arith.constant dense<0.000000e+00> : vector<2x16xf32>
    %13 = tpu.matmul %11, %12, %cst_12 {dimension_numbers = #tpu.dot_dimension_numbers<[1], [0], [0], [1], [0, 0, 1, 1], [], []>} : vector<2x36xf32>, vector<36x16xf32>, vector<2x16xf32> -> vector<2x16xf32>
    %c0_13 = arith.constant 0 : index
    %c0_14 = arith.constant 0 : index
    %14 = vector.load %arg4[%c0_13, %c0_14] : memref<2x16xf32, #tpu.memory_space<vmem>>, vector<2x16xf32>
    tpu.vector_store %arg4[%c0_13, %c0_14], %13 {strides = array<i32>} : memref<2x16xf32, #tpu.memory_space<vmem>>, vector<2x16xf32>,
    return
  }
}

</mosaic_0001>

<bundles_post_ra>
// kernel: convnet_forward.12
= control target key start
LH: loop header
LB: loop body
LE: loop exit
PB: predicated region body
PF: predicated region fallthrough
CT: control target
= control target key end

     0   :  { %vm147_vm0 = vcmask 1043456   ;;  %vm122_vm1 = vcmask 195584   ;;  %vm374_vm2 = vcmask 257024   ;;  %s727_s1 = inlined_call_operand.vmem [shape: bf16[24,32], index: 1, kind: input, shape index: {}]   ;;  %s728_s0 = inlined_call_operand.vmem [shape: f32[128,24], index: 0, kind: input, shape index: {}]   ;;  %s729_s2 = inlined_call_operand.vmem [shape: f32[1,24], index: 2, kind: input, shape index: {}]   ;;  %s730_s3 = inlined_call_operand.vmem [shape: f32[1,24], index: 3, kind: input, shape index: {}]   ;;  %s731_s4 = inlined_call_operand.vmem [shape: f32[1,32], index: 4, kind: input, shape index: {}]   ;;  %s732_s5 = inlined_call_operand.vmem [shape: f32[1,32], index: 5, kind: input, shape index: {}]   ;;  %s733_s6 = inlined_call_operand.vmem [shape: bf16[128,32], index: 6, kind: output, shape index: {}]  }
   0x1   :  { %v477_v0 = vld [vmem:[%s727_s1] sm:$0xff]   ;;  %v478_v1 = vld [vmem:[%s727_s1 + $0x8] ss:$0 sps:$4 sm:$0xff]   ;;  %v26_v10 = vld [vmem:[%s728_s0 + $0x10] sm:$0xff] }
   0x2   :  { %v24_v2 = vld [vmem:[%s728_s0] sm:$0xff]  ;;  %451 = vmatprep.subr.bf16.mxu0 %v477_v0  ;;  %471 = vmatprep.subr.bf16.mxu1 %v477_v0  ;;  %v25_v3 = vld [vmem:[%s728_s0 + $0x8] sm:$0xff]  ;;  %v149_v11 = vsel %vm147_vm0, %v478_v1, 0  ;;  %v27_v14 = vld [vmem:[%s728_s0 + $0x18] sm:$0xff] }
   0x3   :  { %v529_v4 = vld [vmem:[%s729_s2] ss:$0 sm:$0xff]  ;;  %452 = vmatpush3.bf16.msra.mxu0 %v477_v0  ;;  %473 = vmatpush3.bf16.msra.mxu1 %v477_v0  ;;  %v33_v9 = vld [vmem:[%s728_s0 + $0x48] sm:$0xff]  ;;  %v34_v16 = vld [vmem:[%s728_s0 + $0x50] sm:$0xff] }
   0x4   :  { %v534_v5 = vld [vmem:[%s730_s3] ss:$0 sm:$0xff]  ;;  %v47_v6 = vmul.f32 %v529_v4, %v24_v2  ;;  %v48_v7 = vmul.f32 %v529_v4, %v25_v3  ;;  %475 = vmatprep.subr.msk.bf16.mxu0 %vm147_vm0, %v478_v1  ;;  %476 = vmatprep.subr.msk.bf16.mxu1 %vm147_vm0, %v478_v1  ;;  %v56_v13 = vmul.f32 %v529_v4, %v33_v9  ;;  %v35_v17 = vld [vmem:[%s728_s0 + $0x58] sm:$0xff]  ;;  %v29_v31 = vld [vmem:[%s728_s0 + $0x28] sm:$0xff] }
   0x5   :  { %v32_v8 = vld [vmem:[%s728_s0 + $0x40] sm:$0xff]  ;;  %v49_v15 = vmul.f32 %v529_v4, %v26_v10  ;;  %v50_v20 = vmul.f32 %v529_v4, %v27_v14  ;;  %v57_v21 = vmul.f32 %v529_v4, %v34_v16  ;;  %v58_v25 = vmul.f32 %v529_v4, %v35_v17  ;;  %v37_v37 = vld [vmem:[%s728_s0 + $0x68] sm:$0xff]  ;;  %v30_v38 = vld [vmem:[%s728_s0 + $0x30] sm:$0xff] }
   0x6   :  { %v55_v12 = vmul.f32 %v529_v4, %v32_v8  ;;  %v70_v18 = vadd.f32 %v534_v5, %v47_v6  ;;  %v71_v19 = vadd.f32 %v534_v5, %v48_v7  ;;  %v79_v23 = vadd.f32 %v534_v5, %v56_v13  ;;  %v28_v26 = vld [vmem:[%s728_s0 + $0x20] sm:$0xff]  ;;  %v31_v43 = vld [vmem:[%s728_s0 + $0x38] sm:$0xff]  ;;  %v38_v48 = vld [vmem:[%s728_s0 + $0x70] sm:$0xff] }
   0x7   :  { %v72_v24 = vadd.f32 %v534_v5, %v49_v15  ;;  %454 = vmatpush3.bf16.msra.mxu0 %v149_v11  ;;  %474 = vmatpush3.bf16.msra.mxu1 %v149_v11  ;;  %v73_v29 = vadd.f32 %v534_v5, %v50_v20  ;;  %v80_v30 = vadd.f32 %v534_v5, %v57_v21  ;;  %v36_v32 = vld [vmem:[%s728_s0 + $0x60] sm:$0xff]  ;;  %v39_v53 = vld [vmem:[%s728_s0 + $0x78] sm:$0xff] }
   0x8   :  { %v78_v22 = vadd.f32 %v534_v5, %v55_v12  ;;  %v86_v27 = vmax.f32 %v70_v18, 0.0  ;;  %v87_v28 = vmax.f32 %v71_v19, 0.0  ;;  %v95_v34 = vmax.f32 %v79_v23, 0.0 }
   0x9   :  { %v88_v35 = vmax.f32 %v72_v24, 0.0  ;;  %v81_v36 = vadd.f32 %v534_v5, %v58_v25  ;;  %v89_v40 = vmax.f32 %v73_v29, 0.0  ;;  %v96_v41 = vmax.f32 %v80_v30, 0.0 }
   0xa   :  { %v94_v33 = vmax.f32 %v78_v22, 0.0  ;;  %v102_v39 = vpack.c.bf16 %v87_v28, %v86_v27  ;;  %v51_v42 = vmul.f32 %v529_v4, %v28_v26  ;;  %v52_v46 = vmul.f32 %v529_v4, %v29_v31 }
   0xb   :  { %v97_v45 = vmax.f32 %v81_v36, 0.0  ;;  %v59_v47 = vmul.f32 %v529_v4, %v36_v32  ;;  %v103_v49 = vpack.c.bf16 %v89_v40, %v88_v35  ;;  %v60_v51 = vmul.f32 %v529_v4, %v37_v37 }
   0xc   :  { %v106_v44 = vpack.c.bf16 %v95_v34, %v94_v33  ;;  %455 = vmatprep.mubr.msk.bf16.mxu0 %vm122_vm1, %v102_v39  ;;  %v74_v50 = vadd.f32 %v534_v5, %v51_v42  ;;  %v53_v52 = vmul.f32 %v529_v4, %v30_v38  ;;  %v75_v55 = vadd.f32 %v534_v5, %v52_v46 }
   0xd   :  { %v107_v54 = vpack.c.bf16 %v97_v45, %v96_v41  ;;  %v82_v56 = vadd.f32 %v534_v5, %v59_v47  ;;  %v54_v57 = vmul.f32 %v529_v4, %v31_v43  ;;  %456 = vmatmul.mubr.msk.bf16.vlgmr.msra.gmra.mrb[0].mxu0 %vm122_vm1, %v103_v49  ;;  %v83_v59 = vadd.f32 %v534_v5, %v60_v51 }
   0xe   :  { %463 = vmatprep.mubr.msk.bf16.mxu1 %vm122_vm1, %v106_v44  ;;  %v90_v58 = vmax.f32 %v74_v50, 0.0  ;;  %v76_v60 = vadd.f32 %v534_v5, %v53_v52  ;;  %v61_v61 = vmul.f32 %v529_v4, %v38_v48  ;;  %v91_v62 = vmax.f32 %v75_v55, 0.0 }
   0xf   :  { %464 = vmatmul.mubr.msk.bf16.vlgmr.msra.gmra.mrb[0].mxu1 %vm122_vm1, %v107_v54  ;;  %v98_v63 = vmax.f32 %v82_v56, 0.0  ;;  %v77_v0 = vadd.f32 %v534_v5, %v54_v57  ;;  %v62_v1 = vmul.f32 %v529_v4, %v39_v53  ;;  %v99_v2 = vmax.f32 %v83_v59, 0.0  ;;  %v624_v4 = vld [vmem:[%s731_s4] ss:$0 sm:$0xff] }
  0x10   :  { %v92_v3 = vmax.f32 %v76_v60, 0.0  ;;  %v84_v6 = vadd.f32 %v534_v5, %v61_v61  ;;  %v104_v7 = vpack.c.bf16 %v91_v62, %v90_v58 }
  0x11   :  { %v93_v8 = vmax.f32 %v77_v0, 0.0  ;;  %v85_v9 = vadd.f32 %v534_v5, %v62_v1  ;;  %v108_v10 = vpack.c.bf16 %v99_v2, %v98_v63  ;;  %v629_v5 = vld [vmem:[%s732_s5] ss:$0 sm:$0xff] }
  0x12   :  { %v100_v11 = vmax.f32 %v84_v6, 0.0  ;;  %459 = vmatprep.mubr.msk.bf16.mxu0 %vm122_vm1, %v104_v7 }
  0x13   :  { %v105_v12 = vpack.c.bf16 %v93_v8, %v92_v3  ;;  %v101_v13 = vmax.f32 %v85_v9, 0.0  ;;  %467 = vmatprep.mubr.msk.bf16.mxu1 %vm122_vm1, %v108_v10 }
  0x15   :  { %v109_v14 = vpack.c.bf16 %v101_v13, %v100_v11  ;;  %460 = vmatmul.mubr.msk.bf16.gmra.mrb[4].mxu0 %vm122_vm1, %v105_v12 }
  0x17   :  { %468 = vmatmul.mubr.msk.bf16.gmra.mrb[4].mxu1 %vm122_vm1, %v109_v14 }
  0xe0   :  { %v457_v15 = vpop.f32.mrb[0].mxu0 }
  0xe1   :  { %v257_v16 = vmul.f32 %v457_v15, %v624_v4  ;;  %v185_v18 = vpop.f32.mrb[1].mxu0 }
  0xe2   :  { %v465_v17 = vpop.f32.mrb[0].mxu1  ;;  %v255_v20 = vmul.f32 %v624_v4, %v185_v18  ;;  %v458_v22 = vpop.f32.mrb[2].mxu0 }
  0xe3   :  { %v265_v19 = vmul.f32 %v465_v17, %v624_v4  ;;  %v217_v21 = vpop.f32.mrb[1].mxu1  ;;  %v280_v23 = vadd.f32 %v629_v5, %v257_v16  ;;  %v258_v25 = vmul.f32 %v458_v22, %v624_v4  ;;  %v188_v27 = vpop.f32.mrb[3].mxu0 }
  0xe4   :  { %v263_v24 = vmul.f32 %v624_v4, %v217_v21  ;;  %v466_v26 = vpop.f32.mrb[2].mxu1  ;;  %v278_v29 = vadd.f32 %v629_v5, %v255_v20  ;;  %v256_v31 = vmul.f32 %v624_v4, %v188_v27 }
  0xe5   :  { %v288_v28 = vadd.f32 %v629_v5, %v265_v19  ;;  %v266_v30 = vmul.f32 %v466_v26, %v624_v4  ;;  %v220_v32 = vpop.f32.mrb[3].mxu1  ;;  %v296_v33 = vmax.f32 %v280_v23, 0.0  ;;  %v281_v35 = vadd.f32 %v629_v5, %v258_v25 }
  0xe6   :  { %v286_v34 = vadd.f32 %v629_v5, %v263_v24  ;;  %v264_v36 = vmul.f32 %v624_v4, %v220_v32  ;;  %v294_v38 = vmax.f32 %v278_v29, 0.0  ;;  %v279_v40 = vadd.f32 %v629_v5, %v256_v31 }
  0xe7   :  { %v304_v37 = vmax.f32 %v288_v28, 0.0  ;;  %v289_v39 = vadd.f32 %v629_v5, %v266_v30  ;;  %v427_v41 = vpack.c.bf16 %v296_v33, %v296_v33  ;;  %v297_v43 = vmax.f32 %v281_v35, 0.0 }
  0xe8   :  { %v302_v42 = vmax.f32 %v286_v34, 0.0  ;;  %v287_v44 = vadd.f32 %v629_v5, %v264_v36  ;;  %v425_v46 = vpack.c.bf16 %v294_v38, %v294_v38  ;;  %v295_v48 = vmax.f32 %v279_v40, 0.0  ;;  %v461_v49 = vpop.f32.mrb[4].mxu0 }
  0xe9   :  { %v435_v45 = vpack.c.bf16 %v304_v37, %v304_v37  ;;  %v305_v47 = vmax.f32 %v289_v39, 0.0  ;;  %377 = vst.msk [vmem:[%s733_s6 + $0x8] sm:$0xf] %vm374_vm2, %v427_v41  ;;  %v428_v51 = vpack.c.bf16 %v297_v43, %v297_v43  ;;  %v261_v53 = vmul.f32 %v461_v49, %v624_v4  ;;  %v201_v55 = vpop.f32.mrb[5].mxu0 }
  0xea   :  { %v433_v50 = vpack.c.bf16 %v302_v42, %v302_v42  ;;  %v303_v52 = vmax.f32 %v287_v44, 0.0  ;;  %v469_v54 = vpop.f32.mrb[4].mxu1  ;;  %375 = vst.msk [vmem:[%s733_s6] sm:$0xf] %vm374_vm2, %v425_v46  ;;  %v426_v57 = vpack.c.bf16 %v295_v48, %v295_v48  ;;  %v259_v59 = vmul.f32 %v624_v4, %v201_v55  ;;  %v462_v61 = vpop.f32.mrb[6].mxu0 }
  0xeb   :  { %385 = vst.msk [vmem:[%s733_s6 + $0x28] sm:$0xf] %vm374_vm2, %v435_v45  ;;  %v436_v56 = vpack.c.bf16 %v305_v47, %v305_v47  ;;  %v269_v58 = vmul.f32 %v469_v54, %v624_v4  ;;  %v233_v60 = vpop.f32.mrb[5].mxu1  ;;  %378 = vst.msk [vmem:[%s733_s6 + $0xc] sm:$0xf] %vm374_vm2, %v428_v51  ;;  %v284_v63 = vadd.f32 %v629_v5, %v261_v53  ;;  %v204_v3 = vpop.f32.mrb[7].mxu0 }
  0xec   :  { %383 = vst.msk [vmem:[%s733_s6 + $0x20] sm:$0xf] %vm374_vm2, %v433_v50  ;;  %v434_v62 = vpack.c.bf16 %v303_v52, %v303_v52  ;;  %v267_v0 = vmul.f32 %v624_v4, %v233_v60  ;;  %v262_v1 = vmul.f32 %v462_v61, %v624_v4  ;;  %v470_v2 = vpop.f32.mrb[6].mxu1  ;;  %376 = vst.msk [vmem:[%s733_s6 + $0x4] sm:$0xf] %vm374_vm2, %v426_v57 }
  0xed   :  { %386 = vst.msk [vmem:[%s733_s6 + $0x2c] sm:$0xf] %vm374_vm2, %v436_v56  ;;  %v292_v6 = vadd.f32 %v629_v5, %v269_v58  ;;  %v282_v7 = vadd.f32 %v629_v5, %v259_v59  ;;  %v270_v8 = vmul.f32 %v470_v2, %v624_v4  ;;  %v260_v9 = vmul.f32 %v624_v4, %v204_v3  ;;  %v236_v10 = vpop.f32.mrb[7].mxu1 }
  0xee   :  { %384 = vst.msk [vmem:[%s733_s6 + $0x24] sm:$0xf] %vm374_vm2, %v434_v62  ;;  %v300_v11 = vmax.f32 %v284_v63, 0.0  ;;  %v290_v12 = vadd.f32 %v629_v5, %v267_v0  ;;  %v285_v13 = vadd.f32 %v629_v5, %v262_v1  ;;  %v268_v14 = vmul.f32 %v624_v4, %v236_v10 }
  0xef   :  { %v308_v15 = vmax.f32 %v292_v6, 0.0  ;;  %v298_v16 = vmax.f32 %v282_v7, 0.0  ;;  %v293_v17 = vadd.f32 %v629_v5, %v270_v8  ;;  %v283_v18 = vadd.f32 %v629_v5, %v260_v9 }
  0xf0   :  { %v431_v19 = vpack.c.bf16 %v300_v11, %v300_v11  ;;  %v306_v20 = vmax.f32 %v290_v12, 0.0  ;;  %v301_v21 = vmax.f32 %v285_v13, 0.0  ;;  %v291_v22 = vadd.f32 %v629_v5, %v268_v14 }
  0xf1   :  { %v439_v23 = vpack.c.bf16 %v308_v15, %v308_v15  ;;  %v429_v24 = vpack.c.bf16 %v298_v16, %v298_v16  ;;  %v309_v25 = vmax.f32 %v293_v17, 0.0  ;;  %v299_v26 = vmax.f32 %v283_v18, 0.0 }
  0xf2   :  { %381 = vst.msk [vmem:[%s733_s6 + $0x18] sm:$0xf] %vm374_vm2, %v431_v19  ;;  %v437_v4 = vpack.c.bf16 %v306_v20, %v306_v20  ;;  %v432_v27 = vpack.c.bf16 %v301_v21, %v301_v21  ;;  %v307_v28 = vmax.f32 %v291_v22, 0.0 }
  0xf3   :  { %389 = vst.msk [vmem:[%s733_s6 + $0x38] sm:$0xf] %vm374_vm2, %v439_v23  ;;  %379 = vst.msk [vmem:[%s733_s6 + $0x10] sm:$0xf] %vm374_vm2, %v429_v24  ;;  %v440_v5 = vpack.c.bf16 %v309_v25, %v309_v25  ;;  %v430_v29 = vpack.c.bf16 %v299_v26, %v299_v26 }
  0xf4   :  { %387 = vst.msk [vmem:[%s733_s6 + $0x30] sm:$0xf] %vm374_vm2, %v437_v4  ;;  %382 = vst.msk [vmem:[%s733_s6 + $0x1c] sm:$0xf] %vm374_vm2, %v432_v27  ;;  %v438_v30 = vpack.c.bf16 %v307_v28, %v307_v28 }
  0xf5   :  { %390 = vst.msk [vmem:[%s733_s6 + $0x3c] sm:$0xf] %vm374_vm2, %v440_v5  ;;  %380 = vst.msk [vmem:[%s733_s6 + $0x14] sm:$0xf] %vm374_vm2, %v430_v29 }
  0xf6   :  { %388 = vst.msk [vmem:[%s733_s6 + $0x34] sm:$0xf] %vm374_vm2, %v438_v30 }

// kernel: convnet_forward.11
= control target key start
LH: loop header
LB: loop body
LE: loop exit
PB: predicated region body
PF: predicated region fallthrough
CT: control target
= control target key end

     0   :  { %v1350_v0 = vmov 0   ;;  %vm446_vm0 = vcmask 154624   ;;  %vm543_vm1 = vcmask 1040384   ;;  %vm544_vm2 = vcmask 1041408   ;;  %s2025_s1 = inlined_call_operand.vmem [shape: bf16[147,24], index: 1, kind: input, shape index: {}]   ;;  %s2026_s0 = inlined_call_operand.vmem [shape: bf16[512,147], index: 0, kind: input, shape index: {}]   ;;  %s2027_s2 = inlined_call_operand.vmem [shape: f32[1,24], index: 2, kind: input, shape index: {}]   ;;  %s2028_s3 = inlined_call_operand.vmem [shape: f32[1,24], index: 3, kind: input, shape index: {}]   ;;  %s2029_s4 = inlined_call_operand.vmem [shape: f32[512,24], index: 4, kind: output, shape index: {}]  }
   0x1   :  { %550 = vmatprep.subr.bf16.mxu0 %v1350_v0  ;;  %1222 = vmatprep.subr.bf16.mxu1 %v1350_v0  ;;  %v1244_v1 = vld [vmem:[%s2025_s1] sm:$0xff]   ;;  %v1245_v2 = vld [vmem:[%s2025_s1 + $0x8] sm:$0xff]   ;;  %v1246_v3 = vld [vmem:[%s2025_s1 + $0x10] sm:$0xff]   ;;  %v1351_v11 = vmov 65535   ;;  %vm1045_vm3 = vcmask 195584  }
   0x2   :  { %551 = vmatpush1.bf16.msra.mxu0 %v1244_v1  ;;  %1232 = vmatpush1.bf16.msra.mxu1 %v1244_v1  ;;  %v1247_v4 = vld [vmem:[%s2025_s1 + $0x18] sm:$0xff]   ;;  %v1256_v5 = vld [vmem:[%s2026_s0 + $0x4] ss:$8 sps:$4 sm:$0xff]   ;;  %v1250_v9 = vld [vmem:[%s2025_s1 + $0x30] sm:$0xff]   ;;  %v545_v12 = vsel %vm543_vm1, 4294967295, %v1351_v11 }
   0x3   :  { %552 = vmatprep.subr.bf16.mxu0 %v1350_v0  ;;  %1223 = vmatprep.subr.bf16.mxu1 %v1350_v0  ;;  %v1259_v6 = vld [vmem:[%s2026_s0 + $0x104] ss:$8 sps:$4 sm:$0xff]   ;;  %v1251_v10 = vld [vmem:[%s2025_s1 + $0x38] sm:$0xff]   ;;  %v1253_v14 = vld [vmem:[%s2025_s1 + $0x48] ss:$0 sps:$4 sm:$0x33]  }
   0x4   :  { %1188 = vmatprep.mubr.msk.bf16.mxu0 %vm446_vm0, %v1256_v5  ;;  %v1248_v7 = vld [vmem:[%s2025_s1 + $0x20] sm:$0xff]   ;;  %1204 = vmatprep.mubr.msk.bf16.mxu1 %vm446_vm0, %v1259_v6  ;;  %v1249_v8 = vld [vmem:[%s2025_s1 + $0x28] sm:$0xff]   ;;  %v546_v15 = vsel %vm544_vm2, %v545_v12, 0  ;;  %v1260_v19 = vld [vmem:[%s2026_s0 + $0x14] ss:$8 sps:$4 sm:$0xff]  }
   0x5   :  { %v1252_v13 = vld [vmem:[%s2025_s1 + $0x40] sm:$0xff]   ;;  %v548_v16 = vand.u32 %v1253_v14, %v546_v15  ;;  %v1262_v20 = vld [vmem:[%s2026_s0 + $0x114] ss:$8 sps:$4 sm:$0xff]   ;;  %v1264_v21 = vld [vmem:[%s2026_s0 + $0x10] ss:$8 sps:$4 sm:$0xff]  }
   0x6   :  { %553 = vmatpush1.bf16.msra.mxu0 %v1245_v2  ;;  %1233 = vmatpush1.bf16.msra.mxu1 %v1245_v2  ;;  %v1254_v17 = vld [vmem:[%s2026_s0] ss:$8 sps:$4 sm:$0xff]   ;;  %v1265_v22 = vld [vmem:[%s2026_s0 + $0x110] ss:$8 sps:$4 sm:$0xff]   ;;  %v1266_v23 = vld [vmem:[%s2026_s0 + $0x24] ss:$8 sps:$4 sm:$0xff]  }
   0x7   :  { %554 = vmatprep.subr.bf16.mxu0 %v1350_v0  ;;  %1224 = vmatprep.subr.bf16.mxu1 %v1350_v0  ;;  %v1257_v18 = vld [vmem:[%s2026_s0 + $0x100] ss:$8 sps:$4 sm:$0xff]   ;;  %v1268_v24 = vld [vmem:[%s2026_s0 + $0x124] ss:$8 sps:$4 sm:$0xff]   ;;  %v1272_v27 = vld [vmem:[%s2026_s0 + $0x34] ss:$8 sps:$4 sm:$0xff]  }
   0x8   :  { %v1270_v25 = vld [vmem:[%s2026_s0 + $0x20] ss:$8 sps:$4 sm:$0xff]   ;;  %v1274_v28 = vld [vmem:[%s2026_s0 + $0x134] ss:$8 sps:$4 sm:$0xff]   ;;  %v1276_v29 = vld [vmem:[%s2026_s0 + $0x30] ss:$8 sps:$4 sm:$0xff]  }
   0x9   :  { %v1271_v26 = vld [vmem:[%s2026_s0 + $0x120] ss:$8 sps:$4 sm:$0xff]   ;;  %v1277_v30 = vld [vmem:[%s2026_s0 + $0x130] ss:$8 sps:$4 sm:$0xff]   ;;  %v1278_v31 = vld [vmem:[%s2026_s0 + $0x44] ss:$8 sps:$4 sm:$0xff]  }
   0xa   :  { %555 = vmatpush1.bf16.msra.mxu0 %v1246_v3  ;;  %1234 = vmatpush1.bf16.msra.mxu1 %v1246_v3  ;;  %v1280_v32 = vld [vmem:[%s2026_s0 + $0x144] ss:$8 sps:$4 sm:$0xff]   ;;  %v1282_v33 = vld [vmem:[%s2026_s0 + $0x40] ss:$8 sps:$4 sm:$0xff]   ;;  %v1284_v35 = vld [vmem:[%s2026_s0 + $0x54] ss:$8 sps:$4 sm:$0xff]  }
   0xb   :  { %556 = vmatprep.subr.bf16.mxu0 %v1350_v0  ;;  %1225 = vmatprep.subr.bf16.mxu1 %v1350_v0  ;;  %v1283_v34 = vld [vmem:[%s2026_s0 + $0x140] ss:$8 sps:$4 sm:$0xff]   ;;  %v1286_v36 = vld [vmem:[%s2026_s0 + $0x154] ss:$8 sps:$4 sm:$0xff]   ;;  %v1288_v37 = vld [vmem:[%s2026_s0 + $0x50] ss:$8 sps:$4 sm:$0xff]  }
   0xc   :  { %v1289_v38 = vld [vmem:[%s2026_s0 + $0x150] ss:$8 sps:$4 sm:$0xff]   ;;  %v1290_v39 = vld [vmem:[%s2026_s0 + $0x64] ss:$8 sps:$4 sm:$0xff]   ;;  %v1294_v41 = vld [vmem:[%s2026_s0 + $0x60] ss:$8 sps:$4 sm:$0xff]  }
   0xd   :  { %v1292_v40 = vld [vmem:[%s2026_s0 + $0x164] ss:$8 sps:$4 sm:$0xff]   ;;  %v1295_v42 = vld [vmem:[%s2026_s0 + $0x160] ss:$8 sps:$4 sm:$0xff]   ;;  %v1296_v43 = vld [vmem:[%s2026_s0 + $0x74] ss:$8 sps:$4 sm:$0xff]  }
   0xe   :  { %557 = vmatpush1.bf16.msra.mxu0 %v1247_v4  ;;  %1235 = vmatpush1.bf16.msra.mxu1 %v1247_v4  ;;  %v1298_v44 = vld [vmem:[%s2026_s0 + $0x174] ss:$8 sps:$4 sm:$0xff]   ;;  %v1300_v45 = vld [vmem:[%s2026_s0 + $0x70] ss:$8 sps:$4 sm:$0xff]   ;;  %v1302_v47 = vld [vmem:[%s2026_s0 + $0x84] ss:$8 sps:$4 sm:$0xff]  }
   0xf   :  { %558 = vmatprep.subr.bf16.mxu0 %v1350_v0  ;;  %1226 = vmatprep.subr.bf16.mxu1 %v1350_v0  ;;  %v1301_v46 = vld [vmem:[%s2026_s0 + $0x170] ss:$8 sps:$4 sm:$0xff]   ;;  %v1304_v48 = vld [vmem:[%s2026_s0 + $0x184] ss:$8 sps:$4 sm:$0xff]   ;;  %v1306_v49 = vld [vmem:[%s2026_s0 + $0x80] ss:$8 sps:$4 sm:$0xff]  }
  0x10   :  { %v1307_v50 = vld [vmem:[%s2026_s0 + $0x180] ss:$8 sps:$4 sm:$0xff]   ;;  %v1308_v51 = vld [vmem:[%s2026_s0 + $0x94] ss:$8 sps:$4 sm:$0xff]   ;;  %v1312_v53 = vld [vmem:[%s2026_s0 + $0x90] ss:$8 sps:$4 sm:$0xff]  }
  0x11   :  { %v1310_v52 = vld [vmem:[%s2026_s0 + $0x194] ss:$8 sps:$4 sm:$0xff]   ;;  %v1313_v54 = vld [vmem:[%s2026_s0 + $0x190] ss:$8 sps:$4 sm:$0xff]   ;;  %v1314_v55 = vld [vmem:[%s2026_s0 + $0xa4] ss:$8 sps:$4 sm:$0xff]  }
  0x12   :  { %559 = vmatpush1.bf16.msra.mxu0 %v1248_v7  ;;  %1236 = vmatpush1.bf16.msra.mxu1 %v1248_v7  ;;  %v1316_v56 = vld [vmem:[%s2026_s0 + $0x1a4] ss:$8 sps:$4 sm:$0xff]   ;;  %v1318_v57 = vld [vmem:[%s2026_s0 + $0xa0] ss:$8 sps:$4 sm:$0xff]   ;;  %v1320_v59 = vld [vmem:[%s2026_s0 + $0xb4] ss:$8 sps:$4 sm:$0xff]  }
  0x13   :  { %560 = vmatprep.subr.bf16.mxu0 %v1350_v0  ;;  %1227 = vmatprep.subr.bf16.mxu1 %v1350_v0  ;;  %v1319_v58 = vld [vmem:[%s2026_s0 + $0x1a0] ss:$8 sps:$4 sm:$0xff]   ;;  %v1322_v60 = vld [vmem:[%s2026_s0 + $0x1b4] ss:$8 sps:$4 sm:$0xff]   ;;  %v1324_v61 = vld [vmem:[%s2026_s0 + $0xb0] ss:$8 sps:$4 sm:$0xff]  }
  0x14   :  { %v1325_v62 = vld [vmem:[%s2026_s0 + $0x1b0] ss:$8 sps:$4 sm:$0xff]   ;;  %v1326_v63 = vld [vmem:[%s2026_s0 + $0xc4] ss:$8 sps:$4 sm:$0xff]   ;;  %v1330_v1 = vld [vmem:[%s2026_s0 + $0xc0] ss:$8 sps:$4 sm:$0xff]  }
  0x15   :  { %v1331_v2 = vld [vmem:[%s2026_s0 + $0x1c0] ss:$8 sps:$4 sm:$0xff]   ;;  %v1332_v3 = vld [vmem:[%s2026_s0 + $0xd4] ss:$8 sps:$4 sm:$0xff]   ;;  %v1336_v5 = vld [vmem:[%s2026_s0 + $0xd0] ss:$8 sps:$4 sm:$0xff]  }
  0x16   :  { %561 = vmatpush1.bf16.msra.mxu0 %v1249_v8  ;;  %1237 = vmatpush1.bf16.msra.mxu1 %v1249_v8  ;;  %v1334_v4 = vld [vmem:[%s2026_s0 + $0x1d4] ss:$8 sps:$4 sm:$0xff]   ;;  %v1337_v6 = vld [vmem:[%s2026_s0 + $0x1d0] ss:$8 sps:$4 sm:$0xff]   ;;  %v1338_v7 = vld [vmem:[%s2026_s0 + $0xe4] ss:$8 sps:$4 sm:$0xff]  }
  0x17   :  { %562 = vmatprep.subr.bf16.mxu0 %v1350_v0  ;;  %1228 = vmatprep.subr.bf16.mxu1 %v1350_v0  ;;  %v1340_v8 = vld [vmem:[%s2026_s0 + $0x1e4] ss:$8 sps:$4 sm:$0xff]   ;;  %v1344_v11 = vld [vmem:[%s2026_s0 + $0xf4] ss:$8 sps:$4 sm:$0xff]   ;;  %v1349_v14 = vld [vmem:[%s2026_s0 + $0x1f0] ss:$8 sps:$4 sm:$0xff]  }
  0x18   :  { %v1346_v12 = vld [vmem:[%s2026_s0 + $0x1f4] ss:$8 sps:$4 sm:$0xff]   ;;  %v1634_v15 = vld [vmem:[%s2027_s2] ss:$0 sm:$0xff] }
  0x1a   :  { %563 = vmatpush1.bf16.msra.mxu0 %v1250_v9  ;;  %1238 = vmatpush1.bf16.msra.mxu1 %v1250_v9  ;;  %v1342_v9 = vld [vmem:[%s2026_s0 + $0xe0] ss:$8 sps:$4 sm:$0xff]  }
  0x1b   :  { %564 = vmatprep.subr.bf16.mxu0 %v1350_v0  ;;  %1229 = vmatprep.subr.bf16.mxu1 %v1350_v0 }
  0x1e   :  { %565 = vmatpush1.bf16.msra.mxu0 %v1251_v10  ;;  %1239 = vmatpush1.bf16.msra.mxu1 %v1251_v10  ;;  %v1343_v10 = vld [vmem:[%s2026_s0 + $0x1e0] ss:$8 sps:$4 sm:$0xff]  }
  0x1f   :  { %566 = vmatprep.subr.bf16.mxu0 %v1350_v0  ;;  %1230 = vmatprep.subr.bf16.mxu1 %v1350_v0 }
  0x22   :  { %567 = vmatpush1.bf16.msra.mxu0 %v1252_v13  ;;  %1240 = vmatpush1.bf16.msra.mxu1 %v1252_v13  ;;  %v1348_v13 = vld [vmem:[%s2026_s0 + $0xf0] ss:$8 sps:$4 sm:$0xff]  }
  0x23   :  { %568 = vmatprep.subr.bf16.mxu0 %v1350_v0  ;;  %1231 = vmatprep.subr.bf16.mxu1 %v1350_v0  ;;  %v1328_v0 = vld [vmem:[%s2026_s0 + $0x1c4] ss:$8 sps:$4 sm:$0xff]  }
  0x26   :  { %569 = vmatpush1.bf16.msra.mxu0 %v548_v16  ;;  %1241 = vmatpush1.bf16.msra.mxu1 %v548_v16 }
  0x29   :  { %583 = vmatmul.mubr.bf16.vlgmr.msra.gmra.mrb[0].mxu0 %v1254_v17  ;;  %711 = vmatmul.mubr.bf16.vlgmr.msra.gmra.mrb[0].mxu1 %v1257_v18  ;;  %v1639_v17 = vld [vmem:[%s2028_s3] ss:$0 sm:$0xff] }
  0x2a   :  { %1189 = vmatprep.mubr.msk.bf16.mxu0 %vm446_vm0, %v1260_v19  ;;  %1205 = vmatprep.mubr.msk.bf16.mxu1 %vm446_vm0, %v1262_v20 }
  0x31   :  { %591 = vmatmul.mubr.bf16.gmra.mrb[4].mxu0 %v1264_v21  ;;  %719 = vmatmul.mubr.bf16.gmra.mrb[4].mxu1 %v1265_v22 }
  0x32   :  { %1190 = vmatprep.mubr.msk.bf16.mxu0 %vm446_vm0, %v1266_v23  ;;  %1206 = vmatprep.mubr.msk.bf16.mxu1 %vm446_vm0, %v1268_v24 }
  0x39   :  { %599 = vmatmul.mubr.bf16.gmra.mrb[8].mxu0 %v1270_v25  ;;  %727 = vmatmul.mubr.bf16.gmra.mrb[8].mxu1 %v1271_v26 }
  0x3a   :  { %1191 = vmatprep.mubr.msk.bf16.mxu0 %vm446_vm0, %v1272_v27  ;;  %1207 = vmatprep.mubr.msk.bf16.mxu1 %vm446_vm0, %v1274_v28 }
  0x41   :  { %607 = vmatmul.mubr.bf16.gmra.mrb[12].mxu0 %v1276_v29  ;;  %735 = vmatmul.mubr.bf16.gmra.mrb[12].mxu1 %v1277_v30 }
  0x42   :  { %1192 = vmatprep.mubr.msk.bf16.mxu0 %vm446_vm0, %v1278_v31  ;;  %1208 = vmatprep.mubr.msk.bf16.mxu1 %vm446_vm0, %v1280_v32 }
  0x49   :  { %615 = vmatmul.mubr.bf16.gmra.mrb[16].mxu0 %v1282_v33  ;;  %743 = vmatmul.mubr.bf16.gmra.mrb[16].mxu1 %v1283_v34 }
  0x4a   :  { %1193 = vmatprep.mubr.msk.bf16.mxu0 %vm446_vm0, %v1284_v35  ;;  %1209 = vmatprep.mubr.msk.bf16.mxu1 %vm446_vm0, %v1286_v36 }
  0x51   :  { %623 = vmatmul.mubr.bf16.gmra.mrb[20].mxu0 %v1288_v37  ;;  %751 = vmatmul.mubr.bf16.gmra.mrb[20].mxu1 %v1289_v38 }
  0x52   :  { %1194 = vmatprep.mubr.msk.bf16.mxu0 %vm446_vm0, %v1290_v39  ;;  %1210 = vmatprep.mubr.msk.bf16.mxu1 %vm446_vm0, %v1292_v40 }
  0x59   :  { %631 = vmatmul.mubr.bf16.gmra.mrb[24].mxu0 %v1294_v41  ;;  %759 = vmatmul.mubr.bf16.gmra.mrb[24].mxu1 %v1295_v42 }
  0x5a   :  { %1195 = vmatprep.mubr.msk.bf16.mxu0 %vm446_vm0, %v1296_v43  ;;  %1211 = vmatprep.mubr.msk.bf16.mxu1 %vm446_vm0, %v1298_v44 }
  0x61   :  { %639 = vmatmul.mubr.bf16.gmra.mrb[28].mxu0 %v1300_v45  ;;  %767 = vmatmul.mubr.bf16.gmra.mrb[28].mxu1 %v1301_v46 }
  0x62   :  { %1196 = vmatprep.mubr.msk.bf16.mxu0 %vm446_vm0, %v1302_v47  ;;  %1212 = vmatprep.mubr.msk.bf16.mxu1 %vm446_vm0, %v1304_v48 }
  0x69   :  { %647 = vmatmul.mubr.bf16.gmra.mrb[32].mxu0 %v1306_v49  ;;  %775 = vmatmul.mubr.bf16.gmra.mrb[32].mxu1 %v1307_v50 }
  0x6a   :  { %1197 = vmatprep.mubr.msk.bf16.mxu0 %vm446_vm0, %v1308_v51  ;;  %1213 = vmatprep.mubr.msk.bf16.mxu1 %vm446_vm0, %v1310_v52 }
  0x71   :  { %655 = vmatmul.mubr.bf16.gmra.mrb[36].mxu0 %v1312_v53  ;;  %783 = vmatmul.mubr.bf16.gmra.mrb[36].mxu1 %v1313_v54 }
  0x72   :  { %1198 = vmatprep.mubr.msk.bf16.mxu0 %vm446_vm0, %v1314_v55  ;;  %1214 = vmatprep.mubr.msk.bf16.mxu1 %vm446_vm0, %v1316_v56 }
  0x79   :  { %663 = vmatmul.mubr.bf16.gmra.mrb[40].mxu0 %v1318_v57  ;;  %791 = vmatmul.mubr.bf16.gmra.mrb[40].mxu1 %v1319_v58 }
  0x7a   :  { %1199 = vmatprep.mubr.msk.bf16.mxu0 %vm446_vm0, %v1320_v59  ;;  %1215 = vmatprep.mubr.msk.bf16.mxu1 %vm446_vm0, %v1322_v60 }
  0x81   :  { %671 = vmatmul.mubr.bf16.gmra.mrb[44].mxu0 %v1324_v61  ;;  %799 = vmatmul.mubr.bf16.gmra.mrb[44].mxu1 %v1325_v62 }
  0x82   :  { %1200 = vmatprep.mubr.msk.bf16.mxu0 %vm446_vm0, %v1326_v63  ;;  %1216 = vmatprep.mubr.msk.bf16.mxu1 %vm446_vm0, %v1328_v0 }
  0x89   :  { %679 = vmatmul.mubr.bf16.gmra.mrb[48].mxu0 %v1330_v1  ;;  %807 = vmatmul.mubr.bf16.gmra.mrb[48].mxu1 %v1331_v2 }
  0x8a   :  { %1201 = vmatprep.mubr.msk.bf16.mxu0 %vm446_vm0, %v1332_v3  ;;  %1217 = vmatprep.mubr.msk.bf16.mxu1 %vm446_vm0, %v1334_v4 }
  0x91   :  { %687 = vmatmul.mubr.bf16.gmra.mrb[52].mxu0 %v1336_v5  ;;  %815 = vmatmul.mubr.bf16.gmra.mrb[52].mxu1 %v1337_v6 }
  0x92   :  { %1202 = vmatprep.mubr.msk.bf16.mxu0 %vm446_vm0, %v1338_v7  ;;  %1218 = vmatprep.mubr.msk.bf16.mxu1 %vm446_vm0, %v1340_v8 }
  0x99   :  { %695 = vmatmul.mubr.bf16.gmra.mrb[56].mxu0 %v1342_v9  ;;  %823 = vmatmul.mubr.bf16.gmra.mrb[56].mxu1 %v1343_v10 }
  0x9a   :  { %1203 = vmatprep.mubr.msk.bf16.mxu0 %vm446_vm0, %v1344_v11  ;;  %1219 = vmatprep.mubr.msk.bf16.mxu1 %vm446_vm0, %v1346_v12 }
  0xa1   :  { %703 = vmatmul.mubr.bf16.gmra.mrb[60].mxu0 %v1348_v13  ;;  %831 = vmatmul.mubr.bf16.gmra.mrb[60].mxu1 %v1349_v14 }
  0xfc   :  { %v584_v16 = vpop.f32.mrb[0].mxu0  ;;  %v712_v18 = vpop.f32.mrb[0].mxu1 }
  0xfd   :  { %v846_v19 = vmul.f32 %v1634_v15, %v584_v16  ;;  %v878_v20 = vmul.f32 %v1634_v15, %v712_v18  ;;  %v586_v21 = vpop.f32.mrb[1].mxu0  ;;  %v714_v22 = vpop.f32.mrb[1].mxu1 }
  0xfe   :  { %v587_v23 = vpop.f32.mrb[2].mxu0  ;;  %v715_v24 = vpop.f32.mrb[2].mxu1 }
  0xff   :  { %v917_v25 = vadd.f32 %v1639_v17, %v846_v19  ;;  %v949_v26 = vadd.f32 %v1639_v17, %v878_v20  ;;  %v847_v27 = vmul.f32 %v1634_v15, %v587_v23  ;;  %v879_v28 = vmul.f32 %v1634_v15, %v715_v24  ;;  %v589_v29 = vpop.f32.mrb[3].mxu0  ;;  %v717_v30 = vpop.f32.mrb[3].mxu1 }
 0x101   :  { %v981_v31 = vmax.f32 %v917_v25, 0.0  ;;  %v1013_v32 = vmax.f32 %v949_v26, 0.0  ;;  %v918_v33 = vadd.f32 %v1639_v17, %v847_v27  ;;  %v950_v34 = vadd.f32 %v1639_v17, %v879_v28 }
 0x103   :  { %1046 = vst.msk [vmem:[%s2029_s4] sm:$0xff] %vm1045_vm3, %v981_v31  ;;  %1078 = vst.msk [vmem:[%s2029_s4 + $0x100] sm:$0xff] %vm1045_vm3, %v1013_v32  ;;  %v982_v35 = vmax.f32 %v918_v33, 0.0  ;;  %v1014_v36 = vmax.f32 %v950_v34, 0.0 }
 0x104   :  { %v592_v37 = vpop.f32.mrb[4].mxu0  ;;  %v720_v38 = vpop.f32.mrb[4].mxu1 }
 0x105   :  { %1047 = vst.msk [vmem:[%s2029_s4 + $0x8] sm:$0xff] %vm1045_vm3, %v982_v35  ;;  %1079 = vst.msk [vmem:[%s2029_s4 + $0x108] sm:$0xff] %vm1045_vm3, %v1014_v36  ;;  %v848_v39 = vmul.f32 %v1634_v15, %v592_v37  ;;  %v880_v40 = vmul.f32 %v1634_v15, %v720_v38  ;;  %v594_v41 = vpop.f32.mrb[5].mxu0  ;;  %v722_v42 = vpop.f32.mrb[5].mxu1 }
 0x106   :  { %v595_v43 = vpop.f32.mrb[6].mxu0  ;;  %v723_v44 = vpop.f32.mrb[6].mxu1 }
 0x107   :  { %v919_v45 = vadd.f32 %v1639_v17, %v848_v39  ;;  %v951_v46 = vadd.f32 %v1639_v17, %v880_v40  ;;  %v849_v47 = vmul.f32 %v1634_v15, %v595_v43  ;;  %v881_v48 = vmul.f32 %v1634_v15, %v723_v44  ;;  %v597_v49 = vpop.f32.mrb[7].mxu0  ;;  %v725_v50 = vpop.f32.mrb[7].mxu1 }
 0x109   :  { %v983_v51 = vmax.f32 %v919_v45, 0.0  ;;  %v1015_v52 = vmax.f32 %v951_v46, 0.0  ;;  %v920_v53 = vadd.f32 %v1639_v17, %v849_v47  ;;  %v952_v54 = vadd.f32 %v1639_v17, %v881_v48 }
 0x10b   :  { %1048 = vst.msk [vmem:[%s2029_s4 + $0x10] sm:$0xff] %vm1045_vm3, %v983_v51  ;;  %1080 = vst.msk [vmem:[%s2029_s4 + $0x110] sm:$0xff] %vm1045_vm3, %v1015_v52  ;;  %v984_v55 = vmax.f32 %v920_v53, 0.0  ;;  %v1016_v56 = vmax.f32 %v952_v54, 0.0 }
 0x10c   :  { %v600_v57 = vpop.f32.mrb[8].mxu0  ;;  %v728_v58 = vpop.f32.mrb[8].mxu1 }
 0x10d   :  { %1049 = vst.msk [vmem:[%s2029_s4 + $0x18] sm:$0xff] %vm1045_vm3, %v984_v55  ;;  %1081 = vst.msk [vmem:[%s2029_s4 + $0x118] sm:$0xff] %vm1045_vm3, %v1016_v56  ;;  %v850_v59 = vmul.f32 %v1634_v15, %v600_v57  ;;  %v882_v60 = vmul.f32 %v1634_v15, %v728_v58  ;;  %v602_v61 = vpop.f32.mrb[9].mxu0  ;;  %v730_v62 = vpop.f32.mrb[9].mxu1 }
 0x10e   :  { %v603_v63 = vpop.f32.mrb[10].mxu0  ;;  %v731_v0 = vpop.f32.mrb[10].mxu1 }
 0x10f   :  { %v921_v1 = vadd.f32 %v1639_v17, %v850_v59  ;;  %v953_v2 = vadd.f32 %v1639_v17, %v882_v60  ;;  %v851_v3 = vmul.f32 %v1634_v15, %v603_v63  ;;  %v883_v4 = vmul.f32 %v1634_v15, %v731_v0  ;;  %v605_v5 = vpop.f32.mrb[11].mxu0  ;;  %v733_v6 = vpop.f32.mrb[11].mxu1 }
 0x111   :  { %v985_v7 = vmax.f32 %v921_v1, 0.0  ;;  %v1017_v8 = vmax.f32 %v953_v2, 0.0  ;;  %v922_v9 = vadd.f32 %v1639_v17, %v851_v3  ;;  %v954_v10 = vadd.f32 %v1639_v17, %v883_v4 }
 0x113   :  { %1050 = vst.msk [vmem:[%s2029_s4 + $0x20] sm:$0xff] %vm1045_vm3, %v985_v7  ;;  %1082 = vst.msk [vmem:[%s2029_s4 + $0x120] sm:$0xff] %vm1045_vm3, %v1017_v8  ;;  %v986_v11 = vmax.f32 %v922_v9, 0.0  ;;  %v1018_v12 = vmax.f32 %v954_v10, 0.0 }
 0x114   :  { %v608_v13 = vpop.f32.mrb[12].mxu0  ;;  %v736_v14 = vpop.f32.mrb[12].mxu1 }
 0x115   :  { %1051 = vst.msk [vmem:[%s2029_s4 + $0x28] sm:$0xff] %vm1045_vm3, %v986_v11  ;;  %1083 = vst.msk [vmem:[%s2029_s4 + $0x128] sm:$0xff] %vm1045_vm3, %v1018_v12  ;;  %v852_v16 = vmul.f32 %v1634_v15, %v608_v13  ;;  %v884_v18 = vmul.f32 %v1634_v15, %v736_v14  ;;  %v610_v19 = vpop.f32.mrb[13].mxu0  ;;  %v738_v20 = vpop.f32.mrb[13].mxu1 }
 0x116   :  { %v611_v21 = vpop.f32.mrb[14].mxu0  ;;  %v739_v22 = vpop.f32.mrb[14].mxu1 }
 0x117   :  { %v923_v23 = vadd.f32 %v1639_v17, %v852_v16  ;;  %v955_v24 = vadd.f32 %v1639_v17, %v884_v18  ;;  %v853_v25 = vmul.f32 %v1634_v15, %v611_v21  ;;  %v885_v26 = vmul.f32 %v1634_v15, %v739_v22  ;;  %v613_v27 = vpop.f32.mrb[15].mxu0  ;;  %v741_v28 = vpop.f32.mrb[15].mxu1 }
 0x119   :  { %v987_v29 = vmax.f32 %v923_v23, 0.0  ;;  %v1019_v30 = vmax.f32 %v955_v24, 0.0  ;;  %v924_v31 = vadd.f32 %v1639_v17, %v853_v25  ;;  %v956_v32 = vadd.f32 %v1639_v17, %v885_v26 }
 0x11b   :  { %1052 = vst.msk [vmem:[%s2029_s4 + $0x30] sm:$0xff] %vm1045_vm3, %v987_v29  ;;  %1084 = vst.msk [vmem:[%s2029_s4 + $0x130] sm:$0xff] %vm1045_vm3, %v1019_v30  ;;  %v988_v33 = vmax.f32 %v924_v31, 0.0  ;;  %v1020_v34 = vmax.f32 %v956_v32, 0.0 }
 0x11c   :  { %v616_v35 = vpop.f32.mrb[16].mxu0  ;;  %v744_v36 = vpop.f32.mrb[16].mxu1 }
 0x11d   :  { %1053 = vst.msk [vmem:[%s2029_s4 + $0x38] sm:$0xff] %vm1045_vm3, %v988_v33  ;;  %1085 = vst.msk [vmem:[%s2029_s4 + $0x138] sm:$0xff] %vm1045_vm3, %v1020_v34  ;;  %v854_v37 = vmul.f32 %v1634_v15, %v616_v35  ;;  %v886_v38 = vmul.f32 %v1634_v15, %v744_v36  ;;  %v618_v39 = vpop.f32.mrb[17].mxu0  ;;  %v746_v40 = vpop.f32.mrb[17].mxu1 }
 0x11e   :  { %v619_v41 = vpop.f32.mrb[18].mxu0  ;;  %v747_v42 = vpop.f32.mrb[18].mxu1 }
 0x11f   :  { %v925_v43 = vadd.f32 %v1639_v17, %v854_v37  ;;  %v957_v44 = vadd.f32 %v1639_v17, %v886_v38  ;;  %v855_v45 = vmul.f32 %v1634_v15, %v619_v41  ;;  %v887_v46 = vmul.f32 %v1634_v15, %v747_v42  ;;  %v621_v47 = vpop.f32.mrb[19].mxu0  ;;  %v749_v48 = vpop.f32.mrb[19].mxu1 }
 0x121   :  { %v989_v49 = vmax.f32 %v925_v43, 0.0  ;;  %v1021_v50 = vmax.f32 %v957_v44, 0.0  ;;  %v926_v51 = vadd.f32 %v1639_v17, %v855_v45  ;;  %v958_v52 = vadd.f32 %v1639_v17, %v887_v46 }
 0x123   :  { %1054 = vst.msk [vmem:[%s2029_s4 + $0x40] sm:$0xff] %vm1045_vm3, %v989_v49  ;;  %1086 = vst.msk [vmem:[%s2029_s4 + $0x140] sm:$0xff] %vm1045_vm3, %v1021_v50  ;;  %v990_v53 = vmax.f32 %v926_v51, 0.0  ;;  %v1022_v54 = vmax.f32 %v958_v52, 0.0 }
 0x124   :  { %v624_v55 = vpop.f32.mrb[20].mxu0  ;;  %v752_v56 = vpop.f32.mrb[20].mxu1 }
 0x125   :  { %1055 = vst.msk [vmem:[%s2029_s4 + $0x48] sm:$0xff] %vm1045_vm3, %v990_v53  ;;  %1087 = vst.msk [vmem:[%s2029_s4 + $0x148] sm:$0xff] %vm1045_vm3, %v1022_v54  ;;  %v856_v57 = vmul.f32 %v1634_v15, %v624_v55  ;;  %v888_v58 = vmul.f32 %v1634_v15, %v752_v56  ;;  %v626_v59 = vpop.f32.mrb[21].mxu0  ;;  %v754_v60 = vpop.f32.mrb[21].mxu1 }
 0x126   :  { %v627_v61 = vpop.f32.mrb[22].mxu0  ;;  %v755_v62 = vpop.f32.mrb[22].mxu1 }
 0x127   :  { %v927_v63 = vadd.f32 %v1639_v17, %v856_v57  ;;  %v959_v0 = vadd.f32 %v1639_v17, %v888_v58  ;;  %v857_v1 = vmul.f32 %v1634_v15, %v627_v61  ;;  %v889_v2 = vmul.f32 %v1634_v15, %v755_v62  ;;  %v629_v3 = vpop.f32.mrb[23].mxu0  ;;  %v757_v4 = vpop.f32.mrb[23].mxu1 }
 0x129   :  { %v991_v5 = vmax.f32 %v927_v63, 0.0  ;;  %v1023_v6 = vmax.f32 %v959_v0, 0.0  ;;  %v928_v7 = vadd.f32 %v1639_v17, %v857_v1  ;;  %v960_v8 = vadd.f32 %v1639_v17, %v889_v2 }
 0x12b   :  { %1056 = vst.msk [vmem:[%s2029_s4 + $0x50] sm:$0xff] %vm1045_vm3, %v991_v5  ;;  %1088 = vst.msk [vmem:[%s2029_s4 + $0x150] sm:$0xff] %vm1045_vm3, %v1023_v6  ;;  %v992_v9 = vmax.f32 %v928_v7, 0.0  ;;  %v1024_v10 = vmax.f32 %v960_v8, 0.0 }
 0x12c   :  { %v632_v11 = vpop.f32.mrb[24].mxu0  ;;  %v760_v12 = vpop.f32.mrb[24].mxu1 }
 0x12d   :  { %1057 = vst.msk [vmem:[%s2029_s4 + $0x58] sm:$0xff] %vm1045_vm3, %v992_v9  ;;  %1089 = vst.msk [vmem:[%s2029_s4 + $0x158] sm:$0xff] %vm1045_vm3, %v1024_v10  ;;  %v858_v13 = vmul.f32 %v1634_v15, %v632_v11  ;;  %v890_v14 = vmul.f32 %v1634_v15, %v760_v12  ;;  %v634_v16 = vpop.f32.mrb[25].mxu0  ;;  %v762_v18 = vpop.f32.mrb[25].mxu1 }
 0x12e   :  { %v635_v19 = vpop.f32.mrb[26].mxu0  ;;  %v763_v20 = vpop.f32.mrb[26].mxu1 }
 0x12f   :  { %v929_v21 = vadd.f32 %v1639_v17, %v858_v13  ;;  %v961_v22 = vadd.f32 %v1639_v17, %v890_v14  ;;  %v859_v23 = vmul.f32 %v1634_v15, %v635_v19  ;;  %v891_v24 = vmul.f32 %v1634_v15, %v763_v20  ;;  %v637_v25 = vpop.f32.mrb[27].mxu0  ;;  %v765_v26 = vpop.f32.mrb[27].mxu1 }
 0x131   :  { %v993_v27 = vmax.f32 %v929_v21, 0.0  ;;  %v1025_v28 = vmax.f32 %v961_v22, 0.0  ;;  %v930_v29 = vadd.f32 %v1639_v17, %v859_v23  ;;  %v962_v30 = vadd.f32 %v1639_v17, %v891_v24 }
 0x133   :  { %1058 = vst.msk [vmem:[%s2029_s4 + $0x60] sm:$0xff] %vm1045_vm3, %v993_v27  ;;  %1090 = vst.msk [vmem:[%s2029_s4 + $0x160] sm:$0xff] %vm1045_vm3, %v1025_v28  ;;  %v994_v31 = vmax.f32 %v930_v29, 0.0  ;;  %v1026_v32 = vmax.f32 %v962_v30, 0.0 }
 0x134   :  { %v640_v33 = vpop.f32.mrb[28].mxu0  ;;  %v768_v34 = vpop.f32.mrb[28].mxu1 }
 0x135   :  { %1059 = vst.msk [vmem:[%s2029_s4 + $0x68] sm:$0xff] %vm1045_vm3, %v994_v31  ;;  %1091 = vst.msk [vmem:[%s2029_s4 + $0x168] sm:$0xff] %vm1045_vm3, %v1026_v32  ;;  %v860_v35 = vmul.f32 %v1634_v15, %v640_v33  ;;  %v892_v36 = vmul.f32 %v1634_v15, %v768_v34  ;;  %v642_v37 = vpop.f32.mrb[29].mxu0  ;;  %v770_v38 = vpop.f32.mrb[29].mxu1 }
 0x136   :  { %v643_v39 = vpop.f32.mrb[30].mxu0  ;;  %v771_v40 = vpop.f32.mrb[30].mxu1 }
 0x137   :  { %v931_v41 = vadd.f32 %v1639_v17, %v860_v35  ;;  %v963_v42 = vadd.f32 %v1639_v17, %v892_v36  ;;  %v861_v43 = vmul.f32 %v1634_v15, %v643_v39  ;;  %v893_v44 = vmul.f32 %v1634_v15, %v771_v40  ;;  %v645_v45 = vpop.f32.mrb[31].mxu0  ;;  %v773_v46 = vpop.f32.mrb[31].mxu1 }
 0x139   :  { %v995_v47 = vmax.f32 %v931_v41, 0.0  ;;  %v1027_v48 = vmax.f32 %v963_v42, 0.0  ;;  %v932_v49 = vadd.f32 %v1639_v17, %v861_v43  ;;  %v964_v50 = vadd.f32 %v1639_v17, %v893_v44 }
 0x13b   :  { %1060 = vst.msk [vmem:[%s2029_s4 + $0x70] sm:$0xff] %vm1045_vm3, %v995_v47  ;;  %1092 = vst.msk [vmem:[%s2029_s4 + $0x170] sm:$0xff] %vm1045_vm3, %v1027_v48  ;;  %v996_v51 = vmax.f32 %v932_v49, 0.0  ;;  %v1028_v52 = vmax.f32 %v964_v50, 0.0 }
 0x13c   :  { %v648_v53 = vpop.f32.mrb[32].mxu0  ;;  %v776_v54 = vpop.f32.mrb[32].mxu1 }
 0x13d   :  { %1061 = vst.msk [vmem:[%s2029_s4 + $0x78] sm:$0xff] %vm1045_vm3, %v996_v51  ;;  %1093 = vst.msk [vmem:[%s2029_s4 + $0x178] sm:$0xff] %vm1045_vm3, %v1028_v52  ;;  %v862_v55 = vmul.f32 %v1634_v15, %v648_v53  ;;  %v894_v56 = vmul.f32 %v1634_v15, %v776_v54  ;;  %v650_v57 = vpop.f32.mrb[33].mxu0  ;;  %v778_v58 = vpop.f32.mrb[33].mxu1 }
 0x13e   :  { %v651_v59 = vpop.f32.mrb[34].mxu0  ;;  %v779_v60 = vpop.f32.mrb[34].mxu1 }
 0x13f   :  { %v933_v61 = vadd.f32 %v1639_v17, %v862_v55  ;;  %v965_v62 = vadd.f32 %v1639_v17, %v894_v56  ;;  %v863_v63 = vmul.f32 %v1634_v15, %v651_v59  ;;  %v895_v0 = vmul.f32 %v1634_v15, %v779_v60  ;;  %v653_v1 = vpop.f32.mrb[35].mxu0  ;;  %v781_v2 = vpop.f32.mrb[35].mxu1 }
 0x141   :  { %v997_v3 = vmax.f32 %v933_v61, 0.0  ;;  %v1029_v4 = vmax.f32 %v965_v62, 0.0  ;;  %v934_v5 = vadd.f32 %v1639_v17, %v863_v63  ;;  %v966_v6 = vadd.f32 %v1639_v17, %v895_v0 }
 0x143   :  { %1062 = vst.msk [vmem:[%s2029_s4 + $0x80] sm:$0xff] %vm1045_vm3, %v997_v3  ;;  %1094 = vst.msk [vmem:[%s2029_s4 + $0x180] sm:$0xff] %vm1045_vm3, %v1029_v4  ;;  %v998_v7 = vmax.f32 %v934_v5, 0.0  ;;  %v1030_v8 = vmax.f32 %v966_v6, 0.0 }
 0x144   :  { %v656_v9 = vpop.f32.mrb[36].mxu0  ;;  %v784_v10 = vpop.f32.mrb[36].mxu1 }
 0x145   :  { %1063 = vst.msk [vmem:[%s2029_s4 + $0x88] sm:$0xff] %vm1045_vm3, %v998_v7  ;;  %1095 = vst.msk [vmem:[%s2029_s4 + $0x188] sm:$0xff] %vm1045_vm3, %v1030_v8  ;;  %v864_v11 = vmul.f32 %v1634_v15, %v656_v9  ;;  %v896_v12 = vmul.f32 %v1634_v15, %v784_v10  ;;  %v658_v13 = vpop.f32.mrb[37].mxu0  ;;  %v786_v14 = vpop.f32.mrb[37].mxu1 }
 0x146   :  { %v659_v16 = vpop.f32.mrb[38].mxu0  ;;  %v787_v18 = vpop.f32.mrb[38].mxu1 }
 0x147   :  { %v935_v19 = vadd.f32 %v1639_v17, %v864_v11  ;;  %v967_v20 = vadd.f32 %v1639_v17, %v896_v12  ;;  %v865_v21 = vmul.f32 %v1634_v15, %v659_v16  ;;  %v897_v22 = vmul.f32 %v1634_v15, %v787_v18  ;;  %v661_v23 = vpop.f32.mrb[39].mxu0  ;;  %v789_v24 = vpop.f32.mrb[39].mxu1 }
 0x149   :  { %v999_v25 = vmax.f32 %v935_v19, 0.0  ;;  %v1031_v26 = vmax.f32 %v967_v20, 0.0  ;;  %v936_v27 = vadd.f32 %v1639_v17, %v865_v21  ;;  %v968_v28 = vadd.f32 %v1639_v17, %v897_v22 }
 0x14b   :  { %1064 = vst.msk [vmem:[%s2029_s4 + $0x90] sm:$0xff] %vm1045_vm3, %v999_v25  ;;  %1096 = vst.msk [vmem:[%s2029_s4 + $0x190] sm:$0xff] %vm1045_vm3, %v1031_v26  ;;  %v1000_v29 = vmax.f32 %v936_v27, 0.0  ;;  %v1032_v30 = vmax.f32 %v968_v28, 0.0 }
 0x14c   :  { %v664_v31 = vpop.f32.mrb[40].mxu0  ;;  %v792_v32 = vpop.f32.mrb[40].mxu1 }
 0x14d   :  { %1065 = vst.msk [vmem:[%s2029_s4 + $0x98] sm:$0xff] %vm1045_vm3, %v1000_v29  ;;  %1097 = vst.msk [vmem:[%s2029_s4 + $0x198] sm:$0xff] %vm1045_vm3, %v1032_v30  ;;  %v866_v33 = vmul.f32 %v1634_v15, %v664_v31  ;;  %v898_v34 = vmul.f32 %v1634_v15, %v792_v32  ;;  %v666_v35 = vpop.f32.mrb[41].mxu0  ;;  %v794_v36 = vpop.f32.mrb[41].mxu1 }
 0x14e   :  { %v667_v37 = vpop.f32.mrb[42].mxu0  ;;  %v795_v38 = vpop.f32.mrb[42].mxu1 }
 0x14f   :  { %v937_v39 = vadd.f32 %v1639_v17, %v866_v33  ;;  %v969_v40 = vadd.f32 %v1639_v17, %v898_v34  ;;  %v867_v41 = vmul.f32 %v1634_v15, %v667_v37  ;;  %v899_v42 = vmul.f32 %v1634_v15, %v795_v38  ;;  %v669_v43 = vpop.f32.mrb[43].mxu0  ;;  %v797_v44 = vpop.f32.mrb[43].mxu1 }
 0x151   :  { %v1001_v45 = vmax.f32 %v937_v39, 0.0  ;;  %v1033_v46 = vmax.f32 %v969_v40, 0.0  ;;  %v938_v47 = vadd.f32 %v1639_v17, %v867_v41  ;;  %v970_v48 = vadd.f32 %v1639_v17, %v899_v42 }
 0x153   :  { %1066 = vst.msk [vmem:[%s2029_s4 + $0xa0] sm:$0xff] %vm1045_vm3, %v1001_v45  ;;  %1098 = vst.msk [vmem:[%s2029_s4 + $0x1a0] sm:$0xff] %vm1045_vm3, %v1033_v46  ;;  %v1002_v49 = vmax.f32 %v938_v47, 0.0  ;;  %v1034_v50 = vmax.f32 %v970_v48, 0.0 }
 0x154   :  { %v672_v51 = vpop.f32.mrb[44].mxu0  ;;  %v800_v52 = vpop.f32.mrb[44].mxu1 }
 0x155   :  { %1067 = vst.msk [vmem:[%s2029_s4 + $0xa8] sm:$0xff] %vm1045_vm3, %v1002_v49  ;;  %1099 = vst.msk [vmem:[%s2029_s4 + $0x1a8] sm:$0xff] %vm1045_vm3, %v1034_v50  ;;  %v868_v53 = vmul.f32 %v1634_v15, %v672_v51  ;;  %v900_v54 = vmul.f32 %v1634_v15, %v800_v52  ;;  %v674_v55 = vpop.f32.mrb[45].mxu0  ;;  %v802_v56 = vpop.f32.mrb[45].mxu1 }
 0x156   :  { %v675_v57 = vpop.f32.mrb[46].mxu0  ;;  %v803_v58 = vpop.f32.mrb[46].mxu1 }
 0x157   :  { %v939_v59 = vadd.f32 %v1639_v17, %v868_v53  ;;  %v971_v60 = vadd.f32 %v1639_v17, %v900_v54  ;;  %v869_v61 = vmul.f32 %v1634_v15, %v675_v57  ;;  %v901_v62 = vmul.f32 %v1634_v15, %v803_v58  ;;  %v677_v63 = vpop.f32.mrb[47].mxu0  ;;  %v805_v0 = vpop.f32.mrb[47].mxu1 }
 0x159   :  { %v1003_v1 = vmax.f32 %v939_v59, 0.0  ;;  %v1035_v2 = vmax.f32 %v971_v60, 0.0  ;;  %v940_v3 = vadd.f32 %v1639_v17, %v869_v61  ;;  %v972_v4 = vadd.f32 %v1639_v17, %v901_v62 }
 0x15b   :  { %1068 = vst.msk [vmem:[%s2029_s4 + $0xb0] sm:$0xff] %vm1045_vm3, %v1003_v1  ;;  %1100 = vst.msk [vmem:[%s2029_s4 + $0x1b0] sm:$0xff] %vm1045_vm3, %v1035_v2  ;;  %v1004_v5 = vmax.f32 %v940_v3, 0.0  ;;  %v1036_v6 = vmax.f32 %v972_v4, 0.0 }
 0x15c   :  { %v680_v7 = vpop.f32.mrb[48].mxu0  ;;  %v808_v8 = vpop.f32.mrb[48].mxu1 }
 0x15d   :  { %1069 = vst.msk [vmem:[%s2029_s4 + $0xb8] sm:$0xff] %vm1045_vm3, %v1004_v5  ;;  %1101 = vst.msk [vmem:[%s2029_s4 + $0x1b8] sm:$0xff] %vm1045_vm3, %v1036_v6  ;;  %v870_v9 = vmul.f32 %v1634_v15, %v680_v7  ;;  %v902_v10 = vmul.f32 %v1634_v15, %v808_v8  ;;  %v682_v11 = vpop.f32.mrb[49].mxu0  ;;  %v810_v12 = vpop.f32.mrb[49].mxu1 }
 0x15e   :  { %v683_v13 = vpop.f32.mrb[50].mxu0  ;;  %v811_v14 = vpop.f32.mrb[50].mxu1 }
 0x15f   :  { %v941_v16 = vadd.f32 %v1639_v17, %v870_v9  ;;  %v973_v18 = vadd.f32 %v1639_v17, %v902_v10  ;;  %v871_v19 = vmul.f32 %v1634_v15, %v683_v13  ;;  %v903_v20 = vmul.f32 %v1634_v15, %v811_v14  ;;  %v685_v21 = vpop.f32.mrb[51].mxu0  ;;  %v813_v22 = vpop.f32.mrb[51].mxu1 }
 0x161   :  { %v1005_v23 = vmax.f32 %v941_v16, 0.0  ;;  %v1037_v24 = vmax.f32 %v973_v18, 0.0  ;;  %v942_v25 = vadd.f32 %v1639_v17, %v871_v19  ;;  %v974_v26 = vadd.f32 %v1639_v17, %v903_v20 }
 0x163   :  { %1070 = vst.msk [vmem:[%s2029_s4 + $0xc0] sm:$0xff] %vm1045_vm3, %v1005_v23  ;;  %1102 = vst.msk [vmem:[%s2029_s4 + $0x1c0] sm:$0xff] %vm1045_vm3, %v1037_v24  ;;  %v1006_v27 = vmax.f32 %v942_v25, 0.0  ;;  %v1038_v28 = vmax.f32 %v974_v26, 0.0 }
 0x164   :  { %v688_v29 = vpop.f32.mrb[52].mxu0  ;;  %v816_v30 = vpop.f32.mrb[52].mxu1 }
 0x165   :  { %1071 = vst.msk [vmem:[%s2029_s4 + $0xc8] sm:$0xff] %vm1045_vm3, %v1006_v27  ;;  %1103 = vst.msk [vmem:[%s2029_s4 + $0x1c8] sm:$0xff] %vm1045_vm3, %v1038_v28  ;;  %v872_v31 = vmul.f32 %v1634_v15, %v688_v29  ;;  %v904_v32 = vmul.f32 %v1634_v15, %v816_v30  ;;  %v690_v33 = vpop.f32.mrb[53].mxu0  ;;  %v818_v34 = vpop.f32.mrb[53].mxu1 }
 0x166   :  { %v691_v35 = vpop.f32.mrb[54].mxu0  ;;  %v819_v36 = vpop.f32.mrb[54].mxu1 }
 0x167   :  { %v943_v37 = vadd.f32 %v1639_v17, %v872_v31  ;;  %v975_v38 = vadd.f32 %v1639_v17, %v904_v32  ;;  %v873_v39 = vmul.f32 %v1634_v15, %v691_v35  ;;  %v905_v40 = vmul.f32 %v1634_v15, %v819_v36  ;;  %v693_v41 = vpop.f32.mrb[55].mxu0  ;;  %v821_v42 = vpop.f32.mrb[55].mxu1 }
 0x169   :  { %v1007_v43 = vmax.f32 %v943_v37, 0.0  ;;  %v1039_v44 = vmax.f32 %v975_v38, 0.0  ;;  %v944_v45 = vadd.f32 %v1639_v17, %v873_v39  ;;  %v976_v46 = vadd.f32 %v1639_v17, %v905_v40 }
 0x16b   :  { %1072 = vst.msk [vmem:[%s2029_s4 + $0xd0] sm:$0xff] %vm1045_vm3, %v1007_v43  ;;  %1104 = vst.msk [vmem:[%s2029_s4 + $0x1d0] sm:$0xff] %vm1045_vm3, %v1039_v44  ;;  %v1008_v47 = vmax.f32 %v944_v45, 0.0  ;;  %v1040_v48 = vmax.f32 %v976_v46, 0.0 }
 0x16c   :  { %v696_v49 = vpop.f32.mrb[56].mxu0  ;;  %v824_v50 = vpop.f32.mrb[56].mxu1 }
 0x16d   :  { %1073 = vst.msk [vmem:[%s2029_s4 + $0xd8] sm:$0xff] %vm1045_vm3, %v1008_v47  ;;  %1105 = vst.msk [vmem:[%s2029_s4 + $0x1d8] sm:$0xff] %vm1045_vm3, %v1040_v48  ;;  %v874_v51 = vmul.f32 %v1634_v15, %v696_v49  ;;  %v906_v52 = vmul.f32 %v1634_v15, %v824_v50  ;;  %v698_v53 = vpop.f32.mrb[57].mxu0  ;;  %v826_v54 = vpop.f32.mrb[57].mxu1 }
 0x16e   :  { %v699_v55 = vpop.f32.mrb[58].mxu0  ;;  %v827_v56 = vpop.f32.mrb[58].mxu1 }
 0x16f   :  { %v945_v57 = vadd.f32 %v1639_v17, %v874_v51  ;;  %v977_v58 = vadd.f32 %v1639_v17, %v906_v52  ;;  %v875_v59 = vmul.f32 %v1634_v15, %v699_v55  ;;  %v907_v60 = vmul.f32 %v1634_v15, %v827_v56  ;;  %v701_v61 = vpop.f32.mrb[59].mxu0  ;;  %v829_v62 = vpop.f32.mrb[59].mxu1 }
 0x171   :  { %v1009_v63 = vmax.f32 %v945_v57, 0.0  ;;  %v1041_v0 = vmax.f32 %v977_v58, 0.0  ;;  %v946_v1 = vadd.f32 %v1639_v17, %v875_v59  ;;  %v978_v2 = vadd.f32 %v1639_v17, %v907_v60 }
 0x173   :  { %1074 = vst.msk [vmem:[%s2029_s4 + $0xe0] sm:$0xff] %vm1045_vm3, %v1009_v63  ;;  %1106 = vst.msk [vmem:[%s2029_s4 + $0x1e0] sm:$0xff] %vm1045_vm3, %v1041_v0  ;;  %v1010_v3 = vmax.f32 %v946_v1, 0.0  ;;  %v1042_v4 = vmax.f32 %v978_v2, 0.0 }
 0x174   :  { %v704_v5 = vpop.f32.mrb[60].mxu0  ;;  %v832_v6 = vpop.f32.mrb[60].mxu1 }
 0x175   :  { %1075 = vst.msk [vmem:[%s2029_s4 + $0xe8] sm:$0xff] %vm1045_vm3, %v1010_v3  ;;  %1107 = vst.msk [vmem:[%s2029_s4 + $0x1e8] sm:$0xff] %vm1045_vm3, %v1042_v4  ;;  %v876_v7 = vmul.f32 %v1634_v15, %v704_v5  ;;  %v908_v8 = vmul.f32 %v1634_v15, %v832_v6  ;;  %v706_v9 = vpop.f32.mrb[61].mxu0  ;;  %v834_v10 = vpop.f32.mrb[61].mxu1 }
 0x176   :  { %v707_v11 = vpop.f32.mrb[62].mxu0  ;;  %v835_v12 = vpop.f32.mrb[62].mxu1 }
 0x177   :  { %v947_v13 = vadd.f32 %v1639_v17, %v876_v7  ;;  %v979_v14 = vadd.f32 %v1639_v17, %v908_v8  ;;  %v877_v16 = vmul.f32 %v1634_v15, %v707_v11  ;;  %v909_v18 = vmul.f32 %v1634_v15, %v835_v12  ;;  %v709_v19 = vpop.f32.mrb[63].mxu0  ;;  %v837_v20 = vpop.f32.mrb[63].mxu1 }
 0x179   :  { %v1011_v21 = vmax.f32 %v947_v13, 0.0  ;;  %v1043_v22 = vmax.f32 %v979_v14, 0.0  ;;  %v948_v23 = vadd.f32 %v1639_v17, %v877_v16  ;;  %v980_v24 = vadd.f32 %v1639_v17, %v909_v18 }
 0x17b   :  { %1076 = vst.msk [vmem:[%s2029_s4 + $0xf0] sm:$0xff] %vm1045_vm3, %v1011_v21  ;;  %1108 = vst.msk [vmem:[%s2029_s4 + $0x1f0] sm:$0xff] %vm1045_vm3, %v1043_v22  ;;  %v1012_v25 = vmax.f32 %v948_v23, 0.0  ;;  %v1044_v15 = vmax.f32 %v980_v24, 0.0 }
 0x17d   :  { %1077 = vst.msk [vmem:[%s2029_s4 + $0xf8] sm:$0xff] %vm1045_vm3, %v1012_v25  ;;  %1109 = vst.msk [vmem:[%s2029_s4 + $0x1f8] sm:$0xff] %vm1045_vm3, %v1044_v15 }

// kernel: convnet_forward.13
= control target key start
LH: loop header
LB: loop body
LE: loop exit
PB: predicated region body
PF: predicated region fallthrough
CT: control target
= control target key end

     0   :  { %vm308_vm0 = vcmask 261120   ;;  %vm527_vm1 = vcmask 64512   ;;  %s980_s1 = inlined_call_operand.vmem [shape: bf16[288,8], index: 1, kind: input, shape index: {}]   ;;  %s981_s0 = inlined_call_operand.vmem [shape: bf16[128,288], index: 0, kind: input, shape index: {}]   ;;  %s982_s2 = inlined_call_operand.vmem [shape: f32[128,8], index: 2, kind: output, shape index: {}]  }
   0x1   :  { %v708_v0 = vld [vmem:[%s980_s1 + $0x40] sm:$0xff]   ;;  %v710_v2 = vld [vmem:[%s980_s1 + $0x48] sm:$0xff]   ;;  %v712_v4 = vld [vmem:[%s980_s1 + $0x50] sm:$0xff]  }
   0x2   :  { %v709_v1 = vld [vmem:[%s980_s1] sm:$0xff]   ;;  %598 = vmatprep.subr.bf16.mxu0 %v708_v0  ;;  %692 = vmatprep.subr.bf16.mxu1 %v708_v0  ;;  %v711_v3 = vld [vmem:[%s980_s1 + $0x8] sm:$0xff]   ;;  %v713_v5 = vld [vmem:[%s980_s1 + $0x10] sm:$0xff]  }
   0x3   :  { %599 = vmatpush3.bf16.msra.mxu0 %v709_v1  ;;  %700 = vmatpush3.bf16.msra.mxu1 %v709_v1  ;;  %v714_v6 = vld [vmem:[%s980_s1 + $0x58] sm:$0xff]   ;;  %v716_v8 = vld [vmem:[%s980_s1 + $0x60] sm:$0xff]   ;;  %v718_v10 = vld [vmem:[%s980_s1 + $0x68] sm:$0xff]  }
   0x4   :  { %600 = vmatprep.subr.bf16.mxu0 %v710_v2  ;;  %693 = vmatprep.subr.bf16.mxu1 %v710_v2  ;;  %v715_v7 = vld [vmem:[%s980_s1 + $0x18] sm:$0xff]   ;;  %v717_v9 = vld [vmem:[%s980_s1 + $0x20] sm:$0xff]   ;;  %v719_v13 = vld [vmem:[%s980_s1 + $0x28] sm:$0xff]  }
   0x5   :  { %v726_v11 = vld [vmem:[%s981_s0 + $0x4] ss:$12 sps:$4 sm:$0xff]   ;;  %v729_v12 = vld [vmem:[%s981_s0 + $0x94] ss:$12 sps:$4 sm:$0xff]   ;;  %v722_v16 = vld [vmem:[%s980_s1 + $0x78] sm:$0xff]  }
   0x6   :  { %v720_v14 = vld [vmem:[%s980_s1 + $0x70] sm:$0xff]   ;;  %365 = vmatprep.mubr.bf16.mxu0 %v726_v11  ;;  %413 = vmatprep.mubr.bf16.mxu1 %v729_v12  ;;  %v723_v17 = vld [vmem:[%s980_s1 + $0x38] sm:$0xff]   ;;  %v724_v18 = vld [vmem:[%s981_s0] ss:$12 sps:$4 sm:$0xff]  }
   0x7   :  { %601 = vmatpush3.bf16.msra.mxu0 %v711_v3  ;;  %701 = vmatpush3.bf16.msra.mxu1 %v711_v3  ;;  %v721_v15 = vld [vmem:[%s980_s1 + $0x30] sm:$0xff]   ;;  %v730_v19 = vld [vmem:[%s980_s1 + $0x80] sm:$0xff]   ;;  %v731_v21 = vld [vmem:[%s981_s0 + $0x1c] ss:$12 sps:$4 sm:$0xff]  }
   0x8   :  { %602 = vmatprep.subr.bf16.mxu0 %v712_v4  ;;  %694 = vmatprep.subr.bf16.mxu1 %v712_v4  ;;  %v727_v20 = vld [vmem:[%s981_s0 + $0x90] ss:$12 sps:$4 sm:$0xff]   ;;  %v733_v22 = vld [vmem:[%s981_s0 + $0xac] ss:$12 sps:$4 sm:$0xff]   ;;  %v736_v25 = vld [vmem:[%s981_s0 + $0xa8] ss:$12 sps:$4 sm:$0xff]  }
   0x9   :  { %v737_v23 = vld [vmem:[%s980_s1 + $0x88] sm:$0xff]   ;;  %v735_v24 = vld [vmem:[%s981_s0 + $0x18] ss:$12 sps:$4 sm:$0xff]   ;;  %v738_v26 = vld [vmem:[%s981_s0 + $0x34] ss:$12 sps:$4 sm:$0xff]  }
   0xa   :  { %v740_v27 = vld [vmem:[%s981_s0 + $0x8] ss:$12 sps:$4 sm:$0xff]   ;;  %v741_v28 = vld [vmem:[%s981_s0 + $0x30] ss:$12 sps:$4 sm:$0xff]   ;;  %v742_v29 = vld [vmem:[%s981_s0 + $0x20] ss:$12 sps:$4 sm:$0xff]  }
   0xb   :  { %603 = vmatpush3.bf16.msra.mxu0 %v713_v5  ;;  %702 = vmatpush3.bf16.msra.mxu1 %v713_v5  ;;  %v743_v30 = vld [vmem:[%s981_s0 + $0x4c] ss:$12 sps:$4 sm:$0xff]   ;;  %v746_v32 = vld [vmem:[%s981_s0 + $0x48] ss:$12 sps:$4 sm:$0xff]   ;;  %v747_v33 = vld [vmem:[%s981_s0 + $0x50] ss:$12 sps:$4 sm:$0xff]  }
   0xc   :  { %604 = vmatprep.subr.bf16.mxu0 %v714_v6  ;;  %695 = vmatprep.subr.bf16.mxu1 %v714_v6  ;;  %v745_v31 = vld [vmem:[%s981_s0 + $0x38] ss:$12 sps:$4 sm:$0xff]   ;;  %v750_v35 = vld [vmem:[%s981_s0 + $0x68] ss:$12 sps:$4 sm:$0xff]   ;;  %v751_v36 = vld [vmem:[%s981_s0 + $0x60] ss:$12 sps:$4 sm:$0xff]  }
   0xd   :  { %v748_v34 = vld [vmem:[%s981_s0 + $0x64] ss:$12 sps:$4 sm:$0xff]   ;;  %v752_v37 = vld [vmem:[%s981_s0 + $0x80] ss:$12 sps:$4 sm:$0xff]   ;;  %v753_v38 = vld [vmem:[%s981_s0 + $0x7c] ss:$12 sps:$4 sm:$0xff]  }
   0xe   :  { %v755_v39 = vld [vmem:[%s981_s0 + $0x98] ss:$12 sps:$4 sm:$0xff]   ;;  %v757_v41 = vld [vmem:[%s981_s0 + $0xb0] ss:$12 sps:$4 sm:$0xff]  }
   0xf   :  { %605 = vmatpush3.bf16.msra.mxu0 %v715_v7  ;;  %703 = vmatpush3.bf16.msra.mxu1 %v715_v7  ;;  %v756_v40 = vld [vmem:[%s981_s0 + $0x78] ss:$12 sps:$4 sm:$0xff]  }
  0x10   :  { %606 = vmatprep.subr.bf16.mxu0 %v716_v8  ;;  %696 = vmatprep.subr.bf16.mxu1 %v716_v8 }
  0x13   :  { %607 = vmatpush3.bf16.msra.mxu0 %v717_v9  ;;  %704 = vmatpush3.bf16.msra.mxu1 %v717_v9 }
  0x14   :  { %608 = vmatprep.subr.bf16.mxu0 %v718_v10  ;;  %697 = vmatprep.subr.bf16.mxu1 %v718_v10 }
  0x17   :  { %609 = vmatpush3.bf16.msra.mxu0 %v719_v13  ;;  %705 = vmatpush3.bf16.msra.mxu1 %v719_v13 }
  0x18   :  { %610 = vmatprep.subr.bf16.mxu0 %v720_v14  ;;  %698 = vmatprep.subr.bf16.mxu1 %v720_v14 }
  0x1b   :  { %611 = vmatpush3.bf16.msra.mxu0 %v721_v15  ;;  %706 = vmatpush3.bf16.msra.mxu1 %v721_v15 }
  0x1c   :  { %612 = vmatprep.subr.bf16.mxu0 %v722_v16  ;;  %699 = vmatprep.subr.bf16.mxu1 %v722_v16 }
  0x1f   :  { %613 = vmatpush3.bf16.msra.mxu0 %v723_v17  ;;  %707 = vmatpush3.bf16.msra.mxu1 %v723_v17 }
  0x20   :  { %672 = vmatprep.subr.bf16.mxu1 %v730_v19 }
  0x22   :  { %366 = vmatmul.mubr.bf16.vlgmr.msra.gmra.mrb[0].mxu0 %v724_v18  ;;  %414 = vmatmul.mubr.bf16.vlgmr.msra.gmra.mrb[0].mxu1 %v727_v20 }
  0x23   :  { %673 = vmatpush3.bf16.msra.mxu1 %v730_v19  ;;  %373 = vmatprep.mubr.bf16.mxu0 %v731_v21 }
  0x24   :  { %421 = vmatprep.mubr.bf16.mxu1 %v733_v22  ;;  %674 = vmatprep.subr.bf16.mxu1 %v737_v23 }
  0x27   :  { %675 = vmatpush3.bf16.msra.mxu1 %v737_v23 }
  0x2a   :  { %374 = vmatmul.mubr.bf16.gmra.mrb[4].mxu0 %v735_v24  ;;  %422 = vmatmul.mubr.bf16.gmra.mrb[4].mxu1 %v736_v25 }
  0x2b   :  { %381 = vmatprep.mubr.bf16.mxu0 %v738_v26  ;;  %676 = vmatprep.mubr.msk.bf16.mxu1 %vm308_vm0, %v740_v27 }
  0x32   :  { %382 = vmatmul.mubr.bf16.gmra.mrb[8].mxu0 %v741_v28  ;;  %677 = vmatmul.mubr.msk.bf16.vlgmr.msra.gmra.mrb[8].mxu1 %vm308_vm0, %v742_v29 }
  0x33   :  { %389 = vmatprep.mubr.bf16.mxu0 %v743_v30  ;;  %680 = vmatprep.mubr.msk.bf16.mxu1 %vm308_vm0, %v745_v31 }
  0x3a   :  { %390 = vmatmul.mubr.bf16.gmra.mrb[12].mxu0 %v746_v32  ;;  %681 = vmatmul.mubr.msk.bf16.gmra.mrb[12].mxu1 %vm308_vm0, %v747_v33 }
  0x3b   :  { %397 = vmatprep.mubr.bf16.mxu0 %v748_v34  ;;  %684 = vmatprep.mubr.msk.bf16.mxu1 %vm308_vm0, %v750_v35 }
  0x42   :  { %398 = vmatmul.mubr.bf16.gmra.mrb[16].mxu0 %v751_v36  ;;  %685 = vmatmul.mubr.msk.bf16.gmra.mrb[16].mxu1 %vm308_vm0, %v752_v37 }
  0x43   :  { %405 = vmatprep.mubr.bf16.mxu0 %v753_v38  ;;  %688 = vmatprep.mubr.msk.bf16.mxu1 %vm308_vm0, %v755_v39 }
  0x4a   :  { %406 = vmatmul.mubr.bf16.gmra.mrb[20].mxu0 %v756_v40  ;;  %689 = vmatmul.mubr.msk.bf16.gmra.mrb[20].mxu1 %vm308_vm0, %v757_v41 }
  0xf5   :  { %v614_v42 = vpop.f32.mrb[0].mxu0  ;;  %v650_v43 = vpop.f32.mrb[0].mxu1 }
  0xf6   :  { %v615_v44 = vpop.f32.mrb[1].mxu0  ;;  %v651_v45 = vpop.f32.mrb[1].mxu1 }
  0xf7   :  { %v616_v46 = vadd.f32 %v615_v44, %v614_v42  ;;  %v907_v47 = vadd.f32 %v651_v45, %v650_v43  ;;  %v617_v48 = vpop.f32.mrb[2].mxu0  ;;  %v653_v49 = vpop.f32.mrb[2].mxu1 }
  0xf8   :  { %v618_v50 = vpop.f32.mrb[3].mxu0  ;;  %v654_v51 = vpop.f32.mrb[3].mxu1 }
  0xf9   :  { %v619_v52 = vadd.f32 %v618_v50, %v617_v48  ;;  %v909_v53 = vadd.f32 %v654_v51, %v653_v49 }
  0xfd   :  { %v620_v54 = vpop.f32.mrb[4].mxu0  ;;  %v656_v55 = vpop.f32.mrb[4].mxu1 }
  0xfe   :  { %v621_v56 = vpop.f32.mrb[5].mxu0  ;;  %v657_v57 = vpop.f32.mrb[5].mxu1 }
  0xff   :  { %v622_v58 = vadd.f32 %v621_v56, %v620_v54  ;;  %v658_v59 = vadd.f32 %v657_v57, %v656_v55  ;;  %v623_v60 = vpop.f32.mrb[6].mxu0  ;;  %v659_v61 = vpop.f32.mrb[6].mxu1 }
 0x100   :  { %v624_v62 = vpop.f32.mrb[7].mxu0  ;;  %v660_v63 = vpop.f32.mrb[7].mxu1 }
 0x101   :  { %v625_v0 = vadd.f32 %v624_v62, %v623_v60  ;;  %v911_v1 = vadd.f32 %v660_v63, %v659_v61 }
 0x105   :  { %v626_v2 = vpop.f32.mrb[8].mxu0  ;;  %v678_v3 = vpop.f32.mrb[8].mxu1 }
 0x106   :  { %v473_v4 = vadd.f32 %v678_v3, %v622_v58  ;;  %v627_v5 = vpop.f32.mrb[9].mxu0  ;;  %v464_v6 = vpop.f32.mrb[9].mxu1 }
 0x107   :  { %v628_v7 = vadd.f32 %v627_v5, %v626_v2  ;;  %v465_v8 = vadd.f32 %v616_v46, %v464_v6  ;;  %v629_v9 = vpop.f32.mrb[10].mxu0  ;;  %v679_v10 = vpop.f32.mrb[10].mxu1 }
 0x108   :  { %530 = vst.msk [vmem:[%s982_s2 + $0x10] sm:$0xff] %vm527_vm1, %v473_v4  ;;  %v476_v11 = vadd.f32 %v679_v10, %v625_v0  ;;  %v630_v12 = vpop.f32.mrb[11].mxu0  ;;  %v467_v13 = vpop.f32.mrb[11].mxu1 }
 0x109   :  { %528 = vst.msk [vmem:[%s982_s2] sm:$0xff] %vm527_vm1, %v465_v8  ;;  %v631_v14 = vadd.f32 %v630_v12, %v629_v9  ;;  %v468_v15 = vadd.f32 %v619_v52, %v467_v13 }
 0x10a   :  { %531 = vst.msk [vmem:[%s982_s2 + $0x18] sm:$0xff] %vm527_vm1, %v476_v11 }
 0x10b   :  { %529 = vst.msk [vmem:[%s982_s2 + $0x8] sm:$0xff] %vm527_vm1, %v468_v15 }
 0x10d   :  { %v632_v16 = vpop.f32.mrb[12].mxu0  ;;  %v682_v17 = vpop.f32.mrb[12].mxu1 }
 0x10e   :  { %v633_v18 = vpop.f32.mrb[13].mxu0  ;;  %v480_v19 = vpop.f32.mrb[13].mxu1 }
 0x10f   :  { %v634_v20 = vadd.f32 %v633_v18, %v632_v16  ;;  %v481_v21 = vadd.f32 %v628_v7, %v480_v19  ;;  %v635_v22 = vpop.f32.mrb[14].mxu0  ;;  %v683_v23 = vpop.f32.mrb[14].mxu1 }
 0x110   :  { %v636_v24 = vpop.f32.mrb[15].mxu0  ;;  %v483_v25 = vpop.f32.mrb[15].mxu1 }
 0x111   :  { %v489_v26 = vadd.f32 %v682_v17, %v634_v20  ;;  %532 = vst.msk [vmem:[%s982_s2 + $0x20] sm:$0xff] %vm527_vm1, %v481_v21  ;;  %v637_v27 = vadd.f32 %v636_v24, %v635_v22  ;;  %v484_v28 = vadd.f32 %v631_v14, %v483_v25 }
 0x113   :  { %534 = vst.msk [vmem:[%s982_s2 + $0x30] sm:$0xff] %vm527_vm1, %v489_v26  ;;  %v492_v29 = vadd.f32 %v683_v23, %v637_v27  ;;  %533 = vst.msk [vmem:[%s982_s2 + $0x28] sm:$0xff] %vm527_vm1, %v484_v28 }
 0x115   :  { %535 = vst.msk [vmem:[%s982_s2 + $0x38] sm:$0xff] %vm527_vm1, %v492_v29  ;;  %v638_v30 = vpop.f32.mrb[16].mxu0  ;;  %v686_v31 = vpop.f32.mrb[16].mxu1 }
 0x116   :  { %v639_v32 = vpop.f32.mrb[17].mxu0  ;;  %v496_v33 = vpop.f32.mrb[17].mxu1 }
 0x117   :  { %v640_v34 = vadd.f32 %v639_v32, %v638_v30  ;;  %v641_v35 = vpop.f32.mrb[18].mxu0  ;;  %v687_v36 = vpop.f32.mrb[18].mxu1 }
 0x118   :  { %v642_v37 = vpop.f32.mrb[19].mxu0  ;;  %v499_v38 = vpop.f32.mrb[19].mxu1 }
 0x119   :  { %v497_v39 = vadd.f32 %v640_v34, %v496_v33  ;;  %v643_v40 = vadd.f32 %v642_v37, %v641_v35 }
 0x11b   :  { %536 = vst.msk [vmem:[%s982_s2 + $0x40] sm:$0xff] %vm527_vm1, %v497_v39  ;;  %v500_v41 = vadd.f32 %v643_v40, %v499_v38 }
 0x11d   :  { %537 = vst.msk [vmem:[%s982_s2 + $0x48] sm:$0xff] %vm527_vm1, %v500_v41  ;;  %v644_v42 = vpop.f32.mrb[20].mxu0  ;;  %v690_v43 = vpop.f32.mrb[20].mxu1 }
 0x11e   :  { %v521_v44 = vadd.f32 %v690_v43, %v658_v59  ;;  %v645_v45 = vpop.f32.mrb[21].mxu0  ;;  %v512_v46 = vpop.f32.mrb[21].mxu1 }
 0x11f   :  { %v646_v48 = vadd.f32 %v645_v45, %v644_v42  ;;  %v513_v49 = vadd.f32 %v907_v47, %v512_v46  ;;  %v647_v50 = vpop.f32.mrb[22].mxu0  ;;  %v691_v51 = vpop.f32.mrb[22].mxu1 }
 0x120   :  { %542 = vst.msk [vmem:[%s982_s2 + $0x70] sm:$0xff] %vm527_vm1, %v521_v44  ;;  %v524_v52 = vadd.f32 %v691_v51, %v911_v1  ;;  %v648_v54 = vpop.f32.mrb[23].mxu0  ;;  %v515_v55 = vpop.f32.mrb[23].mxu1 }
 0x121   :  { %v505_v56 = vadd.f32 %v686_v31, %v646_v48  ;;  %540 = vst.msk [vmem:[%s982_s2 + $0x60] sm:$0xff] %vm527_vm1, %v513_v49  ;;  %v649_v57 = vadd.f32 %v648_v54, %v647_v50  ;;  %v516_v47 = vadd.f32 %v909_v53, %v515_v55 }
 0x122   :  { %543 = vst.msk [vmem:[%s982_s2 + $0x78] sm:$0xff] %vm527_vm1, %v524_v52 }
 0x123   :  { %538 = vst.msk [vmem:[%s982_s2 + $0x50] sm:$0xff] %vm527_vm1, %v505_v56  ;;  %v508_v58 = vadd.f32 %v687_v36, %v649_v57  ;;  %541 = vst.msk [vmem:[%s982_s2 + $0x68] sm:$0xff] %vm527_vm1, %v516_v47 }
 0x125   :  { %539 = vst.msk [vmem:[%s982_s2 + $0x58] sm:$0xff] %vm527_vm1, %v508_v58 }

// kernel: convnet_forward.14
= control target key start
LH: loop header
LB: loop body
LE: loop exit
PB: predicated region body
PF: predicated region fallthrough
CT: control target
= control target key end

     0   :  { %vm126_vm0 = vcmask 261120   ;;  %vm374_vm1 = vcmask 257024   ;;  %s722_s1 = inlined_call_operand.vmem [shape: bf16[32,32], index: 1, kind: input, shape index: {}]   ;;  %s723_s0 = inlined_call_operand.vmem [shape: f32[128,32], index: 0, kind: input, shape index: {}]   ;;  %s724_s2 = inlined_call_operand.vmem [shape: f32[1,32], index: 2, kind: input, shape index: {}]   ;;  %s725_s3 = inlined_call_operand.vmem [shape: f32[1,32], index: 3, kind: input, shape index: {}]   ;;  %s726_s4 = inlined_call_operand.vmem [shape: f32[1,32], index: 4, kind: input, shape index: {}]   ;;  %s727_s5 = inlined_call_operand.vmem [shape: f32[1,32], index: 5, kind: input, shape index: {}]   ;;  %s728_s6 = inlined_call_operand.vmem [shape: bf16[128,32], index: 6, kind: output, shape index: {}]  }
   0x1   :  { %v475_v0 = vld [vmem:[%s722_s1] sm:$0xff]   ;;  %v476_v1 = vld [vmem:[%s722_s1 + $0x8] sm:$0xff]   ;;  %v26_v12 = vld [vmem:[%s723_s0 + $0x10] sm:$0xff] }
   0x2   :  { %451 = vmatprep.subr.bf16.mxu0 %v475_v0  ;;  %471 = vmatprep.subr.bf16.mxu1 %v475_v0  ;;  %v24_v2 = vld [vmem:[%s723_s0] sm:$0xff]  ;;  %v25_v3 = vld [vmem:[%s723_s0 + $0x8] sm:$0xff]  ;;  %v27_v13 = vld [vmem:[%s723_s0 + $0x18] sm:$0xff] }
   0x3   :  { %v527_v4 = vld [vmem:[%s724_s2] ss:$0 sm:$0xff]  ;;  %452 = vmatpush3.bf16.msra.mxu0 %v475_v0  ;;  %473 = vmatpush3.bf16.msra.mxu1 %v475_v0  ;;  %v33_v9 = vld [vmem:[%s723_s0 + $0x48] sm:$0xff]  ;;  %v34_v14 = vld [vmem:[%s723_s0 + $0x50] sm:$0xff] }
   0x4   :  { %v47_v5 = vmul.f32 %v527_v4, %v24_v2  ;;  %v48_v6 = vmul.f32 %v527_v4, %v25_v3  ;;  %v534_v7 = vld [vmem:[%s725_s3] ss:$0 sm:$0xff]  ;;  %453 = vmatprep.subr.bf16.mxu0 %v476_v1  ;;  %472 = vmatprep.subr.bf16.mxu1 %v476_v1  ;;  %v56_v11 = vmul.f32 %v527_v4, %v33_v9  ;;  %v35_v19 = vld [vmem:[%s723_s0 + $0x58] sm:$0xff]  ;;  %v29_v29 = vld [vmem:[%s723_s0 + $0x28] sm:$0xff] }
   0x5   :  { %v32_v8 = vld [vmem:[%s723_s0 + $0x40] sm:$0xff]  ;;  %v49_v17 = vmul.f32 %v527_v4, %v26_v12  ;;  %v50_v18 = vmul.f32 %v527_v4, %v27_v13  ;;  %v57_v22 = vmul.f32 %v527_v4, %v34_v14  ;;  %v58_v23 = vmul.f32 %v527_v4, %v35_v19  ;;  %v37_v35 = vld [vmem:[%s723_s0 + $0x68] sm:$0xff]  ;;  %v30_v40 = vld [vmem:[%s723_s0 + $0x30] sm:$0xff] }
   0x6   :  { %v55_v10 = vmul.f32 %v527_v4, %v32_v8  ;;  %v70_v15 = vadd.f32 %v534_v7, %v47_v5  ;;  %v71_v16 = vadd.f32 %v534_v7, %v48_v6  ;;  %v79_v21 = vadd.f32 %v534_v7, %v56_v11  ;;  %v28_v24 = vld [vmem:[%s723_s0 + $0x20] sm:$0xff]  ;;  %v31_v41 = vld [vmem:[%s723_s0 + $0x38] sm:$0xff]  ;;  %v38_v46 = vld [vmem:[%s723_s0 + $0x70] sm:$0xff] }
   0x7   :  { %454 = vmatpush3.bf16.msra.mxu0 %v476_v1  ;;  %474 = vmatpush3.bf16.msra.mxu1 %v476_v1  ;;  %v72_v27 = vadd.f32 %v534_v7, %v49_v17  ;;  %v73_v28 = vadd.f32 %v534_v7, %v50_v18  ;;  %v80_v32 = vadd.f32 %v534_v7, %v57_v22  ;;  %v36_v34 = vld [vmem:[%s723_s0 + $0x60] sm:$0xff]  ;;  %v39_v51 = vld [vmem:[%s723_s0 + $0x78] sm:$0xff] }
   0x8   :  { %v78_v20 = vadd.f32 %v534_v7, %v55_v10  ;;  %v86_v25 = vmax.f32 %v70_v15, 0.0  ;;  %v87_v26 = vmax.f32 %v71_v16, 0.0  ;;  %v95_v31 = vmax.f32 %v79_v21, 0.0 }
   0x9   :  { %v81_v33 = vadd.f32 %v534_v7, %v58_v23  ;;  %v88_v37 = vmax.f32 %v72_v27, 0.0  ;;  %v89_v38 = vmax.f32 %v73_v28, 0.0  ;;  %v51_v39 = vmul.f32 %v527_v4, %v28_v24 }
   0xa   :  { %v94_v30 = vmax.f32 %v78_v20, 0.0  ;;  %v102_v36 = vpack.c.bf16 %v87_v26, %v86_v25  ;;  %v96_v43 = vmax.f32 %v80_v32, 0.0  ;;  %v52_v45 = vmul.f32 %v527_v4, %v29_v29 }
   0xb   :  { %v97_v44 = vmax.f32 %v81_v33, 0.0  ;;  %v103_v47 = vpack.c.bf16 %v89_v38, %v88_v37  ;;  %v74_v48 = vadd.f32 %v534_v7, %v51_v39  ;;  %v59_v49 = vmul.f32 %v527_v4, %v36_v34 }
   0xc   :  { %v106_v42 = vpack.c.bf16 %v95_v31, %v94_v30  ;;  %455 = vmatprep.mubr.msk.bf16.mxu0 %vm126_vm0, %v102_v36  ;;  %v60_v50 = vmul.f32 %v527_v4, %v37_v35  ;;  %v75_v53 = vadd.f32 %v534_v7, %v52_v45  ;;  %v53_v54 = vmul.f32 %v527_v4, %v30_v40 }
   0xd   :  { %v107_v52 = vpack.c.bf16 %v97_v44, %v96_v43  ;;  %v54_v55 = vmul.f32 %v527_v4, %v31_v41  ;;  %456 = vmatmul.mubr.msk.bf16.vlgmr.msra.gmra.mrb[0].mxu0 %vm126_vm0, %v103_v47  ;;  %v90_v56 = vmax.f32 %v74_v48, 0.0  ;;  %v82_v57 = vadd.f32 %v534_v7, %v59_v49 }
   0xe   :  { %463 = vmatprep.mubr.msk.bf16.mxu1 %vm126_vm0, %v106_v42  ;;  %v83_v58 = vadd.f32 %v534_v7, %v60_v50  ;;  %v61_v59 = vmul.f32 %v527_v4, %v38_v46  ;;  %v91_v60 = vmax.f32 %v75_v53, 0.0  ;;  %v76_v61 = vadd.f32 %v534_v7, %v53_v54 }
   0xf   :  { %464 = vmatmul.mubr.msk.bf16.vlgmr.msra.gmra.mrb[0].mxu1 %vm126_vm0, %v107_v52  ;;  %v77_v62 = vadd.f32 %v534_v7, %v54_v55  ;;  %v62_v63 = vmul.f32 %v527_v4, %v39_v51  ;;  %v98_v0 = vmax.f32 %v82_v57, 0.0  ;;  %v619_v4 = vld [vmem:[%s726_s4] ss:$0 sm:$0xff] }
  0x10   :  { %v99_v1 = vmax.f32 %v83_v58, 0.0  ;;  %v84_v2 = vadd.f32 %v534_v7, %v61_v59  ;;  %v104_v3 = vpack.c.bf16 %v91_v60, %v90_v56  ;;  %v92_v5 = vmax.f32 %v76_v61, 0.0 }
  0x11   :  { %v93_v6 = vmax.f32 %v77_v62, 0.0  ;;  %v85_v8 = vadd.f32 %v534_v7, %v62_v63  ;;  %v624_v7 = vld [vmem:[%s727_s5] ss:$0 sm:$0xff] }
  0x12   :  { %v108_v9 = vpack.c.bf16 %v99_v1, %v98_v0  ;;  %v100_v10 = vmax.f32 %v84_v2, 0.0  ;;  %459 = vmatprep.mubr.msk.bf16.mxu0 %vm126_vm0, %v104_v3 }
  0x13   :  { %v105_v11 = vpack.c.bf16 %v93_v6, %v92_v5  ;;  %v101_v12 = vmax.f32 %v85_v8, 0.0 }
  0x14   :  { %467 = vmatprep.mubr.msk.bf16.mxu1 %vm126_vm0, %v108_v9 }
  0x15   :  { %v109_v13 = vpack.c.bf16 %v101_v12, %v100_v10  ;;  %460 = vmatmul.mubr.msk.bf16.gmra.mrb[4].mxu0 %vm126_vm0, %v105_v11 }
  0x17   :  { %468 = vmatmul.mubr.msk.bf16.gmra.mrb[4].mxu1 %vm126_vm0, %v109_v13 }
  0xe0   :  { %v457_v14 = vpop.f32.mrb[0].mxu0 }
  0xe1   :  { %v257_v15 = vmul.f32 %v457_v14, %v619_v4  ;;  %v185_v17 = vpop.f32.mrb[1].mxu0 }
  0xe2   :  { %v465_v16 = vpop.f32.mrb[0].mxu1  ;;  %v255_v19 = vmul.f32 %v619_v4, %v185_v17  ;;  %v458_v21 = vpop.f32.mrb[2].mxu0 }
  0xe3   :  { %v265_v18 = vmul.f32 %v465_v16, %v619_v4  ;;  %v217_v20 = vpop.f32.mrb[1].mxu1  ;;  %v280_v22 = vadd.f32 %v624_v7, %v257_v15  ;;  %v258_v24 = vmul.f32 %v458_v21, %v619_v4  ;;  %v188_v26 = vpop.f32.mrb[3].mxu0 }
  0xe4   :  { %v263_v23 = vmul.f32 %v619_v4, %v217_v20  ;;  %v466_v25 = vpop.f32.mrb[2].mxu1  ;;  %v278_v28 = vadd.f32 %v624_v7, %v255_v19  ;;  %v256_v30 = vmul.f32 %v619_v4, %v188_v26 }
  0xe5   :  { %v288_v27 = vadd.f32 %v624_v7, %v265_v18  ;;  %v266_v29 = vmul.f32 %v466_v25, %v619_v4  ;;  %v220_v31 = vpop.f32.mrb[3].mxu1  ;;  %v296_v32 = vmax.f32 %v280_v22, 0.0  ;;  %v281_v34 = vadd.f32 %v624_v7, %v258_v24 }
  0xe6   :  { %v286_v33 = vadd.f32 %v624_v7, %v263_v23  ;;  %v264_v35 = vmul.f32 %v619_v4, %v220_v31  ;;  %v294_v37 = vmax.f32 %v278_v28, 0.0  ;;  %v279_v39 = vadd.f32 %v624_v7, %v256_v30 }
  0xe7   :  { %v304_v36 = vmax.f32 %v288_v27, 0.0  ;;  %v289_v38 = vadd.f32 %v624_v7, %v266_v29  ;;  %v427_v40 = vpack.c.bf16 %v296_v32, %v296_v32  ;;  %v297_v42 = vmax.f32 %v281_v34, 0.0 }
  0xe8   :  { %v302_v41 = vmax.f32 %v286_v33, 0.0  ;;  %v287_v43 = vadd.f32 %v624_v7, %v264_v35  ;;  %v425_v45 = vpack.c.bf16 %v294_v37, %v294_v37  ;;  %v295_v47 = vmax.f32 %v279_v39, 0.0  ;;  %v461_v48 = vpop.f32.mrb[4].mxu0 }
  0xe9   :  { %v435_v44 = vpack.c.bf16 %v304_v36, %v304_v36  ;;  %v305_v46 = vmax.f32 %v289_v38, 0.0  ;;  %377 = vst.msk [vmem:[%s728_s6 + $0x8] sm:$0xf] %vm374_vm1, %v427_v40  ;;  %v428_v50 = vpack.c.bf16 %v297_v42, %v297_v42  ;;  %v261_v52 = vmul.f32 %v461_v48, %v619_v4  ;;  %v201_v54 = vpop.f32.mrb[5].mxu0 }
  0xea   :  { %v433_v49 = vpack.c.bf16 %v302_v41, %v302_v41  ;;  %v303_v51 = vmax.f32 %v287_v43, 0.0  ;;  %v469_v53 = vpop.f32.mrb[4].mxu1  ;;  %375 = vst.msk [vmem:[%s728_s6] sm:$0xf] %vm374_vm1, %v425_v45  ;;  %v426_v56 = vpack.c.bf16 %v295_v47, %v295_v47  ;;  %v259_v58 = vmul.f32 %v619_v4, %v201_v54  ;;  %v462_v60 = vpop.f32.mrb[6].mxu0 }
  0xeb   :  { %385 = vst.msk [vmem:[%s728_s6 + $0x28] sm:$0xf] %vm374_vm1, %v435_v44  ;;  %v436_v55 = vpack.c.bf16 %v305_v46, %v305_v46  ;;  %v269_v57 = vmul.f32 %v469_v53, %v619_v4  ;;  %v233_v59 = vpop.f32.mrb[5].mxu1  ;;  %378 = vst.msk [vmem:[%s728_s6 + $0xc] sm:$0xf] %vm374_vm1, %v428_v50  ;;  %v284_v62 = vadd.f32 %v624_v7, %v261_v52  ;;  %v204_v2 = vpop.f32.mrb[7].mxu0 }
  0xec   :  { %383 = vst.msk [vmem:[%s728_s6 + $0x20] sm:$0xf] %vm374_vm1, %v433_v49  ;;  %v434_v61 = vpack.c.bf16 %v303_v51, %v303_v51  ;;  %v267_v63 = vmul.f32 %v619_v4, %v233_v59  ;;  %v262_v0 = vmul.f32 %v462_v60, %v619_v4  ;;  %v470_v1 = vpop.f32.mrb[6].mxu1  ;;  %376 = vst.msk [vmem:[%s728_s6 + $0x4] sm:$0xf] %vm374_vm1, %v426_v56 }
  0xed   :  { %386 = vst.msk [vmem:[%s728_s6 + $0x2c] sm:$0xf] %vm374_vm1, %v436_v55  ;;  %v292_v3 = vadd.f32 %v624_v7, %v269_v57  ;;  %v282_v5 = vadd.f32 %v624_v7, %v259_v58  ;;  %v270_v6 = vmul.f32 %v470_v1, %v619_v4  ;;  %v260_v8 = vmul.f32 %v619_v4, %v204_v2  ;;  %v236_v9 = vpop.f32.mrb[7].mxu1 }
  0xee   :  { %384 = vst.msk [vmem:[%s728_s6 + $0x24] sm:$0xf] %vm374_vm1, %v434_v61  ;;  %v300_v10 = vmax.f32 %v284_v62, 0.0  ;;  %v290_v11 = vadd.f32 %v624_v7, %v267_v63  ;;  %v285_v12 = vadd.f32 %v624_v7, %v262_v0  ;;  %v268_v13 = vmul.f32 %v619_v4, %v236_v9 }
  0xef   :  { %v308_v14 = vmax.f32 %v292_v3, 0.0  ;;  %v298_v15 = vmax.f32 %v282_v5, 0.0  ;;  %v293_v16 = vadd.f32 %v624_v7, %v270_v6  ;;  %v283_v17 = vadd.f32 %v624_v7, %v260_v8 }
  0xf0   :  { %v431_v18 = vpack.c.bf16 %v300_v10, %v300_v10  ;;  %v306_v19 = vmax.f32 %v290_v11, 0.0  ;;  %v301_v20 = vmax.f32 %v285_v12, 0.0  ;;  %v291_v21 = vadd.f32 %v624_v7, %v268_v13 }
  0xf1   :  { %v439_v22 = vpack.c.bf16 %v308_v14, %v308_v14  ;;  %v429_v23 = vpack.c.bf16 %v298_v15, %v298_v15  ;;  %v309_v24 = vmax.f32 %v293_v16, 0.0  ;;  %v299_v25 = vmax.f32 %v283_v17, 0.0 }
  0xf2   :  { %381 = vst.msk [vmem:[%s728_s6 + $0x18] sm:$0xf] %vm374_vm1, %v431_v18  ;;  %v437_v4 = vpack.c.bf16 %v306_v19, %v306_v19  ;;  %v432_v26 = vpack.c.bf16 %v301_v20, %v301_v20  ;;  %v307_v27 = vmax.f32 %v291_v21, 0.0 }
  0xf3   :  { %389 = vst.msk [vmem:[%s728_s6 + $0x38] sm:$0xf] %vm374_vm1, %v439_v22  ;;  %379 = vst.msk [vmem:[%s728_s6 + $0x10] sm:$0xf] %vm374_vm1, %v429_v23  ;;  %v440_v7 = vpack.c.bf16 %v309_v24, %v309_v24  ;;  %v430_v28 = vpack.c.bf16 %v299_v25, %v299_v25 }
  0xf4   :  { %387 = vst.msk [vmem:[%s728_s6 + $0x30] sm:$0xf] %vm374_vm1, %v437_v4  ;;  %382 = vst.msk [vmem:[%s728_s6 + $0x1c] sm:$0xf] %vm374_vm1, %v432_v26  ;;  %v438_v29 = vpack.c.bf16 %v307_v27, %v307_v27 }
  0xf5   :  { %390 = vst.msk [vmem:[%s728_s6 + $0x3c] sm:$0xf] %vm374_vm1, %v440_v7  ;;  %380 = vst.msk [vmem:[%s728_s6 + $0x14] sm:$0xf] %vm374_vm1, %v430_v28 }
  0xf6   :  { %388 = vst.msk [vmem:[%s728_s6 + $0x34] sm:$0xf] %vm374_vm1, %v438_v29 }

// kernel: convnet_forward.16
= control target key start
LH: loop header
LB: loop body
LE: loop exit
PB: predicated region body
PF: predicated region fallthrough
CT: control target
= control target key end

     0   :  { %vm149_vm0 = vcmask 1043456   ;;  %vm124_vm1 = vcmask 326656   ;;  %vm250_vm2 = vcmask 162816   ;;  %s527_s1 = inlined_call_operand.vmem [shape: bf16[40,20], index: 1, kind: input, shape index: {}]   ;;  %s528_s0 = inlined_call_operand.vmem [shape: f32[128,40], index: 0, kind: input, shape index: {}]   ;;  %s529_s2 = inlined_call_operand.vmem [shape: f32[1,40], index: 2, kind: input, shape index: {}]   ;;  %s530_s3 = inlined_call_operand.vmem [shape: f32[1,40], index: 3, kind: input, shape index: {}]   ;;  %s531_s4 = inlined_call_operand.vmem [shape: f32[128,20], index: 4, kind: output, shape index: {}]  }
   0x1   :  { %v325_v0 = vld [vmem:[%s527_s1] sm:$0xff]   ;;  %v326_v1 = vld [vmem:[%s527_s1 + $0x8] sm:$0xff]   ;;  %v327_v2 = vld [vmem:[%s527_s1 + $0x10] ss:$0 sps:$4 sm:$0xff]  }
   0x2   :  { %295 = vmatprep.subr.bf16.mxu0 %v325_v0  ;;  %317 = vmatprep.subr.bf16.mxu1 %v325_v0  ;;  %v18_v3 = vld [vmem:[%s528_s0] sm:$0xff]  ;;  %v19_v4 = vld [vmem:[%s528_s0 + $0x8] sm:$0xff]  ;;  %v20_v11 = vld [vmem:[%s528_s0 + $0x10] sm:$0xff]  ;;  %v151_v22 = vsel %vm149_vm0, %v327_v2, 0 }
   0x3   :  { %296 = vmatpush3.bf16.msra.mxu0 %v325_v0  ;;  %320 = vmatpush3.bf16.msra.mxu1 %v325_v0  ;;  %v371_v5 = vld [vmem:[%s529_s2] ss:$0 sm:$0xff]  ;;  %v27_v10 = vld [vmem:[%s528_s0 + $0x48] sm:$0xff]  ;;  %v21_v14 = vld [vmem:[%s528_s0 + $0x18] sm:$0xff] }
   0x4   :  { %v376_v6 = vld [vmem:[%s530_s3] ss:$0 sm:$0xff]  ;;  %297 = vmatprep.subr.bf16.mxu0 %v326_v1  ;;  %318 = vmatprep.subr.bf16.mxu1 %v326_v1  ;;  %v41_v7 = vmul.f32 %v371_v5, %v18_v3  ;;  %v42_v8 = vmul.f32 %v371_v5, %v19_v4  ;;  %v50_v13 = vmul.f32 %v371_v5, %v27_v10  ;;  %v28_v16 = vld [vmem:[%s528_s0 + $0x50] sm:$0xff]  ;;  %v29_v17 = vld [vmem:[%s528_s0 + $0x58] sm:$0xff] }
   0x5   :  { %v26_v9 = vld [vmem:[%s528_s0 + $0x40] sm:$0xff]  ;;  %v43_v15 = vmul.f32 %v371_v5, %v20_v11  ;;  %v44_v20 = vmul.f32 %v371_v5, %v21_v14  ;;  %v51_v21 = vmul.f32 %v371_v5, %v28_v16  ;;  %v52_v30 = vmul.f32 %v371_v5, %v29_v17  ;;  %v23_v31 = vld [vmem:[%s528_s0 + $0x28] sm:$0xff]  ;;  %v24_v42 = vld [vmem:[%s528_s0 + $0x30] sm:$0xff] }
   0x6   :  { %v49_v12 = vmul.f32 %v371_v5, %v26_v9  ;;  %v64_v18 = vadd.f32 %v376_v6, %v41_v7  ;;  %v65_v19 = vadd.f32 %v376_v6, %v42_v8  ;;  %v73_v24 = vadd.f32 %v376_v6, %v50_v13  ;;  %v22_v26 = vld [vmem:[%s528_s0 + $0x20] sm:$0xff]  ;;  %v31_v37 = vld [vmem:[%s528_s0 + $0x68] sm:$0xff]  ;;  %v25_v43 = vld [vmem:[%s528_s0 + $0x38] sm:$0xff] }
   0x7   :  { %298 = vmatpush3.bf16.msra.mxu0 %v326_v1  ;;  %321 = vmatpush3.bf16.msra.mxu1 %v326_v1  ;;  %v66_v25 = vadd.f32 %v376_v6, %v43_v15  ;;  %v67_v29 = vadd.f32 %v376_v6, %v44_v20  ;;  %v30_v32 = vld [vmem:[%s528_s0 + $0x60] sm:$0xff]  ;;  %v74_v36 = vadd.f32 %v376_v6, %v51_v21  ;;  %v32_v48 = vld [vmem:[%s528_s0 + $0x70] sm:$0xff]  ;;  %v33_v57 = vld [vmem:[%s528_s0 + $0x78] sm:$0xff] }
   0x8   :  { %v72_v23 = vadd.f32 %v376_v6, %v49_v12  ;;  %323 = vmatprep.subr.msk.bf16.mxu0 %vm149_vm0, %v327_v2  ;;  %324 = vmatprep.subr.msk.bf16.mxu1 %vm149_vm0, %v327_v2  ;;  %v80_v27 = vmax.f32 %v64_v18, 0.0  ;;  %v81_v28 = vmax.f32 %v65_v19, 0.0  ;;  %v89_v34 = vmax.f32 %v73_v24, 0.0 }
   0x9   :  { %v82_v35 = vmax.f32 %v66_v25, 0.0  ;;  %v83_v39 = vmax.f32 %v67_v29, 0.0  ;;  %v75_v40 = vadd.f32 %v376_v6, %v52_v30  ;;  %v45_v41 = vmul.f32 %v371_v5, %v22_v26 }
   0xa   :  { %v88_v33 = vmax.f32 %v72_v23, 0.0  ;;  %v96_v38 = vpack.c.bf16 %v81_v28, %v80_v27  ;;  %v90_v45 = vmax.f32 %v74_v36, 0.0  ;;  %v46_v46 = vmul.f32 %v371_v5, %v23_v31 }
   0xb   :  { %300 = vmatpush3.bf16.msra.mxu0 %v151_v22  ;;  %322 = vmatpush3.bf16.msra.mxu1 %v151_v22  ;;  %v53_v47 = vmul.f32 %v371_v5, %v30_v32  ;;  %v97_v49 = vpack.c.bf16 %v83_v39, %v82_v35  ;;  %v91_v50 = vmax.f32 %v75_v40, 0.0  ;;  %v68_v51 = vadd.f32 %v376_v6, %v45_v41 }
   0xc   :  { %v100_v44 = vpack.c.bf16 %v89_v34, %v88_v33  ;;  %301 = vmatprep.mubr.msk.bf16.mxu0 %vm124_vm1, %v96_v38  ;;  %v54_v52 = vmul.f32 %v371_v5, %v31_v37  ;;  %v69_v53 = vadd.f32 %v376_v6, %v46_v46  ;;  %v47_v55 = vmul.f32 %v371_v5, %v24_v42 }
   0xd   :  { %v76_v54 = vadd.f32 %v376_v6, %v53_v47  ;;  %v48_v56 = vmul.f32 %v371_v5, %v25_v43  ;;  %v101_v58 = vpack.c.bf16 %v91_v50, %v90_v45  ;;  %v84_v59 = vmax.f32 %v68_v51, 0.0 }
   0xe   :  { %309 = vmatprep.mubr.msk.bf16.mxu1 %vm124_vm1, %v100_v44  ;;  %302 = vmatmul.mubr.msk.bf16.vlgmr.msra.gmra.mrb[0].mxu0 %vm124_vm1, %v97_v49  ;;  %v77_v60 = vadd.f32 %v376_v6, %v54_v52  ;;  %v55_v61 = vmul.f32 %v371_v5, %v32_v48  ;;  %v85_v62 = vmax.f32 %v69_v53, 0.0  ;;  %v70_v0 = vadd.f32 %v376_v6, %v47_v55 }
   0xf   :  { %v92_v63 = vmax.f32 %v76_v54, 0.0  ;;  %v71_v1 = vadd.f32 %v376_v6, %v48_v56  ;;  %310 = vmatmul.mubr.msk.bf16.vlgmr.msra.gmra.mrb[0].mxu1 %vm124_vm1, %v101_v58  ;;  %v56_v3 = vmul.f32 %v371_v5, %v33_v57 }
  0x10   :  { %v93_v2 = vmax.f32 %v77_v60, 0.0  ;;  %v78_v4 = vadd.f32 %v376_v6, %v55_v61  ;;  %v98_v7 = vpack.c.bf16 %v85_v62, %v84_v59  ;;  %v86_v8 = vmax.f32 %v70_v0, 0.0 }
  0x11   :  { %v87_v9 = vmax.f32 %v71_v1, 0.0  ;;  %v79_v11 = vadd.f32 %v376_v6, %v56_v3 }
  0x12   :  { %v102_v10 = vpack.c.bf16 %v93_v2, %v92_v63  ;;  %v94_v12 = vmax.f32 %v78_v4, 0.0  ;;  %305 = vmatprep.mubr.msk.bf16.mxu0 %vm124_vm1, %v98_v7 }
  0x13   :  { %v99_v13 = vpack.c.bf16 %v87_v9, %v86_v8  ;;  %v95_v14 = vmax.f32 %v79_v11, 0.0 }
  0x14   :  { %313 = vmatprep.mubr.msk.bf16.mxu1 %vm124_vm1, %v102_v10 }
  0x15   :  { %v103_v15 = vpack.c.bf16 %v95_v14, %v94_v12 }
  0x16   :  { %306 = vmatmul.mubr.msk.bf16.gmra.mrb[4].mxu0 %vm124_vm1, %v99_v13 }
  0x17   :  { %314 = vmatmul.mubr.msk.bf16.gmra.mrb[4].mxu1 %vm124_vm1, %v103_v15 }
  0xe1   :  { %v303_v5 = vpop.f32.mrb[0].mxu0 }
  0xe2   :  { %253 = vst.msk [vmem:[%s531_s4 + $0x10] sm:$0xff] %vm250_vm2, %v303_v5  ;;  %v187_v6 = vpop.f32.mrb[1].mxu0  ;;  %v311_v16 = vpop.f32.mrb[0].mxu1 }
  0xe3   :  { %251 = vst.msk [vmem:[%s531_s4] sm:$0xff] %vm250_vm2, %v187_v6  ;;  %v304_v17 = vpop.f32.mrb[2].mxu0  ;;  %261 = vst.msk [vmem:[%s531_s4 + $0x50] sm:$0xff] %vm250_vm2, %v311_v16  ;;  %v219_v18 = vpop.f32.mrb[1].mxu1 }
  0xe4   :  { %254 = vst.msk [vmem:[%s531_s4 + $0x18] sm:$0xff] %vm250_vm2, %v304_v17  ;;  %v190_v19 = vpop.f32.mrb[3].mxu0  ;;  %259 = vst.msk [vmem:[%s531_s4 + $0x40] sm:$0xff] %vm250_vm2, %v219_v18  ;;  %v312_v20 = vpop.f32.mrb[2].mxu1 }
  0xe5   :  { %252 = vst.msk [vmem:[%s531_s4 + $0x8] sm:$0xff] %vm250_vm2, %v190_v19  ;;  %262 = vst.msk [vmem:[%s531_s4 + $0x58] sm:$0xff] %vm250_vm2, %v312_v20  ;;  %v222_v21 = vpop.f32.mrb[3].mxu1 }
  0xe6   :  { %260 = vst.msk [vmem:[%s531_s4 + $0x48] sm:$0xff] %vm250_vm2, %v222_v21 }
  0xe9   :  { %v307_v22 = vpop.f32.mrb[4].mxu0 }
  0xea   :  { %257 = vst.msk [vmem:[%s531_s4 + $0x30] sm:$0xff] %vm250_vm2, %v307_v22  ;;  %v203_v23 = vpop.f32.mrb[5].mxu0  ;;  %v315_v24 = vpop.f32.mrb[4].mxu1 }
  0xeb   :  { %255 = vst.msk [vmem:[%s531_s4 + $0x20] sm:$0xff] %vm250_vm2, %v203_v23  ;;  %v308_v25 = vpop.f32.mrb[6].mxu0  ;;  %265 = vst.msk [vmem:[%s531_s4 + $0x70] sm:$0xff] %vm250_vm2, %v315_v24  ;;  %v235_v26 = vpop.f32.mrb[5].mxu1 }
  0xec   :  { %258 = vst.msk [vmem:[%s531_s4 + $0x38] sm:$0xff] %vm250_vm2, %v308_v25  ;;  %v206_v27 = vpop.f32.mrb[7].mxu0  ;;  %263 = vst.msk [vmem:[%s531_s4 + $0x60] sm:$0xff] %vm250_vm2, %v235_v26  ;;  %v316_v28 = vpop.f32.mrb[6].mxu1 }
  0xed   :  { %256 = vst.msk [vmem:[%s531_s4 + $0x28] sm:$0xff] %vm250_vm2, %v206_v27  ;;  %266 = vst.msk [vmem:[%s531_s4 + $0x78] sm:$0xff] %vm250_vm2, %v316_v28  ;;  %v238_v29 = vpop.f32.mrb[7].mxu1 }
  0xee   :  { %264 = vst.msk [vmem:[%s531_s4 + $0x68] sm:$0xff] %vm250_vm2, %v238_v29 }

// kernel: convnet_forward.17
= control target key start
LH: loop header
LB: loop body
LE: loop exit
PB: predicated region body
PF: predicated region fallthrough
CT: control target
= control target key end

     0   :  { %vm75_vm0 = vcmask 1041408   ;;  %vm68_vm1 = vcmask 162816   ;;  %vm170_vm2 = vcmask 257024   ;;  %s287_s1 = inlined_call_operand.vmem [shape: bf16[20,32], index: 1, kind: input, shape index: {}]   ;;  %s288_s0 = inlined_call_operand.vmem [shape: f32[32,20], index: 0, kind: input, shape index: {}]   ;;  %s289_s2 = inlined_call_operand.vmem [shape: f32[1,20], index: 2, kind: input, shape index: {}]   ;;  %s290_s3 = inlined_call_operand.vmem [shape: f32[1,20], index: 3, kind: input, shape index: {}]   ;;  %s291_s4 = inlined_call_operand.vmem [shape: f32[1,32], index: 4, kind: input, shape index: {}]   ;;  %s292_s5 = inlined_call_operand.vmem [shape: f32[1,32], index: 5, kind: input, shape index: {}]   ;;  %s293_s6 = inlined_call_operand.vmem [shape: bf16[32,32], index: 6, kind: output, shape index: {}]  }
   0x1   :  { %v208_v0 = vld [vmem:[%s287_s1] sm:$0xff]   ;;  %v209_v1 = vld [vmem:[%s287_s1 + $0x8] ss:$0 sps:$4 sm:$0x33]   ;;  %v26_v8 = vld [vmem:[%s288_s0 + $0x10] sm:$0xff] }
   0x2   :  { %v24_v2 = vld [vmem:[%s288_s0] sm:$0xff]  ;;  %v25_v3 = vld [vmem:[%s288_s0 + $0x8] sm:$0xff]  ;;  %199 = vmatprep.subr.bf16.mxu0 %v208_v0  ;;  %v27_v9 = vld [vmem:[%s288_s0 + $0x18] sm:$0xff]  ;;  %v77_v12 = vsel %vm75_vm0, %v209_v1, 0 }
   0x3   :  { %v179_v4 = vld [vmem:[%s289_s2] ss:$0 sm:$0xff]  ;;  %200 = vmatpush3.bf16.msra.mxu0 %v208_v0 }
   0x4   :  { %v180_v5 = vld [vmem:[%s290_s3] ss:$0 sm:$0xff]  ;;  %v35_v6 = vmul.f32 %v179_v4, %v24_v2  ;;  %v36_v7 = vmul.f32 %v179_v4, %v25_v3  ;;  %v37_v10 = vmul.f32 %v179_v4, %v26_v8  ;;  %v38_v11 = vmul.f32 %v179_v4, %v27_v9  ;;  %207 = vmatprep.subr.msk.bf16.mxu0 %vm75_vm0, %v209_v1 }
   0x5   :  { %v185_v23 = vld [vmem:[%s291_s4] ss:$0 sm:$0xff] }
   0x6   :  { %v46_v13 = vadd.f32 %v180_v5, %v35_v6  ;;  %v47_v14 = vadd.f32 %v180_v5, %v36_v7  ;;  %v48_v15 = vadd.f32 %v180_v5, %v37_v10  ;;  %v49_v16 = vadd.f32 %v180_v5, %v38_v11  ;;  %v186_v25 = vld [vmem:[%s292_s5] ss:$0 sm:$0xff] }
   0x7   :  { %202 = vmatpush3.bf16.msra.mxu0 %v77_v12 }
   0x8   :  { %v50_v17 = vmax.f32 %v46_v13, 0.0  ;;  %v51_v18 = vmax.f32 %v47_v14, 0.0  ;;  %v52_v19 = vmax.f32 %v48_v15, 0.0  ;;  %v53_v20 = vmax.f32 %v49_v16, 0.0 }
   0xa   :  { %v54_v21 = vpack.c.bf16 %v51_v18, %v50_v17  ;;  %v55_v22 = vpack.c.bf16 %v53_v20, %v52_v19 }
   0xc   :  { %203 = vmatprep.mubr.msk.bf16.mxu0 %vm68_vm1, %v54_v21 }
   0xd   :  { %204 = vmatmul.mubr.msk.bf16.vlgmr.msra.gmra.mrb[0].mxu0 %vm68_vm1, %v55_v22 }
  0xe0   :  { %v205_v24 = vpop.f32.mrb[0].mxu0 }
  0xe1   :  { %v137_v26 = vmul.f32 %v205_v24, %v185_v23  ;;  %v113_v27 = vpop.f32.mrb[1].mxu0 }
  0xe2   :  { %v135_v28 = vmul.f32 %v185_v23, %v113_v27  ;;  %v206_v29 = vpop.f32.mrb[2].mxu0 }
  0xe3   :  { %v148_v30 = vadd.f32 %v186_v25, %v137_v26  ;;  %v138_v31 = vmul.f32 %v206_v29, %v185_v23  ;;  %v116_v32 = vpop.f32.mrb[3].mxu0 }
  0xe4   :  { %v146_v33 = vadd.f32 %v186_v25, %v135_v28  ;;  %v136_v34 = vmul.f32 %v185_v23, %v116_v32 }
  0xe5   :  { %v152_v35 = vmax.f32 %v148_v30, 0.0  ;;  %v149_v36 = vadd.f32 %v186_v25, %v138_v31 }
  0xe6   :  { %v150_v37 = vmax.f32 %v146_v33, 0.0  ;;  %v147_v38 = vadd.f32 %v186_v25, %v136_v34 }
  0xe7   :  { %v193_v39 = vpack.c.bf16 %v152_v35, %v152_v35  ;;  %v153_v40 = vmax.f32 %v149_v36, 0.0 }
  0xe8   :  { %v191_v41 = vpack.c.bf16 %v150_v37, %v150_v37  ;;  %v151_v42 = vmax.f32 %v147_v38, 0.0 }
  0xe9   :  { %173 = vst.msk [vmem:[%s293_s6 + $0x8] sm:$0xf] %vm170_vm2, %v193_v39  ;;  %v194_v43 = vpack.c.bf16 %v153_v40, %v153_v40 }
  0xea   :  { %171 = vst.msk [vmem:[%s293_s6] sm:$0xf] %vm170_vm2, %v191_v41  ;;  %v192_v44 = vpack.c.bf16 %v151_v42, %v151_v42 }
  0xeb   :  { %174 = vst.msk [vmem:[%s293_s6 + $0xc] sm:$0xf] %vm170_vm2, %v194_v43 }
  0xec   :  { %172 = vst.msk [vmem:[%s293_s6 + $0x4] sm:$0xf] %vm170_vm2, %v192_v44 }

// kernel: convnet_forward.18
= control target key start
LH: loop header
LB: loop body
LE: loop exit
PB: predicated region body
PF: predicated region fallthrough
CT: control target
= control target key end

     0   :  { %vm194_vm0 = vcmask 261120   ;;  %vm299_vm1 = vcmask 64512   ;;  %s499_s1 = inlined_call_operand.vmem [shape: bf16[288,8], index: 1, kind: input, shape index: {}]   ;;  %s500_s0 = inlined_call_operand.vmem [shape: bf16[32,288], index: 0, kind: input, shape index: {}]   ;;  %s501_s2 = inlined_call_operand.vmem [shape: f32[32,8], index: 2, kind: output, shape index: {}]  }
   0x1   :  { %v374_v0 = vld [vmem:[%s499_s1 + $0x40] sm:$0xff]   ;;  %v376_v2 = vld [vmem:[%s499_s1 + $0x48] sm:$0xff]   ;;  %v378_v4 = vld [vmem:[%s499_s1 + $0x50] sm:$0xff]  }
   0x2   :  { %v375_v1 = vld [vmem:[%s499_s1] sm:$0xff]   ;;  %334 = vmatprep.subr.bf16.mxu0 %v374_v0  ;;  %v377_v3 = vld [vmem:[%s499_s1 + $0x8] sm:$0xff]   ;;  %v379_v5 = vld [vmem:[%s499_s1 + $0x10] sm:$0xff]  }
   0x3   :  { %335 = vmatpush3.bf16.msra.mxu0 %v375_v1  ;;  %v380_v6 = vld [vmem:[%s499_s1 + $0x58] sm:$0xff]   ;;  %v382_v8 = vld [vmem:[%s499_s1 + $0x60] sm:$0xff]   ;;  %v384_v11 = vld [vmem:[%s499_s1 + $0x68] sm:$0xff]  }
   0x4   :  { %336 = vmatprep.subr.bf16.mxu0 %v376_v2  ;;  %v381_v7 = vld [vmem:[%s499_s1 + $0x18] sm:$0xff]   ;;  %v388_v9 = vld [vmem:[%s499_s1 + $0x80] sm:$0xff]   ;;  %v385_v12 = vld [vmem:[%s499_s1 + $0x28] sm:$0xff]  }
   0x5   :  { %v383_v10 = vld [vmem:[%s499_s1 + $0x20] sm:$0xff]   ;;  %366 = vmatprep.subr.bf16.mxu1 %v388_v9  ;;  %v391_v13 = vld [vmem:[%s499_s1 + $0x88] sm:$0xff]   ;;  %v386_v14 = vld [vmem:[%s499_s1 + $0x70] sm:$0xff]  }
   0x6   :  { %367 = vmatpush3.bf16.msra.mxu1 %v388_v9  ;;  %v394_v15 = vld [vmem:[%s500_s0 + $0x4] ss:$12 sps:$4 sm:$0xff]   ;;  %v395_v16 = vld [vmem:[%s500_s0 + $0x8] ss:$12 sps:$4 sm:$0xff]   ;;  %v396_v17 = vld [vmem:[%s500_s0 + $0x20] ss:$12 sps:$4 sm:$0xff]  }
   0x7   :  { %337 = vmatpush3.bf16.msra.mxu0 %v377_v3  ;;  %368 = vmatprep.subr.bf16.mxu1 %v391_v13  ;;  %v387_v18 = vld [vmem:[%s499_s1 + $0x30] sm:$0xff]   ;;  %v389_v19 = vld [vmem:[%s499_s1 + $0x78] sm:$0xff]   ;;  %v392_v21 = vld [vmem:[%s500_s0] ss:$12 sps:$4 sm:$0xff]  }
   0x8   :  { %338 = vmatprep.subr.bf16.mxu0 %v378_v4  ;;  %233 = vmatprep.mubr.bf16.mxu0 %v394_v15  ;;  %v390_v20 = vld [vmem:[%s499_s1 + $0x38] sm:$0xff]  }
   0x9   :  { %370 = vmatprep.mubr.msk.bf16.mxu1 %vm194_vm0, %v395_v16  ;;  %v397_v22 = vld [vmem:[%s500_s0 + $0x1c] ss:$12 sps:$4 sm:$0xff]   ;;  %v399_v23 = vld [vmem:[%s500_s0 + $0x18] ss:$12 sps:$4 sm:$0xff]  }
   0xa   :  { %369 = vmatpush3.bf16.msra.mxu1 %v391_v13 }
   0xb   :  { %339 = vmatpush3.bf16.msra.mxu0 %v379_v5 }
   0xc   :  { %340 = vmatprep.subr.bf16.mxu0 %v380_v6 }
   0xd   :  { %371 = vmatmul.mubr.msk.bf16.vlgmr.msra.gmra.mrb[0].mxu1 %vm194_vm0, %v396_v17 }
   0xf   :  { %341 = vmatpush3.bf16.msra.mxu0 %v381_v7 }
  0x10   :  { %342 = vmatprep.subr.bf16.mxu0 %v382_v8 }
  0x13   :  { %343 = vmatpush3.bf16.msra.mxu0 %v383_v10 }
  0x14   :  { %344 = vmatprep.subr.bf16.mxu0 %v384_v11 }
  0x17   :  { %345 = vmatpush3.bf16.msra.mxu0 %v385_v12 }
  0x18   :  { %346 = vmatprep.subr.bf16.mxu0 %v386_v14 }
  0x1b   :  { %347 = vmatpush3.bf16.msra.mxu0 %v387_v18 }
  0x1c   :  { %348 = vmatprep.subr.bf16.mxu0 %v389_v19 }
  0x1f   :  { %349 = vmatpush3.bf16.msra.mxu0 %v390_v20 }
  0x22   :  { %234 = vmatmul.mubr.bf16.vlgmr.msra.gmra.mrb[0].mxu0 %v392_v21 }
  0x23   :  { %241 = vmatprep.mubr.bf16.mxu0 %v397_v22 }
  0x2a   :  { %242 = vmatmul.mubr.bf16.gmra.mrb[4].mxu0 %v399_v23 }
  0xe0   :  { %v372_v24 = vpop.f32.mrb[0].mxu1 }
  0xe1   :  { %v284_v25 = vpop.f32.mrb[1].mxu1 }
  0xe2   :  { %v373_v26 = vpop.f32.mrb[2].mxu1 }
  0xe3   :  { %v287_v27 = vpop.f32.mrb[3].mxu1 }
  0xf5   :  { %v350_v28 = vpop.f32.mrb[0].mxu0 }
  0xf6   :  { %v351_v29 = vpop.f32.mrb[1].mxu0 }
  0xf7   :  { %v352_v30 = vadd.f32 %v351_v29, %v350_v28  ;;  %v353_v31 = vpop.f32.mrb[2].mxu0 }
  0xf8   :  { %v354_v32 = vpop.f32.mrb[3].mxu0 }
  0xf9   :  { %v355_v33 = vadd.f32 %v354_v32, %v353_v31  ;;  %v285_v34 = vadd.f32 %v352_v30, %v284_v25 }
  0xfb   :  { %300 = vst.msk [vmem:[%s501_s2] sm:$0xff] %vm299_vm1, %v285_v34  ;;  %v288_v35 = vadd.f32 %v355_v33, %v287_v27 }
  0xfd   :  { %301 = vst.msk [vmem:[%s501_s2 + $0x8] sm:$0xff] %vm299_vm1, %v288_v35  ;;  %v356_v36 = vpop.f32.mrb[4].mxu0 }
  0xfe   :  { %v357_v37 = vpop.f32.mrb[5].mxu0 }
  0xff   :  { %v358_v38 = vadd.f32 %v357_v37, %v356_v36  ;;  %v359_v39 = vpop.f32.mrb[6].mxu0 }
 0x100   :  { %v360_v40 = vpop.f32.mrb[7].mxu0 }
 0x101   :  { %v293_v41 = vadd.f32 %v372_v24, %v358_v38  ;;  %v361_v42 = vadd.f32 %v360_v40, %v359_v39 }
 0x103   :  { %302 = vst.msk [vmem:[%s501_s2 + $0x10] sm:$0xff] %vm299_vm1, %v293_v41  ;;  %v296_v43 = vadd.f32 %v373_v26, %v361_v42 }
 0x105   :  { %303 = vst.msk [vmem:[%s501_s2 + $0x18] sm:$0xff] %vm299_vm1, %v296_v43 }

// kernel: convnet_forward.19
= control target key start
LH: loop header
LB: loop body
LE: loop exit
PB: predicated region body
PF: predicated region fallthrough
CT: control target
= control target key end

     0   :  { %vm78_vm0 = vcmask 1045504   ;;  %vm71_vm1 = vcmask 228352   ;;  %vm173_vm2 = vcmask 257024   ;;  %s290_s1 = inlined_call_operand.vmem [shape: bf16[28,32], index: 1, kind: input, shape index: {}]   ;;  %s291_s0 = inlined_call_operand.vmem [shape: f32[32,28], index: 0, kind: input, shape index: {}]   ;;  %s292_s2 = inlined_call_operand.vmem [shape: f32[1,28], index: 2, kind: input, shape index: {}]   ;;  %s293_s3 = inlined_call_operand.vmem [shape: f32[1,28], index: 3, kind: input, shape index: {}]   ;;  %s294_s4 = inlined_call_operand.vmem [shape: f32[1,32], index: 4, kind: input, shape index: {}]   ;;  %s295_s5 = inlined_call_operand.vmem [shape: f32[1,32], index: 5, kind: input, shape index: {}]   ;;  %s296_s6 = inlined_call_operand.vmem [shape: bf16[32,32], index: 6, kind: output, shape index: {}]  }
   0x1   :  { %v211_v0 = vld [vmem:[%s290_s1] sm:$0xff]   ;;  %v212_v1 = vld [vmem:[%s290_s1 + $0x8] sm:$0x3f]   ;;  %v26_v8 = vld [vmem:[%s291_s0 + $0x10] sm:$0xff] }
   0x2   :  { %202 = vmatprep.subr.bf16.mxu0 %v211_v0  ;;  %v24_v2 = vld [vmem:[%s291_s0] sm:$0xff]  ;;  %v25_v3 = vld [vmem:[%s291_s0 + $0x8] sm:$0xff]  ;;  %v27_v9 = vld [vmem:[%s291_s0 + $0x18] sm:$0xff]  ;;  %v80_v10 = vsel %vm78_vm0, %v212_v1, 0 }
   0x3   :  { %v182_v4 = vld [vmem:[%s292_s2] ss:$0 sm:$0xff]  ;;  %203 = vmatpush3.bf16.msra.mxu0 %v211_v0 }
   0x4   :  { %v35_v5 = vmul.f32 %v182_v4, %v24_v2  ;;  %v36_v6 = vmul.f32 %v182_v4, %v25_v3  ;;  %v183_v7 = vld [vmem:[%s293_s3] ss:$0 sm:$0xff]  ;;  %210 = vmatprep.subr.msk.bf16.mxu0 %vm78_vm0, %v212_v1  ;;  %v37_v11 = vmul.f32 %v182_v4, %v26_v8  ;;  %v38_v12 = vmul.f32 %v182_v4, %v27_v9 }
   0x5   :  { %v188_v23 = vld [vmem:[%s294_s4] ss:$0 sm:$0xff] }
   0x6   :  { %v46_v13 = vadd.f32 %v183_v7, %v35_v5  ;;  %v47_v14 = vadd.f32 %v183_v7, %v36_v6  ;;  %v48_v15 = vadd.f32 %v183_v7, %v37_v11  ;;  %v49_v16 = vadd.f32 %v183_v7, %v38_v12  ;;  %v189_v25 = vld [vmem:[%s295_s5] ss:$0 sm:$0xff] }
   0x7   :  { %205 = vmatpush3.bf16.msra.mxu0 %v80_v10 }
   0x8   :  { %v50_v17 = vmax.f32 %v46_v13, 0.0  ;;  %v51_v18 = vmax.f32 %v47_v14, 0.0  ;;  %v52_v19 = vmax.f32 %v48_v15, 0.0  ;;  %v53_v20 = vmax.f32 %v49_v16, 0.0 }
   0xa   :  { %v54_v21 = vpack.c.bf16 %v51_v18, %v50_v17  ;;  %v55_v22 = vpack.c.bf16 %v53_v20, %v52_v19 }
   0xc   :  { %206 = vmatprep.mubr.msk.bf16.mxu0 %vm71_vm1, %v54_v21 }
   0xd   :  { %207 = vmatmul.mubr.msk.bf16.vlgmr.msra.gmra.mrb[0].mxu0 %vm71_vm1, %v55_v22 }
  0xe0   :  { %v208_v24 = vpop.f32.mrb[0].mxu0 }
  0xe1   :  { %v140_v26 = vmul.f32 %v208_v24, %v188_v23  ;;  %v116_v27 = vpop.f32.mrb[1].mxu0 }
  0xe2   :  { %v138_v28 = vmul.f32 %v188_v23, %v116_v27  ;;  %v209_v29 = vpop.f32.mrb[2].mxu0 }
  0xe3   :  { %v151_v30 = vadd.f32 %v189_v25, %v140_v26  ;;  %v141_v31 = vmul.f32 %v209_v29, %v188_v23  ;;  %v119_v32 = vpop.f32.mrb[3].mxu0 }
  0xe4   :  { %v149_v33 = vadd.f32 %v189_v25, %v138_v28  ;;  %v139_v34 = vmul.f32 %v188_v23, %v119_v32 }
  0xe5   :  { %v155_v35 = vmax.f32 %v151_v30, 0.0  ;;  %v152_v36 = vadd.f32 %v189_v25, %v141_v31 }
  0xe6   :  { %v153_v37 = vmax.f32 %v149_v33, 0.0  ;;  %v150_v38 = vadd.f32 %v189_v25, %v139_v34 }
  0xe7   :  { %v196_v39 = vpack.c.bf16 %v155_v35, %v155_v35  ;;  %v156_v40 = vmax.f32 %v152_v36, 0.0 }
  0xe8   :  { %v194_v41 = vpack.c.bf16 %v153_v37, %v153_v37  ;;  %v154_v42 = vmax.f32 %v150_v38, 0.0 }
  0xe9   :  { %176 = vst.msk [vmem:[%s296_s6 + $0x8] sm:$0xf] %vm173_vm2, %v196_v39  ;;  %v197_v43 = vpack.c.bf16 %v156_v40, %v156_v40 }
  0xea   :  { %174 = vst.msk [vmem:[%s296_s6] sm:$0xf] %vm173_vm2, %v194_v41  ;;  %v195_v44 = vpack.c.bf16 %v154_v42, %v154_v42 }
  0xeb   :  { %177 = vst.msk [vmem:[%s296_s6 + $0xc] sm:$0xf] %vm173_vm2, %v197_v43 }
  0xec   :  { %175 = vst.msk [vmem:[%s296_s6 + $0x4] sm:$0xf] %vm173_vm2, %v195_v44 }

// kernel: convnet_forward.21
= control target key start
LH: loop header
LB: loop body
LE: loop exit
PB: predicated region body
PF: predicated region fallthrough
CT: control target
= control target key end

     0   :  { %v228_v3 = vmov 0.0|0.0   ;;  %vm229_vm0 = vmmov 0   ;;  %v230_v7 = vmov 0.0   ;;  %s307_s0 = inlined_call_operand.vmem [shape: f32[2,16,36], index: 0, kind: input, shape index: {}]   ;;  %s308_s1 = inlined_call_operand.vmem [shape: f32[1,1,36], index: 1, kind: input, shape index: {}]   ;;  %s309_s2 = inlined_call_operand.vmem [shape: f32[1,1,36], index: 2, kind: input, shape index: {}]   ;;  %s310_s3 = inlined_call_operand.vmem [shape: f32[36,16], index: 3, kind: input, shape index: {}]   ;;  %s311_s4 = inlined_call_operand.hbm [shape: f32[2,16], index: 4, kind: output, shape index: {}]  }
   0x1   :  { %v70_v0 = vld [vmem:[%s310_s3] sm:$0xff]  ;;  %v71_v1 = vld [vmem:[%s310_s3 + $0x8] sm:$0xff]  ;;  %v72_v2 = vld [vmem:[%s310_s3 + $0x10] sm:$0xff]  ;;  %194 = vmatprep.subr.bf16.mxu0 %v228_v3  ;;  %191 = vmatprep.mubr.msk.f32.mxu0 %vm229_vm0, %v230_v7 }
   0x2   :  { %v195_v4 = vpack.c.bf16 %v71_v1, %v70_v0  ;;  %v73_v5 = vld [vmem:[%s310_s3 + $0x18] sm:$0xff]  ;;  %v18_v6 = vld [vmem:[%s307_s0] sm:$0xff]  ;;  %v19_v8 = vld [vmem:[%s307_s0 + $0x8] sm:$0xff] }
   0x3   :  { %v20_v9 = vld [vmem:[%s307_s0 + $0x10] sm:$0xff]  ;;  %v21_v10 = vld [vmem:[%s307_s0 + $0x18] sm:$0xff]  ;;  %v198_v11 = vpack.c.bf16 %v73_v5, %v72_v2  ;;  %v171_v12 = vld [vmem:[%s308_s1] ss:$0 sm:$0xff] }
   0x4   :  { %196 = vmatpush3.bf16.msra.mxu0 %v195_v4  ;;  %v172_v13 = vld [vmem:[%s309_s2] ss:$0 sm:$0xff] }
   0x5   :  { %9 = vsyncpa [#allocation3], 0  ;;  %197 = vmatprep.subr.bf16.mxu0 %v228_v3  ;;  %v29_v14 = vmul.f32 %v171_v12, %v18_v6  ;;  %v30_v15 = vmul.f32 %v171_v12, %v19_v8  ;;  %v31_v16 = vmul.f32 %v171_v12, %v20_v9  ;;  %v32_v17 = vmul.f32 %v171_v12, %v21_v10  ;;  %v74_v22 = vld [vmem:[%s310_s3 + $0x20] sm:$0xf]  ;;  %s231_s2 = smov [#allocation2]  }
   0x6   :  { %vm81_vm1 = vcmask 1043456   ;;  %vm48_vm2 = vcmask 293888   ;;  %vm77_vm3 = vcmask 1041409   ;;  %s163_s3 = sshll.u32 %s231_s2, 4  ;;  %vm155_vm4 = vcmask 123904   ;;  %s164_s3 = int_to_ptr.vmem [resolvable:$true] %s163_s3 }
   0x7   :  { %v40_v18 = vadd.f32 %v172_v13, %v29_v14  ;;  %v41_v19 = vadd.f32 %v172_v13, %v30_v15  ;;  %v42_v20 = vadd.f32 %v172_v13, %v31_v16  ;;  %v43_v21 = vadd.f32 %v172_v13, %v32_v17  ;;  %s204_s9 = scalar_lea.vmem %s164_s3, 32  ;;  %p209_p1 = scmp.lt.s32.totalorder %s164_s3, %s164_s3 }
   0x8   :  { %199 = vmatpush3.bf16.msra.mxu0 %v198_v11  ;;  %p205_p0 = scmp.ne.s32.totalorder %s164_s3, %s204_s9  ;;  %p210_p2 = scmp.lt.s32.totalorder %s204_s9, %s204_s9 }
   0x9   :  { %189 = vmatprep.subr.mxu0 %v230_v7  ;;  %v44_v23 = vmax.f32 %v40_v18, 0.0  ;;  %v45_v24 = vmax.f32 %v41_v19, 0.0  ;;  %v46_v25 = vmax.f32 %v42_v20, 0.0  ;;  %v47_v26 = vmax.f32 %v43_v21, 0.0 }
   0xa   :  { %p211_p3 = por %p210_p2, %p209_p1 }
   0xb   :  { %v49_v27 = vsel %vm48_vm2, %v44_v23, 0.0  ;;  %v50_v28 = vsel %vm48_vm2, %v45_v24, 0.0  ;;  %v58_v29 = vsel %vm48_vm2, %v46_v25, 0.0  ;;  %v59_v30 = vsel %vm48_vm2, %v47_v26, 0.0 }
   0xc   :  { %190 = vmatpush3.msk.msra.mxu0 %vm81_vm1, %v74_v22  ;;  %v51_v31 = vadd.f32 %v50_v28, %v49_v27  ;;  %v60_v32 = vadd.f32 %v59_v30, %v58_v29  ;;  %p212_p4 = pnand %p211_p3, %p205_p0 }
   0xe   :  { %v52_v33 = vrot.slane %v51_v31, 4  ;;  %v61_v34 = vrot.slane %v60_v32, 4 }
  0x10   :  { %v53_v35 = vadd.f32 %v52_v33, %v51_v31  ;;  %v62_v36 = vadd.f32 %v61_v34, %v60_v32 }
  0x12   :  { %v54_v37 = vrot.slane %v53_v35, 2  ;;  %v63_v38 = vrot.slane %v62_v36, 2 }
  0x14   :  { %v55_v39 = vadd.f32 %v54_v37, %v53_v35  ;;  %v64_v40 = vadd.f32 %v63_v38, %v62_v36 }
  0x16   :  { %v56_v41 = vrot.slane %v55_v39, 1  ;;  %v65_v42 = vrot.slane %v64_v40, 1 }
  0x18   :  { %v57_v43 = vadd.f32 %v56_v41, %v55_v39  ;;  %v66_v44 = vadd.f32 %v65_v42, %v64_v40 }
  0x1a   :  { %v68_v45 = vmul.f32 0.0625, %v57_v43  ;;  %v69_v46 = vmul.f32 0.0625, %v66_v44 }
  0x1c   :  { %v78_v47 = vsel %vm77_vm3, %v69_v46, %v68_v45 }
  0x1d   :  { %192 = vmatmul.mubr.msk.f32.vlgmr.msra.gmra.mrb[0].mxu0 %vm48_vm2, %v78_v47 }
  0xf0   :  { %v151_v48 = vpop.f32.mrb[0].mxu0 }
  0xf1   :  { %156 = vst.msk [vmem:[#allocation2] sm:$0x3] %vm155_vm4, %v151_v48  ;;  %v193_v49 = vpop.f32.mrb[1].mxu0 }
  0xf2   :  { %215 = shalt.err (!%p212_p4)
}
  0xf3   :  { %s216_s12 = scalar_lea.hbm %s311_s4, 32 }
  0xf4   :  { %p217_p5 = scmp.ne.s32.totalorder %s311_s4, %s216_s12  ;;  %p220_p6 = scmp.lt.u32.totalorder %s216_s12, %s311_s4 }
  0xf6   :  { %p222_p7 = pnand %p220_p6, %p217_p5 }
  0xf8   :  { %225 = shalt.err (!%p222_p7)
}
  0xf9   :  { %166 = dma.vmem_to_hbm [thread:$0]  %s164_s3, 32, %s311_s4, [#allocation3]  }
  0xfa   :  { %226 = dma.done.wait [#allocation3], 32  }
  0xfb   :  { %227 = vsyncadd [#allocation3], 4294967264 }
  0xfc   :  { %170 = vsyncpa [#allocation3], 1 }

</bundles_post_ra>
